<compile_context>
chip_gen: v7x
topology: tpu7x:2x2x1
jax: 0.10.0
libtpu: 0.0.40
codegen_flags: <defaults>
</compile_context>

<pallas_src>
import functools

import jax
import jax.numpy as jnp
from jax.experimental import pallas as pl
from jax.experimental.pallas import tpu as pltpu


def _round_up(x, m):
    return (x + m - 1) // m * m


def _soft_argmax_loss_kernel(hm_ref, side_ref, wts_ref, out_ref, *, row_tile, n_rows):
    """One grid step: a row tile of flattened per-joint heatmaps -> coords + loss term."""
    x = hm_ref[...].astype(jnp.float32)                       # (R, DHW) f32 compute
    m = jnp.max(x, axis=1, keepdims=True)                     # XLU reduce (stability)
    e = jnp.exp(x - m)                                        # EUP; unnormalized softmax

    # One MXU matmul replaces the softmax denominator + the three weighted reductions.
    # wts columns: [x_idx, y_idx, z_idx, 1, 0, 0, 0, 0] so
    # raw columns: [sum(e*x), sum(e*y), sum(e*z), sum(e), 0, 0, 0, 0]
    raw = jnp.dot(e, wts_ref[...], preferred_element_type=jnp.float32)   # (R, 8)

    inv_s = 1.0 / raw[:, 3:4]                                  # exact recip on tiny (R,1)
    coord = raw * inv_s                                        # lanes 0..2 = (cx, cy, cz)

    gt = side_ref[:, 0:3]                                      # (R, 3) gt coords
    w = side_ref[:, 3:6]                                       # (R, 3) = [vis, vis, vis*dep]
    d = jnp.abs(coord[:, 0:3] - gt) * w                        # masked L1 terms
    contrib = d[:, 0:1] + d[:, 1:2] + d[:, 2:3]                # per-row loss numerator

    # Tail tile: rows >= n_rows were read out-of-bounds (garbage / possibly NaN),
    # so explicitly zero their loss contribution (their coord writes are dropped).
    row = (jax.lax.broadcasted_iota(jnp.int32, (row_tile, 1), 0)
           + pl.program_id(0) * row_tile)
    contrib = jnp.where(row < n_rows, contrib, 0.0)

    # lanes 0-2: coords, lane 3: loss term, lanes 4-7: zero (raw columns 4-7 are zero)
    lane = jax.lax.broadcasted_iota(jnp.int32, (row_tile, 8), 1)
    out_ref[...] = jnp.where(lane == 3, contrib, coord)


def _vmem_limit_bytes():
    cap = 0
    try:
        cap = int(pltpu.get_tpu_info().vmem_capacity_bytes)
    except Exception:
        cap = 0
    if cap <= 0:
        cap = 64 << 20                                 # conservative (v7x-sized) fallback
    # ~55% of per-core VMEM: ~35 MiB on v7x (64 MiB), ~70 MiB on v5e/v6e (128 MiB)
    return int(min(96 << 20, max(32 << 20, (cap * 55) // 100)))


def joint_location_loss(heatmap_out, gt_coord, gt_vis, gt_have_depth, *, max_row_tile=1024):
    """Pallas implementation of JointLocationLoss.forward.

    heatmap_out: (B, J*D, H, W) float32 or bfloat16 (NCHW, like the torch module)
    gt_coord:    (B, J, 3) float
    gt_vis:      (B, J) float
    gt_have_depth: (B,) float
    returns (scalar loss, soft-argmax coords (B, J, 3))
    """
    B, J = gt_coord.shape[0], gt_coord.shape[1]
    C, H, W = heatmap_out.shape[1], heatmap_out.shape[2], heatmap_out.shape[3]
    D = C // J
    assert C == J * D, "channel dim must be joint_num * depth_dim"
    dhw = D * H * W
    n_rows = B * J

    # keep bf16 heatmaps bf16 in HBM (halves the dominant HBM stream);
    # other dtypes (e.g. f16) also go to bf16 rather than doubling HBM traffic via f32
    if heatmap_out.dtype in (jnp.bfloat16, jnp.float32):
        hm_dtype = heatmap_out.dtype
    else:
        hm_dtype = jnp.bfloat16
    itemsize = jnp.dtype(hm_dtype).itemsize
    hm = heatmap_out.reshape(n_rows, dhw).astype(hm_dtype)   # contiguous view + no-op cast

    # packed per-joint side info -> ONE tiny DMA per tile:
    # [gx, gy, gz, vis, vis, vis*have_depth, 0, 0]
    gtc = gt_coord.reshape(n_rows, 3).astype(jnp.float32)
    vis = gt_vis.reshape(n_rows, 1).astype(jnp.float32)
    dep = jnp.broadcast_to(gt_have_depth.astype(jnp.float32)[:, None],
                           (B, J)).reshape(n_rows, 1)
    side = jnp.concatenate(
        [gtc, vis, vis, vis * dep, jnp.zeros((n_rows, 2), jnp.float32)], axis=1)

    # loop-invariant soft-argmax weight planes: (DHW, 8), resident across the grid
    flat = jnp.arange(dhw, dtype=jnp.int32)            # W fastest, then H, then D
    wts = jnp.zeros((dhw, 8), jnp.float32)
    wts = wts.at[:, 0].set((flat % W).astype(jnp.float32))
    wts = wts.at[:, 1].set(((flat // W) % H).astype(jnp.float32))
    wts = wts.at[:, 2].set((flat // (W * H)).astype(jnp.float32))
    wts = wts.at[:, 3].set(1.0)

    # --- row tile selection: generation-aware VMEM budget, >=2 blocks when possible ---
    vmem_limit = _vmem_limit_bytes()
    sub = 8 if itemsize >= 4 else 16                   # sublane granularity (f32 / bf16)
    fixed = 2 * dhw * 8 * 4 + (2 << 20)                # wts buffers + headroom
    per_row = 2 * dhw * itemsize + 2 * dhw * 4 + 64 * 4   # hm dbl-buf + f32 temps + side/out
    budget_rows = max(sub, ((vmem_limit - fixed) // per_row) // sub * sub)
    row_tile = int(min(max_row_tile, budget_rows))
    # at least 2 grid blocks when B*J allows it -> megacore sharding on v7x
    row_tile = int(min(row_tile, _round_up(-(-n_rows // 2), sub)))
    row_tile = max(sub, (row_tile // sub) * sub)
    n_blocks = -(-n_rows // row_tile)                  # cdiv; tail tile masked in-kernel

    # only the tiny side-info array is ever padded (no full-heatmap copy)
    rows_pad = n_blocks * row_tile
    if rows_pad != n_rows:
        side = jnp.pad(side, ((0, rows_pad - n_rows), (0, 0)))

    kernel = functools.partial(_soft_argmax_loss_kernel,
                               row_tile=row_tile, n_rows=n_rows)

    out = pl.pallas_call(
        kernel,
        out_shape=jax.ShapeDtypeStruct((n_rows, 8), jnp.float32),
        grid_spec=pltpu.PrefetchScalarGridSpec(
            num_scalar_prefetch=0,
            grid=(n_blocks,),
            in_specs=[
                pl.BlockSpec((row_tile, dhw), lambda i: (i, 0)),   # heatmap rows
                pl.BlockSpec((row_tile, 8), lambda i: (i, 0)),     # packed side info
                pl.BlockSpec((dhw, 8), lambda i: (0, 0)),          # resident weights
            ],
            out_specs=pl.BlockSpec((row_tile, 8), lambda i: (i, 0)),
        ),
        compiler_params=pltpu.CompilerParams(
            dimension_semantics=("parallel",),                     # no cross-step carry
            vmem_limit_bytes=vmem_limit),
    )(hm, side, wts)

    loss = jnp.sum(out[:, 3]) / (3.0 * n_rows)
    coord = out[:, 0:3].reshape(B, J, 3)
    return loss, coord


def _reference_loss(heatmap_out, gt_coord, gt_vis, gt_have_depth):
    """Pure-JAX port of the torch forward, used only for verification."""
    B, J = gt_coord.shape[0], gt_coord.shape[1]
    H, W = heatmap_out.shape[2], heatmap_out.shape[3]
    D = heatmap_out.shape[1] // J
    hm = heatmap_out.reshape(B, J, -1).astype(jnp.float32)
    p = jax.nn.softmax(hm, axis=2).reshape(B, J, D, H, W)
    accu_x = p.sum(axis=(2, 3)) * jnp.arange(1, W + 1, dtype=jnp.float32)
    accu_y = p.sum(axis=(2, 4)) * jnp.arange(1, H + 1, dtype=jnp.float32)
    accu_z = p.sum(axis=(3, 4)) * jnp.arange(1, D + 1, dtype=jnp.float32)
    cx = accu_x.sum(-1) - 1.0
    cy = accu_y.sum(-1) - 1.0
    cz = accu_z.sum(-1) - 1.0
    coord = jnp.stack([cx, cy, cz], axis=-1)
    loss = jnp.abs(coord - gt_coord) * gt_vis[:, :, None]
    loss = (loss[..., 0] + loss[..., 1]
            + loss[..., 2] * gt_have_depth[:, None].astype(jnp.float32)) / 3.0
    return loss.mean(), coord


if __name__ == "__main__":
    key = jax.random.PRNGKey(0)

    # Case 1: f32 heatmaps, even multi-block grid (512 joint rows -> 2 tiles of 256).
    B, J, D, H, W = 16, 32, 8, 8, 8
    k1, k2, k3, k4, key = jax.random.split(key, 5)
    heatmap = jax.random.normal(k1, (B, J * D, H, W), dtype=jnp.float32) * 2.0
    gt_coord = jax.random.uniform(k2, (B, J, 3), minval=0.0, maxval=float(W))
    gt_vis = (jax.random.uniform(k3, (B, J)) > 0.3).astype(jnp.float32)
    gt_dep = (jax.random.uniform(k4, (B,)) > 0.5).astype(jnp.float32)

    loss, coord = joint_location_loss(heatmap, gt_coord, gt_vis, gt_dep)
    jax.block_until_ready(loss)
    ref_loss, ref_coord = _reference_loss(heatmap, gt_coord, gt_vis, gt_dep)
    assert jnp.allclose(loss, ref_loss, rtol=1e-4, atol=1e-4), (loss, ref_loss)
    assert jnp.allclose(coord, ref_coord, rtol=1e-4, atol=1e-3)

    # Case 2: ragged row count (B*J = 10, tail-masked in-kernel, no heatmap pad copy)
    #         + bf16 heatmaps kept bf16 in HBM.
    B2, J2 = 2, 5
    k1, k2, k3, k4, key = jax.random.split(key, 5)
    heatmap2 = (jax.random.normal(k1, (B2, J2 * D, H, W), dtype=jnp.float32)
                * 2.0).astype(jnp.bfloat16)
    gt_coord2 = jax.random.uniform(k2, (B2, J2, 3), minval=0.0, maxval=float(W))
    gt_vis2 = (jax.random.uniform(k3, (B2, J2)) > 0.3).astype(jnp.float32)
    gt_dep2 = (jax.random.uniform(k4, (B2,)) > 0.5).astype(jnp.float32)

    loss2, coord2 = joint_location_loss(heatmap2, gt_coord2, gt_vis2, gt_dep2)
    jax.block_until_ready(loss2)
    ref_loss2, ref_coord2 = _reference_loss(
        heatmap2.astype(jnp.float32), gt_coord2, gt_vis2, gt_dep2)
    assert jnp.allclose(loss2, ref_loss2, rtol=2e-3, atol=2e-3), (loss2, ref_loss2)
    assert jnp.allclose(coord2, ref_coord2, rtol=2e-3, atol=2e-2)

    print("KERNEL_OK")
</pallas_src>

<mosaic_0001>
module attributes {stable_mosaic.version = 11 : i64} {
  func.func @_soft_argmax_loss_kernel(%arg0: i32, %arg1: memref<256x512xf32, #tpu.memory_space<vmem>>, %arg2: memref<256x8xf32, #tpu.memory_space<vmem>>, %arg3: memref<512x8xf32, #tpu.memory_space<vmem>>, %arg4: memref<256x8xf32, #tpu.memory_space<vmem>>) attributes {dimension_semantics = [#tpu.dimension_semantics<parallel>], iteration_bounds = array<i64: 2>, scalar_prefetch = 0 : i64, scratch_operands = 0 : i64, tpu.core_type = #tpu.core_type<tc>, window_params = [{transform_indices = @transform_0, window_bounds = array<i64: 256, 512>}, {transform_indices = @transform_1, window_bounds = array<i64: 256, 8>}, {pipeline_mode = #tpu.pipeline_mode<synchronous>, transform_indices = @transform_2, window_bounds = array<i64: 512, 8>}, {transform_indices = @transform_3, window_bounds = array<i64: 256, 8>}]} {
    %c0 = arith.constant 0 : index
    %c0_0 = arith.constant 0 : index
    %0 = vector.load %arg1[%c0, %c0_0] : memref<256x512xf32, #tpu.memory_space<vmem>>, vector<256x512xf32>
    %cst = arith.constant dense<0xFF800000> : vector<256xf32>
    %1 = vector.multi_reduction <maximumf>, %0, %cst [1] : vector<256x512xf32> to vector<256xf32>
    %2 = vector.shape_cast %1 : vector<256xf32> to vector<256x1xf32>
    %3 = vector.broadcast %2 : vector<256x1xf32> to vector<256x512xf32>
    %4 = arith.subf %0, %3 : vector<256x512xf32>
    %5 = math.exp %4 : vector<256x512xf32>
    %c0_1 = arith.constant 0 : index
    %c0_2 = arith.constant 0 : index
    %6 = vector.load %arg3[%c0_1, %c0_2] : memref<512x8xf32, #tpu.memory_space<vmem>>, vector<512x8xf32>
    %cst_3 = arith.constant dense<0.000000e+00> : vector<256x8xf32>
    %7 = tpu.matmul %5, %6, %cst_3 {dimension_numbers = #tpu.dot_dimension_numbers<[1], [0], [0], [1], [0, 0, 1, 1], [], []>} : vector<256x512xf32>, vector<512x8xf32>, vector<256x8xf32> -> vector<256x8xf32>
    %8 = vector.extract_strided_slice %7 {offsets = [0, 3], sizes = [256, 1], strides = [1, 1]} : vector<256x8xf32> to vector<256x1xf32>
    %cst_4 = arith.constant 1.000000e+00 : f32
    %9 = vector.broadcast %cst_4 : f32 to vector<256x1xf32>
    %10 = arith.divf %9, %8 : vector<256x1xf32>
    %11 = vector.broadcast %10 : vector<256x1xf32> to vector<256x8xf32>
    %12 = arith.mulf %7, %11 : vector<256x8xf32>
    %c0_5 = arith.constant 0 : index
    %c0_6 = arith.constant 0 : index
    %13 = vector.load %arg2[%c0_5, %c0_6] : memref<256x8xf32, #tpu.memory_space<vmem>>, vector<256x3xf32>
    %c0_7 = arith.constant 0 : index
    %c3 = arith.constant 3 : index
    %14 = vector.load %arg2[%c0_7, %c3] : memref<256x8xf32, #tpu.memory_space<vmem>>, vector<256x3xf32>
    %15 = vector.extract_strided_slice %12 {offsets = [0, 0], sizes = [256, 3], strides = [1, 1]} : vector<256x8xf32> to vector<256x3xf32>
    %16 = arith.subf %15, %13 : vector<256x3xf32>
    %17 = math.absf %16 : vector<256x3xf32>
    %18 = arith.mulf %17, %14 : vector<256x3xf32>
    %19 = vector.extract_strided_slice %18 {offsets = [0, 0], sizes = [256, 1], strides = [1, 1]} : vector<256x3xf32> to vector<256x1xf32>
    %20 = vector.extract_strided_slice %18 {offsets = [0, 1], sizes = [256, 1], strides = [1, 1]} : vector<256x3xf32> to vector<256x1xf32>
    %21 = arith.addf %19, %20 : vector<256x1xf32>
    %22 = vector.extract_strided_slice %18 {offsets = [0, 2], sizes = [256, 1], strides = [1, 1]} : vector<256x3xf32> to vector<256x1xf32>
    %23 = arith.addf %21, %22 : vector<256x1xf32>
    %24 = tpu.iota {dimensions = array<i32: 0>} : vector<256x1xi32>
    %c256_i32 = arith.constant 256 : i32
    %25 = arith.muli %arg0, %c256_i32 : i32
    %26 = vector.broadcast %25 : i32 to vector<256x1xi32>
    %27 = arith.addi %24, %26 : vector<256x1xi32>
    %c512_i32 = arith.constant 512 : i32
    %28 = vector.broadcast %c512_i32 : i32 to vector<256x1xi32>
    %29 = arith.cmpi slt, %27, %28 : vector<256x1xi32>
    %cst_8 = arith.constant 0.000000e+00 : f32
    %30 = vector.broadcast %cst_8 : f32 to vector<256x1xf32>
    %31 = arith.select %29, %23, %30 : vector<256x1xi1>, vector<256x1xf32>
    %32 = tpu.iota {dimensions = array<i32: 1>} : vector<256x8xi32>
    %c3_i32 = arith.constant 3 : i32
    %33 = vector.broadcast %c3_i32 : i32 to vector<256x8xi32>
    %34 = arith.cmpi eq, %32, %33 : vector<256x8xi32>
    %35 = vector.shape_cast %31 : vector<256x1xf32> to vector<256x1xf32>
    %36 = vector.broadcast %35 : vector<256x1xf32> to vector<256x8xf32>
    %37 = arith.select %34, %36, %12 : vector<256x8xi1>, vector<256x8xf32>
    %c0_9 = arith.constant 0 : index
    %c0_10 = arith.constant 0 : index
    %38 = vector.load %arg4[%c0_9, %c0_10] : memref<256x8xf32, #tpu.memory_space<vmem>>, vector<256x8xf32>
    tpu.vector_store %arg4[%c0_9, %c0_10], %37 {strides = array<i32>} : memref<256x8xf32, #tpu.memory_space<vmem>>, vector<256x8xf32>,
    return
  }
  func.func @transform_0(%arg0: i32) -> (i32, i32) {
    %c0_i32 = arith.constant 0 : i32
    %c0_i32_0 = arith.constant 0 : i32
    return %arg0, %c0_i32 : i32, i32
  }
  func.func @transform_1(%arg0: i32) -> (i32, i32) {
    %c0_i32 = arith.constant 0 : i32
    %c0_i32_0 = arith.constant 0 : i32
    return %arg0, %c0_i32 : i32, i32
  }
  func.func @transform_2(%arg0: i32) -> (i32, i32) {
    %c0_i32 = arith.constant 0 : i32
    %c0_i32_0 = arith.constant 0 : i32
    %c0_i32_1 = arith.constant 0 : i32
    return %c0_i32, %c0_i32_0 : i32, i32
  }
  func.func @transform_3(%arg0: i32) -> (i32, i32) {
    %c0_i32 = arith.constant 0 : i32
    %c0_i32_0 = arith.constant 0 : i32
    return %arg0, %c0_i32 : i32, i32
  }
}

</mosaic_0001>

<bundles_post_ra>
// kernel: tpu_custom_call.1
= control target key start
LH: loop header
LB: loop body
LE: loop exit
PB: predicated region body
PF: predicated region fallthrough
CT: control target
= control target key end

     0   :  { %8 = vsyncpa [#allocation3], 0  ;;  %s5147_s0 = inlined_call_operand.hbm [shape: f32[512,512], index: 0, kind: input, shape index: {}]   ;;  %s5148_s1 = inlined_call_operand.vmem [shape: f32[512,8], index: 1, kind: input, shape index: {}]   ;;  %s5149_s2 = inlined_call_operand.vmem [shape: f32[512,8], index: 2, kind: input, shape index: {}]   ;;  %s5150_s3 = inlined_call_operand.vmem [shape: f32[512,8], index: 3, kind: output, shape index: {}]  }
   0x1   :  { %10 = vsyncpa [#allocation3 + $0x1], 0  ;;  %s3376_s12 = smov 0   ;;  %s3378_s13 = smov 0  }
   0x2   :  { %s3380_s14 = smov 0   ;;  %s3382_s15 = smov 0  }
   0x3 LB: > { %s3395_s16 = sadd.s32 4294967295, %s3345_s15   ;;  %s3398_s17 = sadd.s32 1, %s3345_s15   ;;  %s3345_s15 = sphi %s3382_s15, %s5271_s15   ;;  %s3341_s14 = sphi %s3380_s14, %s5270_s14   ;;  %s3337_s13 = sphi %s3378_s13, %s5269_s13   ;;  %s3333_s12 = sphi %s3376_s12, %s5268_s12  }
   0x4   : > { %s20_s18 = ssub.s32 %s3345_s15, %s3398_s17  ;;  %s23_s19 = sadd.s32 1, %s3341_s14 }
   0x5   : > { %p21_p0 = scmp.eq.s32.totalorder %s20_s18, 0  ;;  %p30_p1 = scmp.ne.s32.totalorder %s3341_s14, %s3337_s13 }
   0x6   : > { %p31_p2 = scmp.eq.s32.totalorder %s3345_s15, 0  ;;  %p36_p3 = scmp.ne.s32.totalorder %s3337_s13, %s3333_s12 }
   0x7   : > { %s3408_s20 = scalar_select %p21_p0, %s3341_s14, %s23_s19  }
   0x8   : > { %p32_p4 = por %p31_p2, %p30_p1  ;;  %p37_p5 = scmp.eq.s32.totalorder %s3395_s16, 0 }
   0x9   : > { %p2793_p6 = scmp.lt.s32.totalorder %s3345_s15, 2  ;;  %s136_s22 = sand.u32 1, %s3341_s14  }
   0xa   : > { %p3412_p7 = por %p37_p5, %p36_p3  ;;  %s2644_s23 = sshll.u32 %s136_s22, 10 }
   0xb   : > { %s2658_s24 = sshll.u32 %s3345_s15, 14  ;;  %s140_s28 = scalar_lea.vmem [#allocation2], %s2644_s23 }
   0xc   : > { %s3421_s27 = scalar_lea.hbm %s5147_s0, %s2658_s24  ;;  %s148_s29 = sshll.u32 %s140_s28, 4  ;;  %s3423_s29 = int_to_ptr.vmem [resolvable:$true] %s148_s29 }
   0xd   : > { %p3425_p8 = pnand %p2793_p6, %p32_p4  ;;  %s3430_s4 = scalar_lea.sflag [#allocation3], %s136_s22 }
   0xe   : > { %s3281_s5 = scalar_lea.hbm %s3421_s27, 16384  ;;  %s3286_s8 = scalar_lea.hbm %s5147_s0, 32768 }
   0xf   : > { %p3282_p10 = scmp.ne.s32.totalorder %s3421_s27, %s3281_s5  ;;  %p3283_p11 = pneg %p3425_p8 }
  0x10   : > { %p3287_p0 = scmp.lt.u32.totalorder %s3421_s27, %s5147_s0  ;;  %p3288_p1 = scmp.lt.u32.totalorder %s3286_s8, %s3281_s5 }
  0x11   : > { %p3284_p12 = pnand %p3283_p11, %p3282_p10  ;;  %p3290_p3 = scmp.lt.u32.totalorder %s3281_s5, %s3421_s27 }
  0x12   : > { %p3289_p2 = por %p3288_p1, %p3287_p0 }
  0x13   : > { %p3285_p13 = pneg %p3284_p12 }
  0x14   : > { %p3291_p4 = por %p3290_p3, %p3289_p2 }
  0x16   : > { %p3292_p5 = pnand %p3291_p4, %p3285_p13 }
  0x18   : > { %3295 = shalt.err (!%p3292_p5)
}
  0x19   : > { %s3296_s11 = scalar_lea.vmem %s3423_s29, 16384  ;;  %s3347_s12 = smov [#allocation2]  }
  0x1a   : > { %p3297_p6 = scmp.ne.s32.totalorder %s3423_s29, %s3296_s11  ;;  %s3301_s18 = sshll.u32 %s3347_s12, 4  ;;  %s3302_s18 = int_to_ptr.vmem [resolvable:$false] %s3301_s18 }
  0x1b   : > { %s3303_s19 = scalar_lea.vmem %s3302_s18, 32768  ;;  %p3304_p9 = scmp.lt.s32.totalorder %s3423_s29, %s3302_s18 }
  0x1c   : > { %p3299_p10 = pnand %p3297_p6, %p3283_p11  ;;  %p3305_p0 = scmp.lt.s32.totalorder %s3303_s19, %s3296_s11 }
  0x1e   : > { %p3300_p12 = pneg %p3299_p10  ;;  %p3306_p1 = por %p3305_p0, %p3304_p9 }
  0x20   : > { %p3307_p2 = pnand %p3306_p1, %p3300_p12 }
  0x22   : > { %3310 = shalt.err (!%p3307_p2)
}
  0x23   : > { %s3348_s22 = smov 512   ;;  %s3349_s23 = smov 32  }
  0x24   : > { %2792 = dma.hbm_to_vmem [thread:$0]  (!%p3425_p8), %s3421_s27, 16384, %s3423_s29, %s3430_s4, %s3348_s22, %s3348_s22, %s3349_s23  }
  0x25   : > { %p165_p11 = scmp.lt.s32.totalorder %s3345_s15, 3  ;;  %p5189_p13 = scmp.ge.s32.totalorder %s3345_s15, 1 }
  0x27   : > { %p166_p3 = pnand %p5189_p13, %p165_p11 }
  0x29   : > { %169 = sbr.rel (%p166_p3) target bundleno = 967 (0x3c7), region = 32 }
  0x30   : > { %s171_s24 = sand.u32 1, %s3337_s13  }
  0x31   : > { %s2649_s25 = sshll.u32 %s171_s24, 10  ;;  %s172_s26 = scalar_lea.sflag [#allocation3], %s171_s24 }
  0x32   : > { %s3462_s28 = scalar_lea.vmem [#allocation2], %s2649_s25 }
  0x33   : > { %3328 = dma.done.wait (%p3412_p7), %s172_s26, 16384  }
  0x34   : > { %3330 = vsyncadd (%p3412_p7), %s172_s26, 4294950912  ;;  %v5151_v0 = vmov 0.0|0.0   ;;  %v3471_v1 = vld [vmem:[%s3462_s28] sm:$0xff]  ;;  %v3474_v2 = vld [vmem:[%s3462_s28 + $0x8] sm:$0xff]  ;;  %s2650_s27 = sshll.u32 %s3395_s16, 5  ;;  %s3351_s6 = smov 125  }
  0x35   : > { %2659 = vmatprep.subr.bf16.mxu1 %v5151_v0  ;;  %2707 = vmatprep.subr.bf16.mxu0 %v5151_v0  ;;  %v3477_v3 = vld [vmem:[%s3462_s28 + $0x10] sm:$0xff]  ;;  %v344_v4 = vmax.f32 %v3471_v1, %v3474_v2  ;;  %v3482_v5 = vld [vmem:[%s3462_s28 + $0x20] sm:$0xff]  ;;  %v3485_v6 = vld [vmem:[%s3462_s28 + $0x28] sm:$0xff]  ;;  %p205_p7 = scmp.lt.s32.totalorder %s2650_s27, 63  ;;  %s3355_s7 = smov 126  }
  0x36   : > { %v3488_v7 = vld [vmem:[%s3462_s28 + $0x18] sm:$0xff]  ;;  %v3491_v8 = vld [vmem:[%s3462_s28 + $0x30] sm:$0xff]  ;;  %v349_v9 = vmax.f32 %v3482_v5, %v3485_v6  ;;  %v3496_v10 = vld [vmem:[%s3462_s28 + $0x40] sm:$0xff]  ;;  %s2654_s8 = sshll.u32 %s3395_s16, 8 }
  0x37   : > { %v345_v11 = vmax.f32 %v344_v4, %v3477_v3  ;;  %v3500_v12 = vld [vmem:[%s3462_s28 + $0x38] sm:$0xff]  ;;  %v3503_v13 = vld [vmem:[%s3462_s28 + $0x48] sm:$0xff]  ;;  %v3506_v14 = vld [vmem:[%s3462_s28 + $0x50] sm:$0xff]  ;;  %s5273_s27 = smov (!%p205_p7, %s2650_s27), 63 }
  0x38   : > { %v350_v15 = vmax.f32 %v349_v9, %v3491_v8  ;;  %v354_v16 = vmax.f32 %v3496_v10, %v3503_v13  ;;  %v3512_v17 = vld [vmem:[%s3462_s28 + $0x60] sm:$0xff]  ;;  %v3515_v18 = vld [vmem:[%s3462_s28 + $0x68] sm:$0xff]  ;;  %v3518_v19 = vld [vmem:[%s3462_s28 + $0x70] sm:$0xff]  ;;  %s2651_s29 = sshll.u32 %s5273_s27, 3 }
  0x39   : > { %v346_v20 = vmax.f32 %v345_v11, %v3488_v7  ;;  %v3522_v21 = vld [vmem:[%s3462_s28 + $0x58] sm:$0xff]  ;;  %v359_v22 = vmax.f32 %v3512_v17, %v3515_v18  ;;  %v3527_v23 = vld [vmem:[%s3462_s28 + $0x80] sm:$0xff]  ;;  %v3530_v24 = vld [vmem:[%s3462_s28 + $0x88] sm:$0xff]  ;;  %s4019_s5 = scalar_lea.vmem %s5148_s1, %s2651_s29  ;;  %s4972_s10 = scalar_lea.vmem %s5150_s3, %s2651_s29 }
  0x3a   : > { %v355_v25 = vmax.f32 %v354_v16, %v3506_v14  ;;  %v3534_v26 = vld [vmem:[%s3462_s28 + $0x78] sm:$0xff]  ;;  %v3537_v27 = vld [vmem:[%s3462_s28 + $0x90] sm:$0xff]  ;;  %v364_v28 = vmax.f32 %v3527_v23, %v3530_v24  ;;  %v3542_v29 = vld [vmem:[%s3462_s28 + $0xa0] sm:$0xff]  ;;  %v351_v30 = vmax.f32 %v350_v15, %v3500_v12 }
  0x3b   : > { %347 = vmax.xlane.f32.xlu0 %v346_v20  ;;  %v360_v31 = vmax.f32 %v359_v22, %v3518_v19  ;;  %v3547_v32 = vld [vmem:[%s3462_s28 + $0x98] sm:$0xff]  ;;  %v3550_v33 = vld [vmem:[%s3462_s28 + $0xa8] sm:$0xff]  ;;  %v3553_v34 = vld [vmem:[%s3462_s28 + $0xb0] sm:$0xff] }
  0x3c   : > { %5190 = vst [vmem:[#allocation5_spill] sm:$0xff] %v3553_v34  ;;  %v356_v35 = vmax.f32 %v355_v25, %v3522_v21  ;;  %v365_v36 = vmax.f32 %v364_v28, %v3537_v27  ;;  %v369_v37 = vmax.f32 %v3542_v29, %v3550_v33  ;;  %v3560_v38 = vld [vmem:[%s3462_s28 + $0xc0] sm:$0xff]  ;;  %v3563_v39 = vld [vmem:[%s3462_s28 + $0xc8] sm:$0xff]  ;;  %v3566_v40 = vld [vmem:[%s3462_s28 + $0xd0] sm:$0xff] }
  0x3d   : > { %5191 = vst [vmem:[#allocation6_spill] sm:$0xff] %v3566_v40  ;;  %v374_v41 = vmax.f32 %v3560_v38, %v3563_v39  ;;  %v3571_v42 = vld [vmem:[%s3462_s28 + $0xe0] sm:$0xff]  ;;  %v3574_v43 = vld [vmem:[%s3462_s28 + $0xe8] sm:$0xff]  ;;  %v361_v44 = vmax.f32 %v360_v31, %v3534_v26  ;;  %v3578_v45 = vld [vmem:[%s3462_s28 + $0xb8] sm:$0xff] }
  0x3e   : > { %357 = vmax.xlane.f32.xlu1 %v356_v35  ;;  %v370_v46 = vmax.f32 %v369_v37, %v3553_v34  ;;  %v379_v47 = vmax.f32 %v3571_v42, %v3574_v43  ;;  %v3584_v48 = vld [vmem:[%s3462_s28 + $0x100] sm:$0xff]  ;;  %v366_v49 = vmax.f32 %v365_v36, %v3547_v32  ;;  %v3588_v50 = vld [vmem:[%s3462_s28 + $0xd8] sm:$0xff]  ;;  %v246_v52 = vld [vmem:[%s3462_s28 + $0xf0] sm:$0xff] }
  0x3f   : > { %352 = vmax.xlane.f32.xlu0 %v351_v30  ;;  %5192 = vst [vmem:[#allocation7_spill] sm:$0xff] %v3588_v50  ;;  %v375_v51 = vmax.f32 %v374_v41, %v3566_v40  ;;  %v3593_v53 = vld [vmem:[%s3462_s28 + $0x108] sm:$0xff]  ;;  %v250_v54 = vld [vmem:[%s3462_s28 + $0x110] sm:$0xff]  ;;  %v3599_v56 = vld [vmem:[%s3462_s28 + $0x120] sm:$0xff] }
  0x40   : > { %v384_v55 = vmax.f32 %v3584_v48, %v3593_v53  ;;  %5193 = vst [vmem:[#allocation8_spill] sm:$0xff] %v3599_v56  ;;  %v3602_v57 = vld [vmem:[%s3462_s28 + $0x128] sm:$0xff]  ;;  %v3605_v58 = vld [vmem:[%s3462_s28 + $0x140] sm:$0xff]  ;;  %v371_v60 = vmax.f32 %v370_v46, %v3578_v45  ;;  %v3612_v61 = vld [vmem:[%s3462_s28 + $0xf8] sm:$0xff]  ;;  %v380_v62 = vmax.f32 %v379_v47, %v246_v52 }
  0x41   : > { %5194 = vst [vmem:[#allocation9_spill] sm:$0xff] %v3602_v57  ;;  %5195 = vst [vmem:[#allocation10_spill] sm:$0xff] %v3605_v58  ;;  %v3608_v59 = vld [vmem:[%s3462_s28 + $0x148] sm:$0xff]  ;;  %v251_v63 = vld [vmem:[%s3462_s28 + $0x118] sm:$0xff]  ;;  %v389_v4 = vmax.f32 %v3599_v56, %v3602_v57  ;;  %v376_v9 = vmax.f32 %v375_v51, %v3588_v50 }
  0x42   : > { %5196 = vst [vmem:[#allocation11_spill] sm:$0xff] %v3608_v59  ;;  %362 = vmax.xlane.f32.xlu1 %v361_v44  ;;  %5197 = vst [vmem:[#allocation12_spill] sm:$0xff] %v3612_v61  ;;  %v385_v11 = vmax.f32 %v384_v55, %v250_v54  ;;  %v254_v15 = vld [vmem:[%s3462_s28 + $0x130] sm:$0xff]  ;;  %v394_v16 = vmax.f32 %v3605_v58, %v3608_v59  ;;  %v260_v20 = vld [vmem:[%s3462_s28 + $0x160] sm:$0xff]  ;;  %v381_v31 = vmax.f32 %v380_v62, %v3612_v61 }
  0x43   : > { %367 = vmax.xlane.f32.xlu0 %v366_v49  ;;  %v261_v22 = vld [vmem:[%s3462_s28 + $0x168] sm:$0xff]  ;;  %v258_v25 = vld [vmem:[%s3462_s28 + $0x150] sm:$0xff]  ;;  %v264_v28 = vld [vmem:[%s3462_s28 + $0x180] sm:$0xff]  ;;  %v390_v36 = vmax.f32 %v389_v4, %v254_v15 }
  0x44   : > { %v265_v30 = vld [vmem:[%s3462_s28 + $0x188] sm:$0xff]  ;;  %v255_v35 = vld [vmem:[%s3462_s28 + $0x138] sm:$0xff]  ;;  %v399_v41 = vmax.f32 %v260_v20, %v261_v22  ;;  %v386_v44 = vmax.f32 %v385_v11, %v251_v63  ;;  %v395_v46 = vmax.f32 %v394_v16, %v258_v25  ;;  %v262_v47 = vld [vmem:[%s3462_s28 + $0x170] sm:$0xff] }
  0x45   : > { %v259_v37 = vld [vmem:[%s3462_s28 + $0x158] sm:$0xff]  ;;  %v404_v49 = vmax.f32 %v264_v28, %v265_v30  ;;  %v268_v51 = vld [vmem:[%s3462_s28 + $0x1a0] sm:$0xff]  ;;  %v269_v52 = vld [vmem:[%s3462_s28 + $0x1a8] sm:$0xff]  ;;  %v391_v62 = vmax.f32 %v390_v36, %v255_v35 }
  0x46   : > { %372 = vmax.xlane.f32.xlu1 %v371_v60  ;;  %v266_v54 = vld [vmem:[%s3462_s28 + $0x190] sm:$0xff]  ;;  %v272_v55 = vld [vmem:[%s3462_s28 + $0x1c0] sm:$0xff]  ;;  %v273_v60 = vld [vmem:[%s3462_s28 + $0x1c8] sm:$0xff]  ;;  %v400_v4 = vmax.f32 %v399_v41, %v262_v47  ;;  %v409_v15 = vmax.f32 %v268_v51, %v269_v52  ;;  %v396_v11 = vmax.f32 %v395_v46, %v259_v37 }
  0x47   : > { %377 = vmax.xlane.f32.xlu0 %v376_v9  ;;  %v276_v63 = vld [vmem:[%s3462_s28 + $0x1e0] sm:$0xff]  ;;  %v277_v9 = vld [vmem:[%s3462_s28 + $0x1e8] sm:$0xff]  ;;  %v263_v16 = vld [vmem:[%s3462_s28 + $0x178] sm:$0xff]  ;;  %v405_v22 = vmax.f32 %v404_v49, %v266_v54  ;;  %v414_v28 = vmax.f32 %v272_v55, %v273_v60 }
  0x48   : > { %v267_v20 = vld [vmem:[%s3462_s28 + $0x198] sm:$0xff]  ;;  %v270_v25 = vld [vmem:[%s3462_s28 + $0x1b0] sm:$0xff]  ;;  %v281_v35 = vld [vmem:[%s3462_s28 + $0x208] sm:$0xff]  ;;  %v419_v36 = vmax.f32 %v276_v63, %v277_v9  ;;  %v401_v41 = vmax.f32 %v400_v4, %v263_v16 }
  0x49   : > { %v274_v30 = vld [vmem:[%s3462_s28 + $0x1d0] sm:$0xff]  ;;  %v410_v37 = vmax.f32 %v409_v15, %v270_v25  ;;  %v406_v47 = vmax.f32 %v405_v22, %v267_v20  ;;  %v275_v49 = vld [vmem:[%s3462_s28 + $0x1d8] sm:$0xff]  ;;  %v284_v54 = vld [vmem:[%s3462_s28 + $0x220] sm:$0xff] }
  0x4a   : > { %382 = vmax.xlane.f32.xlu1 %v381_v31  ;;  %v280_v31 = vld [vmem:[%s3462_s28 + $0x200] sm:$0xff]  ;;  %v278_v46 = vld [vmem:[%s3462_s28 + $0x1f0] sm:$0xff]  ;;  %v415_v51 = vmax.f32 %v414_v28, %v274_v30  ;;  %v285_v55 = vld [vmem:[%s3462_s28 + $0x228] sm:$0xff] }
  0x4b   : > { %387 = vmax.xlane.f32.xlu0 %v386_v44  ;;  %v271_v44 = vld [vmem:[%s3462_s28 + $0x1b8] sm:$0xff]  ;;  %v424_v52 = vmax.f32 %v280_v31, %v281_v35  ;;  %v282_v60 = vld [vmem:[%s3462_s28 + $0x210] sm:$0xff]  ;;  %v288_v63 = vld [vmem:[%s3462_s28 + $0x240] sm:$0xff]  ;;  %v420_v15 = vmax.f32 %v419_v36, %v278_v46  ;;  %v429_v20 = vmax.f32 %v284_v54, %v285_v55 }
  0x4c   : > { %v279_v4 = vld [vmem:[%s3462_s28 + $0x1f8] sm:$0xff]  ;;  %v411_v9 = vmax.f32 %v410_v37, %v271_v44  ;;  %v290_v22 = vld [vmem:[%s3462_s28 + $0x250] sm:$0xff]  ;;  %v292_v25 = vld [vmem:[%s3462_s28 + $0x260] sm:$0xff]  ;;  %v416_v28 = vmax.f32 %v415_v51, %v275_v49 }
  0x4d   : > { %v283_v16 = vld [vmem:[%s3462_s28 + $0x218] sm:$0xff]  ;;  %v425_v30 = vmax.f32 %v424_v52, %v282_v60  ;;  %v293_v35 = vld [vmem:[%s3462_s28 + $0x268] sm:$0xff]  ;;  %v296_v0 = vld [vmem:[%s3462_s28 + $0x280] sm:$0xff]  ;;  %v421_v37 = vmax.f32 %v420_v15, %v279_v4 }
  0x4e   : > { %392 = vmax.xlane.f32.xlu1 %v391_v62  ;;  %v289_v62 = vld [vmem:[%s3462_s28 + $0x248] sm:$0xff]  ;;  %v888_v36 = vld [vmem:[%s5149_s2] sm:$0xff]  ;;  %v287_v46 = vld [vmem:[%s3462_s28 + $0x238] sm:$0xff]  ;;  %v439_v55 = vmax.f32 %v292_v25, %v293_v35 }
  0x4f   : > { %397 = vmax.xlane.f32.xlu0 %v396_v11  ;;  %v286_v11 = vld [vmem:[%s3462_s28 + $0x230] sm:$0xff]  ;;  %v434_v31 = vmax.f32 %v288_v63, %v289_v62  ;;  %v297_v59 = vld [vmem:[%s3462_s28 + $0x288] sm:$0xff]  ;;  %v920_v44 = vld [vmem:[%s5149_s2 + $0x100] sm:$0xff]  ;;  %v426_v15 = vmax.f32 %v425_v30, %v283_v16  ;;  %v5198_v16 = vmov 0.0|0.0  }
  0x50   : > { %v298_v49 = vld [vmem:[%s3462_s28 + $0x290] sm:$0xff]  ;;  %v921_v52 = vld [vmem:[%s5149_s2 + $0x108] sm:$0xff]  ;;  %v430_v54 = vmax.f32 %v429_v20, %v286_v11  ;;  %v444_v60 = vmax.f32 %v296_v0, %v297_v59  ;;  %v300_v63 = vld [vmem:[%s3462_s28 + $0x2a0] sm:$0xff] }
  0x51   : > { %v301_v62 = vld [vmem:[%s3462_s28 + $0x2a8] sm:$0xff]  ;;  %v2708_v58 = vpack.c.bf16 %v921_v52, %v920_v44  ;;  %v890_v4 = vld [vmem:[%s5149_s2 + $0x10] sm:$0xff]  ;;  %v923_v59 = vld [vmem:[%s5149_s2 + $0x118] sm:$0xff] }
  0x52   : > { %402 = vmax.xlane.f32.xlu1 %v401_v41  ;;  %v889_v41 = vld [vmem:[%s5149_s2 + $0x8] sm:$0xff]  ;;  %v922_v0 = vld [vmem:[%s5149_s2 + $0x110] sm:$0xff]  ;;  %v291_v11 = vld [vmem:[%s3462_s28 + $0x258] sm:$0xff]  ;;  %v431_v44 = vmax.f32 %v430_v54, %v287_v46  ;;  %v445_v52 = vmax.f32 %v444_v60, %v298_v49 }
  0x53   : > { %407 = vmax.xlane.f32.xlu0 %v406_v47  ;;  %v294_v47 = vld [vmem:[%s3462_s28 + $0x270] sm:$0xff]  ;;  %v2660_v51 = vpack.c.bf16 %v889_v41, %v888_v36  ;;  %v435_v36 = vmax.f32 %v434_v31, %v290_v22  ;;  %v304_v20 = vld [vmem:[%s3462_s28 + $0x2c0] sm:$0xff]  ;;  %v305_v25 = vld [vmem:[%s3462_s28 + $0x2c8] sm:$0xff]  ;;  %2709 = vmatpush1.bf16.msra.mxu0 %v2708_v58  ;;  %v2711_v35 = vpack.c.bf16 %v923_v59, %v922_v0 }
  0x54   : > { %v3694_v30 = vld [vmem:[%s3462_s28 + $0x298] sm:$0xff]  ;;  %v302_v31 = vld [vmem:[%s3462_s28 + $0x2b0] sm:$0xff]  ;;  %2710 = vmatprep.subr.bf16.mxu0 %v5198_v16  ;;  %v892_v41 = vld [vmem:[%s5149_s2 + $0x20] sm:$0xff]  ;;  %v454_v40 = vmax.f32 %v304_v20, %v305_v25 }
  0x55   : > { %2661 = vmatpush1.bf16.msra.mxu1 %v2660_v51  ;;  %v893_v58 = vld [vmem:[%s5149_s2 + $0x28] sm:$0xff]  ;;  %v440_v51 = vmax.f32 %v439_v55, %v294_v47  ;;  %v924_v0 = vld [vmem:[%s5149_s2 + $0x120] sm:$0xff]  ;;  %v436_v61 = vmax.f32 %v435_v36, %v291_v11  ;;  %v894_v54 = vld [vmem:[%s5149_s2 + $0x30] sm:$0xff]  ;;  %v446_v36 = vmax.f32 %v445_v52, %v3694_v30 }
  0x56   : > { %412 = vmax.xlane.f32.xlu1 %v411_v9  ;;  %v891_v9 = vld [vmem:[%s5149_s2 + $0x18] sm:$0xff]  ;;  %2662 = vmatprep.subr.bf16.mxu1 %v5198_v16  ;;  %v925_v59 = vld [vmem:[%s5149_s2 + $0x128] sm:$0xff]  ;;  %v308_v57 = vld [vmem:[%s3462_s28 + $0x2e0] sm:$0xff]  ;;  %v2666_v46 = vpack.c.bf16 %v893_v58, %v892_v41 }
  0x57   : > { %417 = vmax.xlane.f32.xlu0 %v416_v28  ;;  %v2663_v22 = vpack.c.bf16 %v891_v9, %v890_v4  ;;  %v295_v28 = vld [vmem:[%s3462_s28 + $0x278] sm:$0xff]  ;;  %v449_v4 = vmax.f32 %v300_v63, %v301_v62  ;;  %v306_v9 = vld [vmem:[%s3462_s28 + $0x2d0] sm:$0xff]  ;;  %v312_v56 = vld [vmem:[%s3462_s28 + $0x300] sm:$0xff]  ;;  %2712 = vmatpush1.bf16.msra.mxu0 %v2711_v35  ;;  %v2714_v49 = vpack.c.bf16 %v925_v59, %v924_v0 }
  0x58   : > { %v313_v47 = vld [vmem:[%s3462_s28 + $0x308] sm:$0xff]  ;;  %v895_v55 = vld [vmem:[%s5149_s2 + $0x38] sm:$0xff]  ;;  %2713 = vmatprep.subr.bf16.mxu0 %v5198_v16  ;;  %v926_v63 = vld [vmem:[%s5149_s2 + $0x130] sm:$0xff]  ;;  %v455_v41 = vmax.f32 %v454_v40, %v306_v9 }
  0x59   : > { %2664 = vmatpush1.bf16.msra.mxu1 %v2663_v22  ;;  %v303_v60 = vld [vmem:[%s3462_s28 + $0x2b8] sm:$0xff]  ;;  %v450_v11 = vmax.f32 %v449_v4, %v302_v31  ;;  %v310_v25 = vld [vmem:[%s3462_s28 + $0x2f0] sm:$0xff]  ;;  %v316_v35 = vld [vmem:[%s3462_s28 + $0x320] sm:$0xff]  ;;  %v464_v58 = vmax.f32 %v312_v56, %v313_v47 }
  0x5a   : > { %422 = vmax.xlane.f32.xlu1 %v421_v37  ;;  %v309_v37 = vld [vmem:[%s3462_s28 + $0x2e8] sm:$0xff]  ;;  %2665 = vmatprep.subr.bf16.mxu1 %v5198_v16  ;;  %v927_v62 = vld [vmem:[%s5149_s2 + $0x138] sm:$0xff]  ;;  %v320_v59 = vld [vmem:[%s3462_s28 + $0x340] sm:$0xff] }
  0x5b   : > { %427 = vmax.xlane.f32.xlu0 %v426_v15  ;;  %v441_v15 = vmax.f32 %v440_v51, %v295_v28  ;;  %v307_v20 = vld [vmem:[%s3462_s28 + $0x2d8] sm:$0xff]  ;;  %v459_v22 = vmax.f32 %v308_v57, %v309_v37  ;;  %v317_v0 = vld [vmem:[%s3462_s28 + $0x328] sm:$0xff]  ;;  %v314_v34 = vld [vmem:[%s3462_s28 + $0x310] sm:$0xff]  ;;  %2715 = vmatpush1.bf16.msra.mxu0 %v2714_v49  ;;  %v2717_v28 = vpack.c.bf16 %v927_v62, %v926_v63 }
  0x5c   : > { %v321_v50 = vld [vmem:[%s3462_s28 + $0x348] sm:$0xff]  ;;  %v896_v57 = vld [vmem:[%s5149_s2 + $0x40] sm:$0xff]  ;;  %v311_v56 = vld [vmem:[%s3462_s28 + $0x2f8] sm:$0xff]  ;;  %2716 = vmatprep.subr.bf16.mxu0 %v5198_v16  ;;  %v451_v31 = vmax.f32 %v450_v11, %v303_v60  ;;  %v469_v9 = vmax.f32 %v316_v35, %v317_v0  ;;  %v456_v47 = vmax.f32 %v455_v41, %v307_v20  ;;  %v465_v49 = vmax.f32 %v464_v58, %v314_v34 }
  0x5d   : > { %2667 = vmatpush1.bf16.msra.mxu1 %v2666_v46  ;;  %v897_v40 = vld [vmem:[%s5149_s2 + $0x48] sm:$0xff]  ;;  %v460_v51 = vmax.f32 %v459_v22, %v310_v25  ;;  %v315_v52 = vld [vmem:[%s3462_s28 + $0x318] sm:$0xff]  ;;  %v318_v4 = vld [vmem:[%s3462_s28 + $0x330] sm:$0xff]  ;;  %v474_v46 = vmax.f32 %v320_v59, %v321_v50 }
  0x5e   : > { %432 = vmax.xlane.f32.xlu1 %v431_v44  ;;  %v2669_v44 = vpack.c.bf16 %v895_v55, %v894_v54  ;;  %2668 = vmatprep.subr.bf16.mxu1 %v5198_v16  ;;  %v929_v30 = vld [vmem:[%s5149_s2 + $0x148] sm:$0xff]  ;;  %v322_v37 = vld [vmem:[%s3462_s28 + $0x350] sm:$0xff]  ;;  %v324_v54 = vld [vmem:[%s3462_s28 + $0x360] sm:$0xff]  ;;  %v2672_v63 = vpack.c.bf16 %v897_v40, %v896_v57  ;;  %v470_v22 = vmax.f32 %v469_v9, %v318_v4 }
  0x5f   : > { %437 = vmax.xlane.f32.xlu0 %v436_v61  ;;  %v928_v61 = vld [vmem:[%s5149_s2 + $0x140] sm:$0xff]  ;;  %v325_v55 = vld [vmem:[%s3462_s28 + $0x368] sm:$0xff]  ;;  %2718 = vmatpush1.bf16.msra.mxu0 %v2717_v28  ;;  %v898_v50 = vld [vmem:[%s5149_s2 + $0x50] sm:$0xff]  ;;  %v461_v25 = vmax.f32 %v460_v51, %v311_v56  ;;  %v475_v41 = vmax.f32 %v474_v46, %v322_v37 }
  0x60   : > { %v328_v62 = vld [vmem:[%s3462_s28 + $0x380] sm:$0xff]  ;;  %v2720_v60 = vpack.c.bf16 %v929_v30, %v928_v61  ;;  %v899_v34 = vld [vmem:[%s5149_s2 + $0x58] sm:$0xff]  ;;  %2719 = vmatprep.subr.bf16.mxu0 %v5198_v16  ;;  %v930_v11 = vld [vmem:[%s5149_s2 + $0x150] sm:$0xff]  ;;  %v479_v0 = vmax.f32 %v324_v54, %v325_v55 }
  0x61   : > { %2670 = vmatpush1.bf16.msra.mxu1 %v2669_v44  ;;  %v931_v20 = vld [vmem:[%s5149_s2 + $0x158] sm:$0xff]  ;;  %v326_v58 = vld [vmem:[%s3462_s28 + $0x370] sm:$0xff]  ;;  %v466_v44 = vmax.f32 %v465_v49, %v315_v52  ;;  %v2675_v57 = vpack.c.bf16 %v899_v34, %v898_v50  ;;  %v332_v40 = vld [vmem:[%s3462_s28 + $0x3a0] sm:$0xff] }
  0x62   : > { %442 = vmax.xlane.f32.xlu1 %v441_v15  ;;  %2671 = vmatprep.subr.bf16.mxu1 %v5198_v16  ;;  %v329_v15 = vld [vmem:[%s3462_s28 + $0x388] sm:$0xff]  ;;  %v323_v35 = vld [vmem:[%s3462_s28 + $0x358] sm:$0xff]  ;;  %v330_v59 = vld [vmem:[%s3462_s28 + $0x390] sm:$0xff]  ;;  %v2723_v30 = vpack.c.bf16 %v931_v20, %v930_v11  ;;  %v480_v49 = vmax.f32 %v479_v0, %v326_v58 }
  0x63   : > { %447 = vmax.xlane.f32.xlu0 %v446_v36  ;;  %v319_v36 = vld [vmem:[%s3462_s28 + $0x338] sm:$0xff]  ;;  %v484_v28 = vmax.f32 %v328_v62, %v329_v15  ;;  %v333_v61 = vld [vmem:[%s3462_s28 + $0x3a8] sm:$0xff]  ;;  %v900_v56 = vld [vmem:[%s5149_s2 + $0x60] sm:$0xff]  ;;  %2721 = vmatpush1.bf16.msra.mxu0 %v2720_v60  ;;  %v476_v46 = vmax.f32 %v475_v41, %v323_v35 }
  0x64   : > { %v336_v51 = vld [vmem:[%s3462_s28 + $0x3c0] sm:$0xff]  ;;  %v337_v52 = vld [vmem:[%s3462_s28 + $0x3c8] sm:$0xff]  ;;  %2722 = vmatprep.subr.bf16.mxu0 %v5198_v16  ;;  %v471_v37 = vmax.f32 %v470_v22, %v319_v36  ;;  %v331_v54 = vld [vmem:[%s3462_s28 + $0x398] sm:$0xff]  ;;  %v489_v55 = vmax.f32 %v332_v40, %v333_v61 }
  0x65   : > { %2673 = vmatpush1.bf16.msra.mxu1 %v2672_v63  ;;  %v932_v4 = vld [vmem:[%s5149_s2 + $0x160] sm:$0xff]  ;;  %v933_v9 = vld [vmem:[%s5149_s2 + $0x168] sm:$0xff]  ;;  %v485_v63 = vmax.f32 %v484_v28, %v330_v59  ;;  %v334_v62 = vld [vmem:[%s3462_s28 + $0x3b0] sm:$0xff]  ;;  %v494_v15 = vmax.f32 %v336_v51, %v337_v52 }
  0x66   : > { %452 = vmax.xlane.f32.xlu1 %v451_v31  ;;  %2674 = vmatprep.subr.bf16.mxu1 %v5198_v16  ;;  %v901_v31 = vld [vmem:[%s5149_s2 + $0x68] sm:$0xff]  ;;  %v340_v50 = vld [vmem:[%s3462_s28 + $0x3e0] sm:$0xff]  ;;  %v2726_v11 = vpack.c.bf16 %v933_v9, %v932_v4  ;;  %v338_v36 = vld [vmem:[%s3462_s28 + $0x3d0] sm:$0xff]  ;;  %v490_v58 = vmax.f32 %v489_v55, %v334_v62 }
  0x67   : > { %457 = vmax.xlane.f32.xlu0 %v456_v47  ;;  %v327_v47 = vld [vmem:[%s3462_s28 + $0x378] sm:$0xff]  ;;  %v2678_v60 = vpack.c.bf16 %v901_v31, %v900_v56  ;;  %v341_v34 = vld [vmem:[%s3462_s28 + $0x3e8] sm:$0xff]  ;;  %2724 = vmatpush1.bf16.msra.mxu0 %v2723_v30  ;;  %v902_v20 = vld [vmem:[%s5149_s2 + $0x70] sm:$0xff]  ;;  %v486_v59 = vmax.f32 %v485_v63, %v331_v54  ;;  %v495_v28 = vmax.f32 %v494_v15, %v338_v36 }
  0x68   : > { %2725 = vmatprep.subr.bf16.mxu0 %v5198_v16  ;;  %v934_v22 = vld [vmem:[%s5149_s2 + $0x170] sm:$0xff]  ;;  %v935_v35 = vld [vmem:[%s5149_s2 + $0x178] sm:$0xff]  ;;  %v481_v41 = vmax.f32 %v480_v49, %v327_v47  ;;  %v499_v0 = vmax.f32 %v340_v50, %v341_v34  ;;  %v904_v30 = vld [vmem:[%s5149_s2 + $0x80] sm:$0xff] }
  0x69   : > { %2676 = vmatpush1.bf16.msra.mxu1 %v2675_v57  ;;  %v342_v40 = vld [vmem:[%s3462_s28 + $0x3f0] sm:$0xff]  ;;  %v339_v61 = vld [vmem:[%s3462_s28 + $0x3d8] sm:$0xff]  ;;  %v2729_v56 = vpack.c.bf16 %v935_v35, %v934_v22  ;;  %v905_v31 = vld [vmem:[%s5149_s2 + $0x88] sm:$0xff] }
  0x6a   : > { %462 = vmax.xlane.f32.xlu1 %v461_v25  ;;  %2677 = vmatprep.subr.bf16.mxu1 %v5198_v16  ;;  %v903_v25 = vld [vmem:[%s5149_s2 + $0x78] sm:$0xff]  ;;  %v936_v51 = vld [vmem:[%s5149_s2 + $0x180] sm:$0xff]  ;;  %v937_v52 = vld [vmem:[%s5149_s2 + $0x188] sm:$0xff]  ;;  %v500_v9 = vmax.f32 %v499_v0, %v342_v40  ;;  %v2684_v47 = vpack.c.bf16 %v905_v31, %v904_v30 }
  0x6b   : > { %467 = vmax.xlane.f32.xlu0 %v466_v44  ;;  %v335_v44 = vld [vmem:[%s3462_s28 + $0x3b8] sm:$0xff]  ;;  %v2681_v57 = vpack.c.bf16 %v903_v25, %v902_v20  ;;  %2727 = vmatpush1.bf16.msra.mxu0 %v2726_v11  ;;  %v2732_v49 = vpack.c.bf16 %v937_v52, %v936_v51  ;;  %v906_v54 = vld [vmem:[%s5149_s2 + $0x90] sm:$0xff]  ;;  %v908_v34 = vld [vmem:[%s5149_s2 + $0xa0] sm:$0xff] }
  0x6c   : > { %2728 = vmatprep.subr.bf16.mxu0 %v5198_v16  ;;  %v491_v4 = vmax.f32 %v490_v58, %v335_v44  ;;  %v907_v55 = vld [vmem:[%s5149_s2 + $0x98] sm:$0xff]  ;;  %v938_v63 = vld [vmem:[%s5149_s2 + $0x190] sm:$0xff]  ;;  %v909_v11 = vld [vmem:[%s5149_s2 + $0xa8] sm:$0xff] }
  0x6d   : > { %2679 = vmatpush1.bf16.msra.mxu1 %v2678_v60  ;;  %v939_v62 = vld [vmem:[%s5149_s2 + $0x198] sm:$0xff]  ;;  %v2687_v15 = vpack.c.bf16 %v907_v55, %v906_v54  ;;  %v940_v36 = vld [vmem:[%s5149_s2 + $0x1a0] sm:$0xff]  ;;  %v941_v20 = vld [vmem:[%s5149_s2 + $0x1a8] sm:$0xff]  ;;  %v2690_v25 = vpack.c.bf16 %v909_v11, %v908_v34 }
  0x6e   : > { %472 = vmax.xlane.f32.xlu1 %v471_v37  ;;  %2680 = vmatprep.subr.bf16.mxu1 %v5198_v16  ;;  %v496_v37 = vmax.f32 %v495_v28, %v339_v61  ;;  %v2735_v50 = vpack.c.bf16 %v939_v62, %v938_v63  ;;  %v2738_v22 = vpack.c.bf16 %v941_v20, %v940_v36  ;;  %v910_v35 = vld [vmem:[%s5149_s2 + $0xb0] sm:$0xff]  ;;  %v943_v0 = vld [vmem:[%s5149_s2 + $0x1b8] sm:$0xff]  ;;  %v912_v28 = vld [vmem:[%s5149_s2 + $0xc0] sm:$0xff] }
  0x6f   : > { %477 = vmax.xlane.f32.xlu0 %v476_v46  ;;  %v343_v46 = vld [vmem:[%s3462_s28 + $0x3f8] sm:$0xff]  ;;  %2730 = vmatpush1.bf16.msra.mxu0 %v2729_v56  ;;  %v942_v58 = vld [vmem:[%s5149_s2 + $0x1b0] sm:$0xff]  ;;  %v944_v40 = vld [vmem:[%s5149_s2 + $0x1c0] sm:$0xff] }
  0x70   : > { %2731 = vmatprep.subr.bf16.mxu0 %v5198_v16  ;;  %v501_v60 = vmax.f32 %v500_v9, %v343_v46  ;;  %v2741_v44 = vpack.c.bf16 %v943_v0, %v942_v58  ;;  %v945_v61 = vld [vmem:[%s5149_s2 + $0x1c8] sm:$0xff]  ;;  %v914_v31 = vld [vmem:[%s5149_s2 + $0xd0] sm:$0xff]  ;;  %v915_v51 = vld [vmem:[%s5149_s2 + $0xd8] sm:$0xff] }
  0x71   : > { %2682 = vmatpush1.bf16.msra.mxu1 %v2681_v57  ;;  %v913_v57 = vld [vmem:[%s5149_s2 + $0xc8] sm:$0xff]  ;;  %v2744_v30 = vpack.c.bf16 %v945_v61, %v944_v40  ;;  %v946_v52 = vld [vmem:[%s5149_s2 + $0x1d0] sm:$0xff]  ;;  %v2699_v9 = vpack.c.bf16 %v915_v51, %v914_v31  ;;  %v916_v46 = vld [vmem:[%s5149_s2 + $0xe0] sm:$0xff] }
  0x72   : > { %482 = vmax.xlane.f32.xlu1 %v481_v41  ;;  %2683 = vmatprep.subr.bf16.mxu1 %v5198_v16  ;;  %v911_v41 = vld [vmem:[%s5149_s2 + $0xb8] sm:$0xff]  ;;  %v2696_v56 = vpack.c.bf16 %v913_v57, %v912_v28  ;;  %v949_v54 = vld [vmem:[%s5149_s2 + $0x1e8] sm:$0xff]  ;;  %v918_v62 = vld [vmem:[%s5149_s2 + $0xf0] sm:$0xff] }
  0x73   : > { %487 = vmax.xlane.f32.xlu0 %v486_v59  ;;  %2733 = vmatpush1.bf16.msra.mxu0 %v2732_v49  ;;  %v2693_v59 = vpack.c.bf16 %v911_v41, %v910_v35  ;;  %v948_v49 = vld [vmem:[%s5149_s2 + $0x1e0] sm:$0xff] }
  0x74   : > { %2734 = vmatprep.subr.bf16.mxu0 %v5198_v16  ;;  %v2750_v63 = vpack.c.bf16 %v949_v54, %v948_v49 }
  0x75   : > { %2685 = vmatpush1.bf16.msra.mxu1 %v2684_v47  ;;  %v917_v47 = vld [vmem:[%s5149_s2 + $0xe8] sm:$0xff] }
  0x76   : > { %492 = vmax.xlane.f32.xlu1 %v491_v4  ;;  %2686 = vmatprep.subr.bf16.mxu1 %v5198_v16  ;;  %v947_v4 = vld [vmem:[%s5149_s2 + $0x1d8] sm:$0xff]  ;;  %v2702_v55 = vpack.c.bf16 %v917_v47, %v916_v46 }
  0x77   : > { %497 = vmax.xlane.f32.xlu0 %v496_v37  ;;  %2736 = vmatpush1.bf16.msra.mxu0 %v2735_v50  ;;  %v2747_v37 = vpack.c.bf16 %v947_v4, %v946_v52  ;;  %v951_v50 = vld [vmem:[%s5149_s2 + $0x1f8] sm:$0xff] }
  0x78   : > { %2737 = vmatprep.subr.bf16.mxu0 %v5198_v16 }
  0x79   : > { %2688 = vmatpush1.bf16.msra.mxu1 %v2687_v15  ;;  %v950_v15 = vld [vmem:[%s5149_s2 + $0x1f0] sm:$0xff] }
  0x7a   : > { %502 = vmax.xlane.f32.xlu1 %v501_v60  ;;  %2689 = vmatprep.subr.bf16.mxu1 %v5198_v16  ;;  %v919_v60 = vld [vmem:[%s5149_s2 + $0xf8] sm:$0xff]  ;;  %v2753_v11 = vpack.c.bf16 %v951_v50, %v950_v15 }
  0x7b   : > { %2739 = vmatpush1.bf16.msra.mxu0 %v2738_v22  ;;  %v2705_v34 = vpack.c.bf16 %v919_v60, %v918_v62 }
  0x7c   : > { %2740 = vmatprep.subr.bf16.mxu0 %v5198_v16 }
  0x7d   : > { %2691 = vmatpush1.bf16.msra.mxu1 %v2690_v25 }
  0x7e   : > { %2692 = vmatprep.subr.bf16.mxu1 %v5198_v16 }
  0x7f   : > { %2742 = vmatpush1.bf16.msra.mxu0 %v2741_v44 }
  0x80   : > { %2743 = vmatprep.subr.bf16.mxu0 %v5198_v16 }
  0x81   : > { %2694 = vmatpush1.bf16.msra.mxu1 %v2693_v59 }
  0x82   : > { %2695 = vmatprep.subr.bf16.mxu1 %v5198_v16 }
  0x83   : > { %2745 = vmatpush1.bf16.msra.mxu0 %v2744_v30 }
  0x84   : > { %2746 = vmatprep.subr.bf16.mxu0 %v5198_v16 }
  0x85   : > { %2697 = vmatpush1.bf16.msra.mxu1 %v2696_v56 }
  0x86   : > { %2698 = vmatprep.subr.bf16.mxu1 %v5198_v16 }
  0x87   : > { %2748 = vmatpush1.bf16.msra.mxu0 %v2747_v37 }
  0x88   : > { %2749 = vmatprep.subr.bf16.mxu0 %v5198_v16 }
  0x89   : > { %2700 = vmatpush1.bf16.msra.mxu1 %v2699_v9 }
  0x8a   : > { %2701 = vmatprep.subr.bf16.mxu1 %v5198_v16 }
  0x8b   : > { %2751 = vmatpush1.bf16.msra.mxu0 %v2750_v63 }
  0x8c   : > { %2752 = vmatprep.subr.bf16.mxu0 %v5198_v16 }
  0x8d   : > { %2703 = vmatpush1.bf16.msra.mxu1 %v2702_v55 }
  0x8e   : > { %2704 = vmatprep.subr.bf16.mxu1 %v5198_v16 }
  0x8f   : > { %2754 = vmatpush1.bf16.msra.mxu0 %v2753_v11 }
  0x91   : > { %2706 = vmatpush1.bf16.msra.mxu1 %v2705_v34 }
  0xc8   : > { %v348_v36 = vpop.xlane.xlu0 %347 }
  0xc9   : > { %v504_v20 = vsub.f32 %v3471_v1, %v348_v36  ;;  %v505_v25 = vsub.f32 %v3474_v2, %v348_v36  ;;  %v506_v2 = vsub.f32 %v3477_v3, %v348_v36  ;;  %v507_v30 = vsub.f32 %v3488_v7, %v348_v36 }
  0xcb   : > { %v632_v22 = vmul.f32 1.442695, %v504_v20  ;;  %v3936_v35 = vpop.xlane.xlu1 %357  ;;  %v634_v41 = vmul.f32 1.442695, %v505_v25  ;;  %v636_v56 = vmul.f32 1.442695, %v506_v2 }
  0xcc   : > { %v353_v58 = vpop.xlane.xlu0 %352  ;;  %v513_v44 = vsub.f32 %v3503_v13, %v3936_v35  ;;  %v512_v16 = vsub.f32 %v3496_v10, %v3936_v35  ;;  %v515_v7 = vsub.f32 %v3522_v21, %v3936_v35  ;;  %v514_v21 = vsub.f32 %v3506_v14, %v3936_v35 }
  0xcd   : > { %v508_v0 = vsub.f32 %v3482_v5, %v353_v58  ;;  %v509_v59 = vsub.f32 %v3485_v6, %v353_v58  ;;  %2838 = vpow2.f32 %v632_v22  ;;  %v511_v10 = vsub.f32 %v3500_v12, %v353_v58 }
  0xce   : > { %2840 = vpow2.f32 %v634_v41  ;;  %v650_v40 = vmul.f32 1.442695, %v513_v44  ;;  %v648_v6 = vmul.f32 1.442695, %v512_v16  ;;  %v638_v12 = vmul.f32 1.442695, %v507_v30 }
  0xcf   : > { %v640_v28 = vmul.f32 1.442695, %v508_v0  ;;  %v642_v1 = vmul.f32 1.442695, %v509_v59  ;;  %v3944_v57 = vpop.xlane.xlu1 %362  ;;  %v646_v4 = vmul.f32 1.442695, %v511_v10 }
  0xd0   : > { %v517_v5 = vsub.f32 %v3515_v18, %v3944_v57  ;;  %v516_v13 = vsub.f32 %v3512_v17, %v3944_v57  ;;  %v3951_v61 = vpop.xlane.xlu0 %367  ;;  %v510_v17 = vsub.f32 %v3491_v8, %v353_v58  ;;  %v654_v63 = vmul.f32 1.442695, %v515_v7 }
  0xd1   : > { %2842 = vpow2.f32 %v640_v28  ;;  %v520_v3 = vsub.f32 %v3527_v23, %v3951_v61  ;;  %v521_v18 = vsub.f32 %v3530_v24, %v3951_v61  ;;  %v652_v34 = vmul.f32 1.442695, %v514_v21 }
  0xd2   : > { %2844 = vpow2.f32 %v642_v1  ;;  %v658_v31 = vmul.f32 1.442695, %v517_v5  ;;  %v656_v51 = vmul.f32 1.442695, %v516_v13  ;;  %v644_v54 = vmul.f32 1.442695, %v510_v17 }
  0xd3   : > { %2846 = vpow2.f32 %v650_v40  ;;  %v3959_v52 = vpop.xlane.xlu1 %372  ;;  %v664_v46 = vmul.f32 1.442695, %v520_v3  ;;  %v666_v24 = vmul.f32 1.442695, %v521_v18  ;;  %v5199_v40 = vld [vmem:[#allocation5_spill] sm:$0xff] }
  0xd4   : > { %2848 = vpow2.f32 %v648_v6  ;;  %v524_v23 = vsub.f32 %v3542_v29, %v3959_v52  ;;  %v525_v47 = vsub.f32 %v3550_v33, %v3959_v52  ;;  %v3968_v8 = vpop.xlane.xlu0 %377  ;;  %v519_v29 = vsub.f32 %v3534_v26, %v3944_v57 }
  0xd5   : > { %2850 = vpow2.f32 %v636_v56  ;;  %v528_v33 = vsub.f32 %v3560_v38, %v3968_v8  ;;  %v529_v15 = vsub.f32 %v3563_v39, %v3968_v8  ;;  %v518_v26 = vsub.f32 %v3518_v19, %v3944_v57  ;;  %v5201_v56 = vld [vmem:[#allocation8_spill] sm:$0xff] }
  0xd6   : > { %2852 = vpow2.f32 %v658_v31  ;;  %v672_v62 = vmul.f32 1.442695, %v524_v23  ;;  %v674_v60 = vmul.f32 1.442695, %v525_v47  ;;  %v662_v36 = vmul.f32 1.442695, %v519_v29 }
  0xd7   : > { %v2839_v9 = vpop.eup %2838  ;;  %2854 = vpow2.f32 %v656_v51  ;;  %v3978_v50 = vpop.xlane.xlu1 %382  ;;  %v523_v38 = vsub.f32 %v3547_v32, %v3951_v61  ;;  %v680_v20 = vmul.f32 1.442695, %v528_v33  ;;  %v682_v22 = vmul.f32 1.442695, %v529_v15  ;;  %v5202_v51 = vld [vmem:[#allocation9_spill] sm:$0xff] }
  0xd8   : > { %v2841_v37 = vpop.eup %2840  ;;  %2856 = vpow2.f32 %v646_v4  ;;  %v532_v39 = vsub.f32 %v3571_v42, %v3978_v50  ;;  %v533_v19 = vsub.f32 %v3574_v43, %v3978_v50  ;;  %v3988_v35 = vpop.xlane.xlu0 %387  ;;  %v660_v58 = vmul.f32 1.442695, %v518_v26 }
  0xd9   : > { %1016 = vmatprep.mubr.f32.mxu1 %v2841_v37  ;;  %2858 = vpow2.f32 %v638_v12  ;;  %v522_v32 = vsub.f32 %v3537_v27, %v3951_v61  ;;  %v670_v59 = vmul.f32 1.442695, %v523_v38  ;;  %v527_v42 = vsub.f32 %v3578_v45, %v3959_v52  ;;  %v1659_v12 = vld [vmem:[%s4019_s5 + $0x8] sm:$0xff]  ;;  %v1658_v37 = vld [vmem:[%s4019_s5] sm:$0xff] }
  0xda   : > { %1017 = vmatmul.mubr.f32.vlgmr.msra.gmra.mrb[0].mxu1 %v2839_v9  ;;  %2860 = vpow2.f32 %v664_v46  ;;  %v688_v43 = vmul.f32 1.442695, %v532_v39  ;;  %v536_v16 = vsub.f32 %v3584_v48, %v3988_v35  ;;  %v690_v1 = vmul.f32 1.442695, %v533_v19  ;;  %v5203_v9 = vld [vmem:[#allocation6_spill] sm:$0xff]  ;;  %1788 = vrot.lane.b32.xlu0 %v1659_v12, %s3351_s6 }
  0xdb   : > { %v2843_v49 = vpop.eup %2842  ;;  %2862 = vpow2.f32 %v666_v24  ;;  %v537_v27 = vsub.f32 %v3593_v53, %v3988_v35  ;;  %v3999_v57 = vpop.xlane.xlu1 %392  ;;  %v668_v45 = vmul.f32 1.442695, %v522_v32  ;;  %v526_v5 = vsub.f32 %v5199_v40, %v3959_v52  ;;  %v5200_v53 = vld [vmem:[#allocation7_spill] sm:$0xff]  ;;  %v5204_v24 = vld [vmem:[#allocation12_spill] sm:$0xff]  ;;  %1786 = vrot.lane.b32.xlu1 %v1658_v37, %s3351_s6 }
  0xdc   : > { %v2845_v55 = vpop.eup %2844  ;;  %2864 = vpow2.f32 %v644_v54  ;;  %v678_v6 = vmul.f32 1.442695, %v527_v42  ;;  %v531_v13 = vsub.f32 %v5200_v53, %v3968_v8  ;;  %v696_v10 = vmul.f32 1.442695, %v536_v16  ;;  %v4012_v52 = vpop.xlane.xlu0 %397  ;;  %v3162_v16 = vld [vmem:[%s3462_s28 + $0x110] sm:$0xff]  ;;  %v1665_v53 = vld [vmem:[%s4019_s5 + $0x38] sm:$0xff] }
  0xdd   : > { %1021 = vmatprep.mubr.f32.mxu1 %v2845_v55  ;;  %v2847_v14 = vpop.eup %2846  ;;  %2866 = vpow2.f32 %v654_v63  ;;  %v540_v30 = vsub.f32 %v5201_v56, %v3999_v57  ;;  %v698_v3 = vmul.f32 1.442695, %v537_v27  ;;  %v541_v18 = vsub.f32 %v5202_v51, %v3999_v57  ;;  %v1661_v55 = vld [vmem:[%s4019_s5 + $0x18] sm:$0xff]  ;;  %v3166_v51 = vld [vmem:[%s3462_s28 + $0x130] sm:$0xff] }
  0xde   : > { %1022 = vmatmul.mubr.f32.gmra.mrb[2].mxu1 %v2843_v49  ;;  %v2849_v11 = vpop.eup %2848  ;;  %2868 = vpow2.f32 %v672_v62  ;;  %v676_v4 = vmul.f32 1.442695, %v526_v5  ;;  %v530_v7 = vsub.f32 %v5203_v9, %v3968_v8  ;;  %v686_v23 = vmul.f32 1.442695, %v531_v13  ;;  %v5205_v8 = vld [vmem:[#allocation10_spill] sm:$0xff]  ;;  %v5206_v62 = vld [vmem:[#allocation11_spill] sm:$0xff]  ;;  %1792 = vrot.lane.b32.xlu0 %v1661_v55, %s3351_s6 }
  0xdf   : > { %1026 = vmatprep.mubr.f32.mxu1 %v2847_v14  ;;  %v2851_v25 = vpop.eup %2850  ;;  %2870 = vpow2.f32 %v674_v60  ;;  %v535_v47 = vsub.f32 %v5204_v24, %v3978_v50  ;;  %v704_v54 = vmul.f32 1.442695, %v540_v30  ;;  %v544_v21 = vsub.f32 %v5205_v8, %v4012_v52  ;;  %v4033_v60 = vpop.xlane.xlu1 %402  ;;  %v1667_v24 = vld [vmem:[%s4019_s5 + $0x48] sm:$0xff] }
  0xe0   : > { %v2853_v41 = vpop.eup %2852  ;;  %2872 = vpow2.f32 %v652_v34  ;;  %v706_v29 = vmul.f32 1.442695, %v541_v18  ;;  %v545_v33 = vsub.f32 %v5206_v62, %v4012_v52  ;;  %v684_v14 = vmul.f32 1.442695, %v530_v7  ;;  %v3158_v34 = vld [vmem:[%s3462_s28 + $0xf0] sm:$0xff]  ;;  %v4047_v42 = vpop.xlane.xlu0 %407  ;;  %v3167_v7 = vld [vmem:[%s3462_s28 + $0x158] sm:$0xff] }
  0xe1   : > { %v2855_v0 = vpop.eup %2854  ;;  %2874 = vpow2.f32 %v662_v36  ;;  %v534_v26 = vsub.f32 %v3158_v34, %v3978_v50  ;;  %v694_v38 = vmul.f32 1.442695, %v535_v47  ;;  %v3160_v50 = vld [vmem:[%s3462_s28 + $0x160] sm:$0xff]  ;;  %v542_v18 = vsub.f32 %v3166_v51, %v3999_v57  ;;  %v3171_v34 = vld [vmem:[%s3462_s28 + $0x178] sm:$0xff] }
  0xe2   : > { %1027 = vmatmul.mubr.f32.gmra.mrb[4].mxu1 %v2849_v11  ;;  %v2857_v44 = vpop.eup %2856  ;;  %2876 = vpow2.f32 %v680_v20  ;;  %v1660_v11 = vld [vmem:[%s4019_s5 + $0x10] sm:$0xff]  ;;  %v3159_v20 = vld [vmem:[%s3462_s28 + $0x118] sm:$0xff]  ;;  %v548_v19 = vsub.f32 %v3160_v50, %v4033_v60  ;;  %v714_v32 = vmul.f32 1.442695, %v545_v33  ;;  %v547_v12 = vsub.f32 %v3167_v7, %v4012_v52  ;;  %v1666_v33 = vld [vmem:[%s4019_s5 + $0x40] sm:$0xff] }
  0xe3   : > { %1031 = vmatprep.mubr.f32.mxu1 %v2853_v41  ;;  %v2859_v28 = vpop.eup %2858  ;;  %2878 = vpow2.f32 %v682_v22  ;;  %v539_v39 = vsub.f32 %v3159_v20, %v3988_v35  ;;  %v712_v22 = vmul.f32 1.442695, %v544_v21  ;;  %v1663_v41 = vld [vmem:[%s4019_s5 + $0x28] sm:$0xff]  ;;  %1790 = vrot.lane.b32.xlu1 %v1660_v11, %s3351_s6  ;;  %v4061_v30 = vpop.xlane.xlu1 %412  ;;  %v1669_v20 = vld [vmem:[%s4019_s5 + $0x58] sm:$0xff] }
  0xe4   : > { %v2861_v2 = vpop.eup %2860  ;;  %2880 = vpow2.f32 %v660_v58  ;;  %1241 = vmatprep.mubr.f32.mxu0 %v2859_v28  ;;  %v538_v28 = vsub.f32 %v3162_v16, %v3988_v35  ;;  %1796 = vrot.lane.b32.xlu0 %v1663_v41, %s3351_s6  ;;  %v3164_v35 = vld [vmem:[%s3462_s28 + $0x180] sm:$0xff]  ;;  %v4075_v21 = vpop.xlane.xlu0 %417  ;;  %v3175_v16 = vld [vmem:[%s3462_s28 + $0x198] sm:$0xff] }
  0xe5   : > { %v2863_v48 = vpop.eup %2862  ;;  %2882 = vpow2.f32 %v670_v59  ;;  %1242 = vmatmul.mubr.f32.vlgmr.msra.gmra.mrb[0].mxu0 %v2851_v25  ;;  %v3179_v51 = vld [vmem:[%s3462_s28 + $0x1b8] sm:$0xff] }
  0xe6   : > { %1032 = vmatmul.mubr.f32.gmra.mrb[6].mxu1 %v2855_v0  ;;  %v2865_v61 = vpop.eup %2864  ;;  %1246 = vmatprep.mubr.f32.mxu0 %v2857_v44  ;;  %2884 = vpow2.f32 %v688_v43  ;;  %v3161_v0 = vld [vmem:[%s3462_s28 + $0x168] sm:$0xff]  ;;  %v692_v43 = vmul.f32 1.442695, %v534_v26  ;;  %v551_v26 = vsub.f32 %v3171_v34, %v4033_v60  ;;  %v1673_v7 = vld [vmem:[%s4019_s5 + $0x78] sm:$0xff] }
  0xe7   : > { %1036 = vmatprep.mubr.f32.mxu1 %v2863_v48  ;;  %v2867_v31 = vpop.eup %2866  ;;  %2886 = vpow2.f32 %v690_v1  ;;  %v549_v59 = vsub.f32 %v3161_v0, %v4033_v60  ;;  %v1662_v1 = vld [vmem:[%s4019_s5 + $0x20] sm:$0xff]  ;;  %v720_v48 = vmul.f32 1.442695, %v548_v19  ;;  %v4089_v19 = vpop.xlane.xlu1 %422  ;;  %v1675_v34 = vld [vmem:[%s4019_s5 + $0x88] sm:$0xff] }
  0xe8   : > { %v2869_v17 = vpop.eup %2868  ;;  %2888 = vpow2.f32 %v668_v45  ;;  %v3163_v45 = vld [vmem:[%s3462_s28 + $0x138] sm:$0xff]  ;;  %1794 = vrot.lane.b32.xlu1 %v1662_v1, %s3351_s6  ;;  %1800 = vrot.lane.b32.xlu0 %v1665_v53, %s3351_s6 }
  0xe9   : > { %v2871_v46 = vpop.eup %2870  ;;  %2890 = vpow2.f32 %v678_v6  ;;  %1247 = vmatmul.mubr.f32.gmra.mrb[2].mxu0 %v2865_v61  ;;  %v543_v40 = vsub.f32 %v3163_v45, %v3999_v57  ;;  %v552_v6 = vsub.f32 %v3164_v35, %v4047_v42  ;;  %v722_v61 = vmul.f32 1.442695, %v549_v59  ;;  %v3168_v57 = vld [vmem:[%s3462_s28 + $0x1a0] sm:$0xff]  ;;  %v1668_v59 = vld [vmem:[%s4019_s5 + $0x50] sm:$0xff]  ;;  %v1671_v45 = vld [vmem:[%s4019_s5 + $0x68] sm:$0xff] }
  0xea   : > { %1037 = vmatmul.mubr.f32.gmra.mrb[8].mxu1 %v2861_v2  ;;  %v2873_v49 = vpop.eup %2872  ;;  %1251 = vmatprep.mubr.f32.mxu0 %v2867_v31  ;;  %2892 = vpow2.f32 %v696_v10  ;;  %v702_v2 = vmul.f32 1.442695, %v539_v39  ;;  %v3165_v10 = vld [vmem:[%s3462_s28 + $0x188] sm:$0xff] }
  0xeb   : > { %1041 = vmatprep.mubr.f32.mxu1 %v2871_v46  ;;  %v2875_v63 = vpop.eup %2874  ;;  %2894 = vpow2.f32 %v698_v3  ;;  %v553_v56 = vsub.f32 %v3165_v10, %v4047_v42  ;;  %v700_v3 = vmul.f32 1.442695, %v538_v28  ;;  %v710_v9 = vmul.f32 1.442695, %v543_v40 }
  0xec   : > { %v2877_v15 = vpop.eup %2876  ;;  %2896 = vpow2.f32 %v676_v4  ;;  %v728_v46 = vmul.f32 1.442695, %v552_v6  ;;  %1804 = vrot.lane.b32.xlu0 %v1667_v24, %s3351_s6  ;;  %v555_v28 = vsub.f32 %v3175_v16, %v4047_v42  ;;  %v4103_v6 = vpop.xlane.xlu0 %427  ;;  %v1677_v16 = vld [vmem:[%s4019_s5 + $0x98] sm:$0xff] }
  0xed   : > { %v2879_v36 = vpop.eup %2878  ;;  %2898 = vpow2.f32 %v686_v23  ;;  %1252 = vmatmul.mubr.f32.gmra.mrb[4].mxu0 %v2873_v49  ;;  %v556_v23 = vsub.f32 %v3168_v57, %v4061_v30  ;;  %v730_v49 = vmul.f32 1.442695, %v553_v56  ;;  %v1670_v56 = vld [vmem:[%s4019_s5 + $0x60] sm:$0xff] }
  0xee   : > { %1042 = vmatmul.mubr.f32.gmra.mrb[10].mxu1 %v2869_v17  ;;  %v2881_v25 = vpop.eup %2880  ;;  %1256 = vmatprep.mubr.f32.mxu0 %v2875_v63  ;;  %2900 = vpow2.f32 %v704_v54  ;;  %v1664_v17 = vld [vmem:[%s4019_s5 + $0x30] sm:$0xff]  ;;  %v3169_v54 = vld [vmem:[%s3462_s28 + $0x1a8] sm:$0xff]  ;;  %v708_v63 = vmul.f32 1.442695, %v542_v18  ;;  %v559_v18 = vsub.f32 %v3179_v51, %v4061_v30 }
  0xef   : > { %1046 = vmatprep.mubr.f32.mxu1 %v2879_v36  ;;  %v2883_v58 = vpop.eup %2882  ;;  %2902 = vpow2.f32 %v706_v29  ;;  %v557_v8 = vsub.f32 %v3169_v54, %v4061_v30  ;;  %1798 = vrot.lane.b32.xlu1 %v1664_v17, %s3351_s6  ;;  %v3170_v29 = vld [vmem:[%s3462_s28 + $0x150] sm:$0xff]  ;;  %v736_v36 = vmul.f32 1.442695, %v556_v23  ;;  %v4117_v23 = vpop.xlane.xlu1 %432  ;;  %v1679_v51 = vld [vmem:[%s4019_s5 + $0xa8] sm:$0xff] }
  0xf0   : > { %v2885_v44 = vpop.eup %2884  ;;  %2904 = vpow2.f32 %v684_v14  ;;  %v546_v62 = vsub.f32 %v3170_v29, %v4012_v52  ;;  %v718_v14 = vmul.f32 1.442695, %v547_v12  ;;  %v3172_v52 = vld [vmem:[%s3462_s28 + $0x1c0] sm:$0xff]  ;;  %1808 = vrot.lane.b32.xlu0 %v1669_v20, %s3351_s6  ;;  %v3183_v29 = vld [vmem:[%s3462_s28 + $0x1d8] sm:$0xff] }
  0xf1   : > { %v2887_v27 = vpop.eup %2886  ;;  %2906 = vpow2.f32 %v694_v38  ;;  %1257 = vmatmul.mubr.f32.gmra.mrb[6].mxu0 %v2881_v25  ;;  %v560_v38 = vsub.f32 %v3172_v52, %v4075_v21  ;;  %v738_v25 = vmul.f32 1.442695, %v557_v8  ;;  %v1672_v8 = vld [vmem:[%s4019_s5 + $0x70] sm:$0xff] }
  0xf2   : > { %1047 = vmatmul.mubr.f32.gmra.mrb[12].mxu1 %v2877_v15  ;;  %v2889_v5 = vpop.eup %2888  ;;  %1261 = vmatprep.mubr.f32.mxu0 %v2883_v58  ;;  %2908 = vpow2.f32 %v712_v22  ;;  %v3173_v22 = vld [vmem:[%s3462_s28 + $0x1c8] sm:$0xff]  ;;  %v716_v58 = vmul.f32 1.442695, %v546_v62  ;;  %v563_v62 = vsub.f32 %v3183_v29, %v4075_v21  ;;  %v1681_v29 = vld [vmem:[%s4019_s5 + $0xb8] sm:$0xff] }
  0xf3   : > { %1051 = vmatprep.mubr.f32.mxu1 %v2887_v27  ;;  %v2891_v13 = vpop.eup %2890  ;;  %2910 = vpow2.f32 %v714_v32  ;;  %v561_v50 = vsub.f32 %v3173_v22, %v4075_v21  ;;  %1802 = vrot.lane.b32.xlu1 %v1666_v33, %s3351_s6  ;;  %v3174_v32 = vld [vmem:[%s3462_s28 + $0x170] sm:$0xff]  ;;  %v744_v27 = vmul.f32 1.442695, %v560_v38  ;;  %v4131_v38 = vpop.xlane.xlu0 %437 }
  0xf4   : > { %v2893_v31 = vpop.eup %2892  ;;  %2912 = vpow2.f32 %v692_v43  ;;  %v550_v0 = vsub.f32 %v3174_v32, %v4033_v60  ;;  %v726_v43 = vmul.f32 1.442695, %v551_v26  ;;  %v3176_v60 = vld [vmem:[%s3462_s28 + $0x1e0] sm:$0xff]  ;;  %1812 = vrot.lane.b32.xlu0 %v1671_v45, %s3351_s6  ;;  %v3187_v32 = vld [vmem:[%s3462_s28 + $0x1f8] sm:$0xff] }
  0xf5   : > { %v2895_v4 = vpop.eup %2894  ;;  %2914 = vpow2.f32 %v702_v2  ;;  %1262 = vmatmul.mubr.f32.gmra.mrb[8].mxu0 %v2889_v5  ;;  %v564_v2 = vsub.f32 %v3176_v60, %v4089_v19  ;;  %v746_v5 = vmul.f32 1.442695, %v561_v50  ;;  %v1674_v50 = vld [vmem:[%s4019_s5 + $0x80] sm:$0xff] }
  0xf6   : > { %1052 = vmatmul.mubr.f32.gmra.mrb[14].mxu1 %v2885_v44  ;;  %v2897_v37 = vpop.eup %2896  ;;  %1266 = vmatprep.mubr.f32.mxu0 %v2891_v13  ;;  %2916 = vpow2.f32 %v720_v48  ;;  %v3177_v48 = vld [vmem:[%s3462_s28 + $0x1e8] sm:$0xff]  ;;  %v724_v13 = vmul.f32 1.442695, %v550_v0  ;;  %v567_v0 = vsub.f32 %v3187_v32, %v4089_v19 }
  0xf7   : > { %1056 = vmatprep.mubr.f32.mxu1 %v2895_v4  ;;  %v2899_v47 = vpop.eup %2898  ;;  %2918 = vpow2.f32 %v722_v61  ;;  %v565_v35 = vsub.f32 %v3177_v48, %v4089_v19  ;;  %1806 = vrot.lane.b32.xlu1 %v1668_v59, %s3351_s6  ;;  %v3178_v61 = vld [vmem:[%s3462_s28 + $0x190] sm:$0xff]  ;;  %v752_v4 = vmul.f32 1.442695, %v564_v2  ;;  %v4145_v2 = vpop.xlane.xlu1 %442  ;;  %v1683_v32 = vld [vmem:[%s4019_s5 + $0xc8] sm:$0xff] }
  0xf8   : > { %v2901_v55 = vpop.eup %2900  ;;  %2920 = vpow2.f32 %v700_v3  ;;  %v554_v10 = vsub.f32 %v3178_v61, %v4047_v42  ;;  %v734_v3 = vmul.f32 1.442695, %v555_v28  ;;  %v3180_v42 = vld [vmem:[%s3462_s28 + $0x200] sm:$0xff]  ;;  %1816 = vrot.lane.b32.xlu0 %v1673_v7, %s3351_s6  ;;  %v3191_v61 = vld [vmem:[%s3462_s28 + $0x218] sm:$0xff] }
  0xf9   : > { %v2903_v15 = vpop.eup %2902  ;;  %2922 = vpow2.f32 %v710_v9  ;;  %1267 = vmatmul.mubr.f32.gmra.mrb[10].mxu0 %v2897_v37  ;;  %v568_v9 = vsub.f32 %v3180_v42, %v4103_v6  ;;  %v754_v37 = vmul.f32 1.442695, %v565_v35  ;;  %v1676_v35 = vld [vmem:[%s4019_s5 + $0x90] sm:$0xff] }
  0xfa   : > { %1057 = vmatmul.mubr.f32.gmra.mrb[16].mxu1 %v2893_v31  ;;  %v2905_v11 = vpop.eup %2904  ;;  %1271 = vmatprep.mubr.f32.mxu0 %v2899_v47  ;;  %2924 = vpow2.f32 %v728_v46  ;;  %v3181_v46 = vld [vmem:[%s3462_s28 + $0x208] sm:$0xff]  ;;  %v732_v47 = vmul.f32 1.442695, %v554_v10  ;;  %v571_v10 = vsub.f32 %v3191_v61, %v4103_v6 }
  0xfb   : > { %1061 = vmatprep.mubr.f32.mxu1 %v2903_v15  ;;  %v2907_v39 = vpop.eup %2906  ;;  %2926 = vpow2.f32 %v730_v49  ;;  %v569_v57 = vsub.f32 %v3181_v46, %v4103_v6  ;;  %1810 = vrot.lane.b32.xlu1 %v1670_v56, %s3351_s6  ;;  %v3182_v49 = vld [vmem:[%s3462_s28 + $0x1b0] sm:$0xff]  ;;  %v760_v15 = vmul.f32 1.442695, %v568_v9  ;;  %v4159_v9 = vpop.xlane.xlu0 %447 }
  0xfc   : > { %v2909_v41 = vpop.eup %2908  ;;  %2928 = vpow2.f32 %v708_v63  ;;  %v558_v54 = vsub.f32 %v3182_v49, %v4061_v30  ;;  %v742_v63 = vmul.f32 1.442695, %v559_v18  ;;  %v3184_v30 = vld [vmem:[%s3462_s28 + $0x220] sm:$0xff]  ;;  %1820 = vrot.lane.b32.xlu0 %v1675_v34, %s3351_s6  ;;  %v3195_v49 = vld [vmem:[%s3462_s28 + $0x238] sm:$0xff] }
  0xfd   : > { %v2911_v44 = vpop.eup %2910  ;;  %2930 = vpow2.f32 %v718_v14  ;;  %1272 = vmatmul.mubr.f32.gmra.mrb[12].mxu0 %v2905_v11  ;;  %v572_v14 = vsub.f32 %v3184_v30, %v4117_v23  ;;  %v762_v11 = vmul.f32 1.442695, %v569_v57  ;;  %v1678_v57 = vld [vmem:[%s4019_s5 + $0xa0] sm:$0xff] }
  0xfe   : > { %1062 = vmatmul.mubr.f32.gmra.mrb[18].mxu1 %v2901_v55  ;;  %v2913_v1 = vpop.eup %2912  ;;  %1276 = vmatprep.mubr.f32.mxu0 %v2907_v39  ;;  %2932 = vpow2.f32 %v736_v36  ;;  %v3185_v36 = vld [vmem:[%s3462_s28 + $0x228] sm:$0xff]  ;;  %v740_v39 = vmul.f32 1.442695, %v558_v54  ;;  %v575_v54 = vsub.f32 %v3195_v49, %v4117_v23 }
  0xff   : > { %1066 = vmatprep.mubr.f32.mxu1 %v2911_v44  ;;  %v2915_v40 = vpop.eup %2914  ;;  %2934 = vpow2.f32 %v738_v25  ;;  %v573_v52 = vsub.f32 %v3185_v36, %v4117_v23  ;;  %1814 = vrot.lane.b32.xlu1 %v1672_v8, %s3351_s6  ;;  %v3186_v25 = vld [vmem:[%s3462_s28 + $0x1d0] sm:$0xff]  ;;  %v768_v44 = vmul.f32 1.442695, %v572_v14  ;;  %v4173_v14 = vpop.xlane.xlu1 %452 }
 0x100   : > { %v2917_v53 = vpop.eup %2916  ;;  %2936 = vpow2.f32 %v716_v58  ;;  %v562_v22 = vsub.f32 %v3186_v25, %v4075_v21  ;;  %v750_v58 = vmul.f32 1.442695, %v563_v62  ;;  %v3188_v21 = vld [vmem:[%s3462_s28 + $0x240] sm:$0xff]  ;;  %1824 = vrot.lane.b32.xlu0 %v1677_v16, %s3351_s6  ;;  %v3199_v25 = vld [vmem:[%s3462_s28 + $0x258] sm:$0xff] }
 0x101   : > { %v2919_v31 = vpop.eup %2918  ;;  %2938 = vpow2.f32 %v726_v43  ;;  %1277 = vmatmul.mubr.f32.gmra.mrb[14].mxu0 %v2913_v1  ;;  %v576_v43 = vsub.f32 %v3188_v21, %v4131_v38  ;;  %v770_v1 = vmul.f32 1.442695, %v573_v52  ;;  %v1680_v52 = vld [vmem:[%s4019_s5 + $0xb0] sm:$0xff] }
 0x102   : > { %1067 = vmatmul.mubr.f32.gmra.mrb[20].mxu1 %v2909_v41  ;;  %v2921_v17 = vpop.eup %2920  ;;  %1281 = vmatprep.mubr.f32.mxu0 %v2915_v40  ;;  %2940 = vpow2.f32 %v744_v27  ;;  %v3189_v27 = vld [vmem:[%s3462_s28 + $0x248] sm:$0xff]  ;;  %v748_v40 = vmul.f32 1.442695, %v562_v22  ;;  %v579_v22 = vsub.f32 %v3199_v25, %v4131_v38 }
 0x103   : > { %1071 = vmatprep.mubr.f32.mxu1 %v2919_v31  ;;  %v2923_v12 = vpop.eup %2922  ;;  %2942 = vpow2.f32 %v746_v5  ;;  %v577_v60 = vsub.f32 %v3189_v27, %v4131_v38  ;;  %1818 = vrot.lane.b32.xlu1 %v1674_v50, %s3351_s6  ;;  %v3190_v5 = vld [vmem:[%s3462_s28 + $0x1f0] sm:$0xff]  ;;  %v776_v31 = vmul.f32 1.442695, %v576_v43  ;;  %v4187_v43 = vpop.xlane.xlu0 %457 }
 0x104   : > { %v2925_v24 = vpop.eup %2924  ;;  %2944 = vpow2.f32 %v724_v13  ;;  %v566_v48 = vsub.f32 %v3190_v5, %v4089_v19  ;;  %v758_v13 = vmul.f32 1.442695, %v567_v0  ;;  %v3192_v19 = vld [vmem:[%s3462_s28 + $0x260] sm:$0xff]  ;;  %1828 = vrot.lane.b32.xlu0 %v1679_v51, %s3351_s6  ;;  %v3206_v51 = vld [vmem:[%s3462_s28 + $0x270] sm:$0xff] }
 0x105   : > { %v2927_v55 = vpop.eup %2926  ;;  %2946 = vpow2.f32 %v734_v3  ;;  %1282 = vmatmul.mubr.f32.gmra.mrb[16].mxu0 %v2921_v17  ;;  %v580_v3 = vsub.f32 %v3192_v19, %v4145_v2  ;;  %v778_v17 = vmul.f32 1.442695, %v577_v60 }
 0x106   : > { %1072 = vmatmul.mubr.f32.gmra.mrb[22].mxu1 %v2917_v53  ;;  %v2929_v33 = vpop.eup %2928  ;;  %1286 = vmatprep.mubr.f32.mxu0 %v2923_v12  ;;  %2948 = vpow2.f32 %v752_v4  ;;  %v3193_v4 = vld [vmem:[%s3462_s28 + $0x268] sm:$0xff]  ;;  %v756_v12 = vmul.f32 1.442695, %v566_v48 }
 0x107   : > { %1076 = vmatprep.mubr.f32.mxu1 %v2927_v55  ;;  %v2931_v26 = vpop.eup %2930  ;;  %2950 = vpow2.f32 %v754_v37  ;;  %v581_v42 = vsub.f32 %v3193_v4, %v4145_v2  ;;  %1822 = vrot.lane.b32.xlu1 %v1676_v35, %s3351_s6  ;;  %v3194_v37 = vld [vmem:[%s3462_s28 + $0x210] sm:$0xff]  ;;  %v784_v55 = vmul.f32 1.442695, %v580_v3 }
 0x108   : > { %v2933_v20 = vpop.eup %2932  ;;  %2952 = vpow2.f32 %v732_v47  ;;  %v570_v46 = vsub.f32 %v3194_v37, %v4103_v6  ;;  %v766_v47 = vmul.f32 1.442695, %v571_v10  ;;  %v3196_v6 = vld [vmem:[%s3462_s28 + $0x280] sm:$0xff]  ;;  %1832 = vrot.lane.b32.xlu0 %v1681_v29, %s3351_s6  ;;  %v3205_v10 = vld [vmem:[%s3462_s28 + $0x2c8] sm:$0xff] }
 0x109   : > { %v2935_v41 = vpop.eup %2934  ;;  %2954 = vpow2.f32 %v742_v63  ;;  %1287 = vmatmul.mubr.f32.gmra.mrb[18].mxu0 %v2929_v33  ;;  %v584_v63 = vsub.f32 %v3196_v6, %v4159_v9  ;;  %v786_v33 = vmul.f32 1.442695, %v581_v42  ;;  %v3207_v42 = vld [vmem:[%s3462_s28 + $0x298] sm:$0xff]  ;;  %v3210_v6 = vld [vmem:[%s3462_s28 + $0x290] sm:$0xff] }
 0x10a   : > { %1077 = vmatmul.mubr.f32.gmra.mrb[24].mxu1 %v2925_v24  ;;  %v2937_v59 = vpop.eup %2936  ;;  %1291 = vmatprep.mubr.f32.mxu0 %v2931_v26  ;;  %2956 = vpow2.f32 %v760_v15  ;;  %v3197_v15 = vld [vmem:[%s3462_s28 + $0x288] sm:$0xff]  ;;  %v764_v26 = vmul.f32 1.442695, %v570_v46  ;;  %v3208_v46 = vld [vmem:[%s3462_s28 + $0x2e0] sm:$0xff] }
 0x10b   : > { %1081 = vmatprep.mubr.f32.mxu1 %v2935_v41  ;;  %v2939_v28 = vpop.eup %2938  ;;  %2958 = vpow2.f32 %v762_v11  ;;  %v585_v30 = vsub.f32 %v3197_v15, %v4159_v9  ;;  %1826 = vrot.lane.b32.xlu1 %v1678_v57, %s3351_s6  ;;  %v3198_v11 = vld [vmem:[%s3462_s28 + $0x230] sm:$0xff]  ;;  %v792_v41 = vmul.f32 1.442695, %v584_v63  ;;  %v586_v63 = vsub.f32 %v3210_v6, %v4159_v9  ;;  %v3225_v6 = vld [vmem:[%s3462_s28 + $0x368] sm:$0xff] }
 0x10c   : > { %v2941_v45 = vpop.eup %2940  ;;  %2960 = vpow2.f32 %v740_v39  ;;  %v574_v36 = vsub.f32 %v3198_v11, %v4117_v23  ;;  %v774_v39 = vmul.f32 1.442695, %v575_v54  ;;  %v3200_v23 = vld [vmem:[%s3462_s28 + $0x2a0] sm:$0xff]  ;;  %1836 = vrot.lane.b32.xlu0 %v1683_v32, %s3351_s6  ;;  %v4209_v54 = vpop.xlane.xlu0 %467  ;;  %v3215_v32 = vld [vmem:[%s3462_s28 + $0x2d8] sm:$0xff] }
 0x10d   : > { %v2943_v53 = vpop.eup %2942  ;;  %2962 = vpow2.f32 %v750_v58  ;;  %1292 = vmatmul.mubr.f32.gmra.mrb[20].mxu0 %v2937_v59  ;;  %v588_v58 = vsub.f32 %v3200_v23, %v4173_v14  ;;  %v794_v59 = vmul.f32 1.442695, %v585_v30 }
 0x10e   : > { %1082 = vmatmul.mubr.f32.gmra.mrb[26].mxu1 %v2933_v20  ;;  %v2945_v56 = vpop.eup %2944  ;;  %1296 = vmatprep.mubr.f32.mxu0 %v2939_v28  ;;  %2964 = vpow2.f32 %v768_v44  ;;  %v3201_v44 = vld [vmem:[%s3462_s28 + $0x2a8] sm:$0xff]  ;;  %v772_v28 = vmul.f32 1.442695, %v574_v36 }
 0x10f   : > { %1086 = vmatprep.mubr.f32.mxu1 %v2943_v53  ;;  %v2947_v18 = vpop.eup %2946  ;;  %2966 = vpow2.f32 %v770_v1  ;;  %v589_v21 = vsub.f32 %v3201_v44, %v4173_v14  ;;  %1830 = vrot.lane.b32.xlu1 %v1680_v52, %s3351_s6  ;;  %v3202_v1 = vld [vmem:[%s3462_s28 + $0x250] sm:$0xff]  ;;  %v800_v35 = vmul.f32 1.442695, %v588_v58  ;;  %v3204_v53 = vld [vmem:[%s3462_s28 + $0x2c0] sm:$0xff]  ;;  %v3213_v52 = vld [vmem:[%s3462_s28 + $0x308] sm:$0xff] }
 0x110   : > { %v2949_v7 = vpop.eup %2948  ;;  %2968 = vpow2.f32 %v748_v40  ;;  %v578_v27 = vsub.f32 %v3202_v1, %v4131_v38  ;;  %v3203_v40 = vld [vmem:[%s3462_s28 + $0x278] sm:$0xff]  ;;  %v592_v38 = vsub.f32 %v3204_v53, %v4187_v43  ;;  %v3217_v1 = vld [vmem:[%s3462_s28 + $0x328] sm:$0xff] }
 0x111   : > { %v2951_v24 = vpop.eup %2950  ;;  %2970 = vpow2.f32 %v758_v13  ;;  %1297 = vmatmul.mubr.f32.gmra.mrb[22].mxu0 %v2945_v56  ;;  %v583_v5 = vsub.f32 %v3203_v40, %v4145_v2  ;;  %v802_v61 = vmul.f32 1.442695, %v589_v21  ;;  %v593_v56 = vsub.f32 %v3205_v10, %v4187_v43  ;;  %v3216_v21 = vld [vmem:[%s3462_s28 + $0x320] sm:$0xff] }
 0x112   : > { %1087 = vmatmul.mubr.f32.gmra.mrb[28].mxu1 %v2941_v45  ;;  %v2953_v8 = vpop.eup %2952  ;;  %1301 = vmatprep.mubr.f32.mxu0 %v2947_v18  ;;  %2972 = vpow2.f32 %v776_v31  ;;  %v782_v45 = vmul.f32 1.442695, %v579_v22  ;;  %v4199_v31 = vpop.xlane.xlu1 %462  ;;  %v780_v3 = vmul.f32 1.442695, %v578_v27  ;;  %v582_v18 = vsub.f32 %v3206_v51, %v4145_v2  ;;  %v3221_v51 = vld [vmem:[%s3462_s28 + $0x348] sm:$0xff] }
 0x113   : > { %1091 = vmatprep.mubr.f32.mxu1 %v2951_v24  ;;  %v2955_v62 = vpop.eup %2954  ;;  %2974 = vpow2.f32 %v778_v17  ;;  %v790_v4 = vmul.f32 1.442695, %v583_v5  ;;  %v808_v37 = vmul.f32 1.442695, %v592_v38  ;;  %v596_v57 = vsub.f32 %v3208_v46, %v4199_v31  ;;  %v3218_v5 = vld [vmem:[%s3462_s28 + $0x2d0] sm:$0xff]  ;;  %v3219_v38 = vld [vmem:[%s3462_s28 + $0x2f8] sm:$0xff] }
 0x114   : > { %v2957_v34 = vpop.eup %2956  ;;  %2976 = vpow2.f32 %v756_v12  ;;  %v810_v2 = vmul.f32 1.442695, %v593_v56  ;;  %v796_v22 = vmul.f32 1.442695, %v586_v63  ;;  %v3220_v56 = vld [vmem:[%s3462_s28 + $0x340] sm:$0xff] }
 0x115   : > { %v2959_v20 = vpop.eup %2958  ;;  %2978 = vpow2.f32 %v766_v47  ;;  %1302 = vmatmul.mubr.f32.gmra.mrb[24].mxu0 %v2953_v8  ;;  %v3209_v47 = vld [vmem:[%s3462_s28 + $0x2e8] sm:$0xff] }
 0x116   : > { %1092 = vmatmul.mubr.f32.gmra.mrb[30].mxu1 %v2949_v7  ;;  %v2961_v50 = vpop.eup %2960  ;;  %1306 = vmatprep.mubr.f32.mxu0 %v2955_v62  ;;  %2980 = vpow2.f32 %v784_v55  ;;  %v587_v7 = vsub.f32 %v3207_v42, %v4159_v9  ;;  %v597_v49 = vsub.f32 %v3209_v47, %v4199_v31  ;;  %v788_v55 = vmul.f32 1.442695, %v582_v18 }
 0x117   : > { %1096 = vmatprep.mubr.f32.mxu1 %v2959_v20  ;;  %v2963_v0 = vpop.eup %2962  ;;  %2982 = vpow2.f32 %v786_v33  ;;  %v3211_v33 = vld [vmem:[%s3462_s28 + $0x2b8] sm:$0xff]  ;;  %v601_v20 = vsub.f32 %v3213_v52, %v4209_v54 }
 0x118   : > { %v2965_v16 = vpop.eup %2964  ;;  %2984 = vpow2.f32 %v764_v26  ;;  %v798_v62 = vmul.f32 1.442695, %v587_v7  ;;  %v591_v15 = vsub.f32 %v3211_v33, %v4173_v14  ;;  %v3212_v26 = vld [vmem:[%s3462_s28 + $0x300] sm:$0xff]  ;;  %v818_v9 = vmul.f32 1.442695, %v597_v49  ;;  %v3222_v7 = vld [vmem:[%s3462_s28 + $0x2f0] sm:$0xff] }
 0x119   : > { %v2967_v60 = vpop.eup %2966  ;;  %2986 = vpow2.f32 %v774_v39  ;;  %1307 = vmatmul.mubr.f32.gmra.mrb[26].mxu0 %v2961_v50  ;;  %v600_v11 = vsub.f32 %v3212_v26, %v4209_v54  ;;  %v4219_v39 = vpop.xlane.xlu1 %472  ;;  %v3214_v50 = vld [vmem:[%s3462_s28 + $0x2b0] sm:$0xff]  ;;  %v3224_v49 = vld [vmem:[%s3462_s28 + $0x360] sm:$0xff] }
 0x11a   : > { %1097 = vmatmul.mubr.f32.gmra.mrb[32].mxu1 %v2957_v34  ;;  %v2969_v48 = vpop.eup %2968  ;;  %1311 = vmatprep.mubr.f32.mxu0 %v2963_v0  ;;  %2988 = vpow2.f32 %v792_v41  ;;  %v816_v34 = vmul.f32 1.442695, %v596_v57  ;;  %v590_v41 = vsub.f32 %v3214_v50, %v4173_v14  ;;  %v806_v58 = vmul.f32 1.442695, %v591_v15  ;;  %v3223_v57 = vld [vmem:[%s3462_s28 + $0x318] sm:$0xff]  ;;  %v3226_v15 = vld [vmem:[%s3462_s28 + $0x310] sm:$0xff] }
 0x11b   : > { %1101 = vmatprep.mubr.f32.mxu1 %v2967_v60  ;;  %v2971_v13 = vpop.eup %2970  ;;  %2990 = vpow2.f32 %v794_v59  ;;  %v595_v0 = vsub.f32 %v3215_v32, %v4187_v43  ;;  %v824_v44 = vmul.f32 1.442695, %v600_v11  ;;  %v826_v14 = vmul.f32 1.442695, %v601_v20  ;;  %v4229_v60 = vpop.xlane.xlu0 %477  ;;  %v3227_v11 = vld [vmem:[%s3462_s28 + $0x338] sm:$0xff]  ;;  %v3228_v20 = vld [vmem:[%s3462_s28 + $0x380] sm:$0xff] }
 0x11c   : > { %v2973_v19 = vpop.eup %2972  ;;  %2992 = vpow2.f32 %v772_v28  ;;  %v605_v27 = vsub.f32 %v3217_v1, %v4219_v39  ;;  %v804_v40 = vmul.f32 1.442695, %v590_v41  ;;  %v609_v18 = vsub.f32 %v3221_v51, %v4229_v60  ;;  %v3229_v50 = vld [vmem:[%s3462_s28 + $0x388] sm:$0xff]  ;;  %v1685_v51 = vld [vmem:[%s4019_s5 + $0xd8] sm:$0xff] }
 0x11d   : > { %v2975_v17 = vpop.eup %2974  ;;  %2994 = vpow2.f32 %v782_v45  ;;  %1312 = vmatmul.mubr.f32.gmra.mrb[28].mxu0 %v2969_v48  ;;  %v594_v48 = vsub.f32 %v3218_v5, %v4187_v43  ;;  %v814_v53 = vmul.f32 1.442695, %v595_v0  ;;  %v3230_v0 = vld [vmem:[%s3462_s28 + $0x330] sm:$0xff]  ;;  %v3233_v5 = vld [vmem:[%s3462_s28 + $0x3a8] sm:$0xff]  ;;  %1840 = vrot.lane.b32.xlu0 %v1685_v51, %s3351_s6 }
 0x11e   : > { %1102 = vmatmul.mubr.f32.gmra.mrb[34].mxu1 %v2965_v16  ;;  %v2977_v12 = vpop.eup %2976  ;;  %1316 = vmatprep.mubr.f32.mxu0 %v2971_v13  ;;  %2996 = vpow2.f32 %v800_v35  ;;  %v604_v16 = vsub.f32 %v3216_v21, %v4219_v39  ;;  %v599_v13 = vsub.f32 %v3219_v38, %v4199_v31  ;;  %v834_v43 = vmul.f32 1.442695, %v605_v27  ;;  %v3232_v27 = vld [vmem:[%s3462_s28 + $0x3a0] sm:$0xff] }
 0x11f   : > { %1106 = vmatprep.mubr.f32.mxu1 %v2975_v17  ;;  %v2979_v24 = vpop.eup %2978  ;;  %2998 = vpow2.f32 %v802_v61  ;;  %v4239_v17 = vpop.xlane.xlu1 %482  ;;  %v812_v42 = vmul.f32 1.442695, %v594_v48 }
 0x120   : > { %v2981_v8 = vpop.eup %2980  ;;  %3000 = vpow2.f32 %v780_v3  ;;  %v832_v10 = vmul.f32 1.442695, %v604_v16  ;;  %v822_v46 = vmul.f32 1.442695, %v599_v13  ;;  %v613_v63 = vsub.f32 %v3225_v6, %v4239_v17  ;;  %v3231_v16 = vld [vmem:[%s3462_s28 + $0x358] sm:$0xff]  ;;  %v3234_v13 = vld [vmem:[%s3462_s28 + $0x350] sm:$0xff] }
 0x121   : > { %v2983_v29 = vpop.eup %2982  ;;  %3002 = vpow2.f32 %v790_v4  ;;  %1317 = vmatmul.mubr.f32.gmra.mrb[30].mxu0 %v2977_v12  ;;  %v598_v12 = vsub.f32 %v3222_v7, %v4199_v31  ;;  %v842_v31 = vmul.f32 1.442695, %v609_v18 }
 0x122   : > { %1107 = vmatmul.mubr.f32.gmra.mrb[36].mxu1 %v2973_v19  ;;  %v2985_v30 = vpop.eup %2984  ;;  %1321 = vmatprep.mubr.f32.mxu0 %v2979_v24  ;;  %3004 = vpow2.f32 %v808_v37  ;;  %v608_v19 = vsub.f32 %v3220_v56, %v4229_v60  ;;  %v603_v24 = vsub.f32 %v3223_v57, %v4209_v54 }
 0x123   : > { %1111 = vmatprep.mubr.f32.mxu1 %v2983_v29  ;;  %v2987_v36 = vpop.eup %2986  ;;  %3006 = vpow2.f32 %v810_v2  ;;  %v4249_v29 = vpop.xlane.xlu0 %487  ;;  %v820_v33 = vmul.f32 1.442695, %v598_v12 }
 0x124   : > { %v2989_v25 = vpop.eup %2988  ;;  %3008 = vpow2.f32 %v788_v55  ;;  %v840_v47 = vmul.f32 1.442695, %v608_v19  ;;  %v830_v26 = vmul.f32 1.442695, %v603_v24  ;;  %v617_v41 = vsub.f32 %v3229_v50, %v4249_v29  ;;  %v3235_v19 = vld [vmem:[%s3462_s28 + $0x378] sm:$0xff] }
 0x125   : > { %v2991_v23 = vpop.eup %2990  ;;  %3010 = vpow2.f32 %v798_v62  ;;  %1322 = vmatmul.mubr.f32.gmra.mrb[32].mxu0 %v2985_v30  ;;  %v602_v30 = vsub.f32 %v3226_v15, %v4209_v54  ;;  %v850_v54 = vmul.f32 1.442695, %v613_v63  ;;  %v1684_v63 = vld [vmem:[%s4019_s5 + $0xd0] sm:$0xff]  ;;  %v3243_v50 = vld [vmem:[%s3462_s28 + $0x3b8] sm:$0xff] }
 0x126   : > { %1112 = vmatmul.mubr.f32.gmra.mrb[38].mxu1 %v2981_v8  ;;  %v2993_v59 = vpop.eup %2992  ;;  %1326 = vmatprep.mubr.f32.mxu0 %v2987_v36  ;;  %3012 = vpow2.f32 %v816_v34  ;;  %v612_v8 = vsub.f32 %v3224_v49, %v4239_v17  ;;  %v607_v36 = vsub.f32 %v3227_v11, %v4219_v39  ;;  %v3241_v11 = vld [vmem:[%s3462_s28 + $0x3e8] sm:$0xff] }
 0x127   : > { %1116 = vmatprep.mubr.f32.mxu1 %v2991_v23  ;;  %v2995_v28 = vpop.eup %2994  ;;  %3014 = vpow2.f32 %v818_v9  ;;  %v4259_v23 = vpop.xlane.xlu1 %492  ;;  %v828_v32 = vmul.f32 1.442695, %v602_v30  ;;  %v3240_v30 = vld [vmem:[%s3462_s28 + $0x3e0] sm:$0xff] }
 0x128   : > { %v2997_v45 = vpop.eup %2996  ;;  %3016 = vpow2.f32 %v796_v22  ;;  %v848_v52 = vmul.f32 1.442695, %v612_v8  ;;  %v838_v21 = vmul.f32 1.442695, %v607_v36  ;;  %v621_v48 = vsub.f32 %v3233_v5, %v4259_v23  ;;  %v1688_v5 = vld [vmem:[%s4019_s5 + $0xf0] sm:$0xff] }
 0x129   : > { %v2999_v35 = vpop.eup %2998  ;;  %3018 = vpow2.f32 %v806_v58  ;;  %1327 = vmatmul.mubr.f32.gmra.mrb[34].mxu0 %v2993_v59  ;;  %v606_v59 = vsub.f32 %v3230_v0, %v4219_v39  ;;  %v858_v39 = vmul.f32 1.442695, %v617_v41  ;;  %v623_v41 = vsub.f32 %v3243_v50, %v4259_v23 }
 0x12a   : > { %1117 = vmatmul.mubr.f32.gmra.mrb[40].mxu1 %v2989_v25  ;;  %v3001_v61 = vpop.eup %3000  ;;  %1331 = vmatprep.mubr.f32.mxu0 %v2995_v28  ;;  %3020 = vpow2.f32 %v824_v44  ;;  %v616_v25 = vsub.f32 %v3228_v20, %v4249_v29  ;;  %v611_v28 = vsub.f32 %v3231_v16, %v4229_v60  ;;  %v866_v12 = vmul.f32 1.442695, %v621_v48  ;;  %v3242_v20 = vld [vmem:[%s3462_s28 + $0x390] sm:$0xff] }
 0x12b   : > { %1121 = vmatprep.mubr.f32.mxu1 %v2999_v35  ;;  %v3003_v3 = vpop.eup %3002  ;;  %3022 = vpow2.f32 %v826_v14  ;;  %v4269_v35 = vpop.xlane.xlu0 %497  ;;  %v836_v38 = vmul.f32 1.442695, %v606_v59 }
 0x12c   : > { %v3005_v4 = vpop.eup %3004  ;;  %3024 = vpow2.f32 %v804_v40  ;;  %v856_v1 = vmul.f32 1.442695, %v616_v25  ;;  %v846_v56 = vmul.f32 1.442695, %v611_v28  ;;  %v4281_v57 = vpop.xlane.xlu1 %502  ;;  %v618_v25 = vsub.f32 %v3242_v20, %v4249_v29  ;;  %v3244_v28 = vld [vmem:[%s3462_s28 + $0x3b0] sm:$0xff] }
 0x12d   : > { %v3007_v37 = vpop.eup %3006  ;;  %3026 = vpow2.f32 %v814_v53  ;;  %1332 = vmatmul.mubr.f32.gmra.mrb[36].mxu0 %v3001_v61  ;;  %v610_v61 = vsub.f32 %v3234_v13, %v4229_v60  ;;  %v629_v36 = vsub.f32 %v3241_v11, %v4281_v57  ;;  %v3246_v13 = vld [vmem:[%s3462_s28 + $0x3d0] sm:$0xff] }
 0x12e   : > { %1122 = vmatmul.mubr.f32.gmra.mrb[42].mxu1 %v2997_v45  ;;  %v3009_v2 = vpop.eup %3008  ;;  %1336 = vmatprep.mubr.f32.mxu0 %v3003_v3  ;;  %3028 = vpow2.f32 %v832_v10  ;;  %v620_v45 = vsub.f32 %v3232_v27, %v4259_v23  ;;  %v615_v3 = vsub.f32 %v3235_v19, %v4239_v17  ;;  %v860_v16 = vmul.f32 1.442695, %v618_v25  ;;  %v3247_v19 = vld [vmem:[%s3462_s28 + $0x3f8] sm:$0xff] }
 0x12f   : > { %1126 = vmatprep.mubr.f32.mxu1 %v3007_v37  ;;  %v3011_v55 = vpop.eup %3010  ;;  %3030 = vpow2.f32 %v834_v43  ;;  %v1682_v43 = vld [vmem:[%s4019_s5 + $0xc0] sm:$0xff]  ;;  %v3237_v37 = vld [vmem:[%s3462_s28 + $0x3c8] sm:$0xff]  ;;  %v870_v27 = vmul.f32 1.442695, %v623_v41 }
 0x130   : > { %v3013_v62 = vpop.eup %3012  ;;  %3032 = vpow2.f32 %v812_v42  ;;  %v3236_v42 = vld [vmem:[%s3462_s28 + $0x3c0] sm:$0xff]  ;;  %1834 = vrot.lane.b32.xlu1 %v1682_v43, %s3351_s6 }
 0x131   : > { %v3015_v34 = vpop.eup %3014  ;;  %3034 = vpow2.f32 %v822_v46  ;;  %1337 = vmatmul.mubr.f32.gmra.mrb[38].mxu0 %v3009_v2  ;;  %v624_v60 = vsub.f32 %v3236_v42, %v4269_v35  ;;  %v625_v46 = vsub.f32 %v3237_v37, %v4269_v35  ;;  %v844_v2 = vmul.f32 1.442695, %v610_v61  ;;  %v3248_v42 = vld [vmem:[%s3462_s28 + $0x3f0] sm:$0xff] }
 0x132   : > { %1127 = vmatmul.mubr.f32.gmra.mrb[44].mxu1 %v3005_v4  ;;  %v3017_v9 = vpop.eup %3016  ;;  %1341 = vmatprep.mubr.f32.mxu0 %v3011_v55  ;;  %3036 = vpow2.f32 %v840_v47  ;;  %v864_v4 = vmul.f32 1.442695, %v620_v45  ;;  %v3238_v47 = vld [vmem:[%s3462_s28 + $0x370] sm:$0xff]  ;;  %v854_v55 = vmul.f32 1.442695, %v615_v3  ;;  %v3245_v45 = vld [vmem:[%s3462_s28 + $0x3d8] sm:$0xff]  ;;  %v626_v61 = vsub.f32 %v3246_v13, %v4269_v35 }
 0x133   : > { %1131 = vmatprep.mubr.f32.mxu1 %v3015_v34  ;;  %v3019_v22 = vpop.eup %3018  ;;  %3038 = vpow2.f32 %v842_v31  ;;  %v614_v49 = vsub.f32 %v3238_v47, %v4239_v17  ;;  %v3239_v31 = vld [vmem:[%s3462_s28 + $0x398] sm:$0xff]  ;;  %v872_v15 = vmul.f32 1.442695, %v624_v60  ;;  %v628_v17 = vsub.f32 %v3240_v30, %v4281_v57  ;;  %s3354_s28 = smov 127  }
 0x134   : > { %v3021_v58 = vpop.eup %3020  ;;  %3040 = vpow2.f32 %v820_v33  ;;  %v619_v6 = vsub.f32 %v3239_v31, %v4249_v29  ;;  %1838 = vrot.lane.b32.xlu1 %v1684_v63, %s3351_s6  ;;  %v882_v29 = vmul.f32 1.442695, %v629_v36  ;;  %v631_v3 = vsub.f32 %v3247_v19, %v4281_v57 }
 0x135   : > { %v3023_v44 = vpop.eup %3022  ;;  %3042 = vpow2.f32 %v830_v26  ;;  %1342 = vmatmul.mubr.f32.gmra.mrb[40].mxu0 %v3017_v9  ;;  %v874_v26 = vmul.f32 1.442695, %v625_v46  ;;  %v880_v59 = vmul.f32 1.442695, %v628_v17 }
 0x136   : > { %1132 = vmatmul.mubr.f32.gmra.mrb[46].mxu1 %v3013_v62  ;;  %v3025_v14 = vpop.eup %3024  ;;  %1346 = vmatprep.mubr.f32.mxu0 %v3019_v22  ;;  %3044 = vpow2.f32 %v848_v52  ;;  %v1687_v62 = vld [vmem:[%s4019_s5 + $0xe8] sm:$0xff]  ;;  %v852_v52 = vmul.f32 1.442695, %v614_v49 }
 0x137   : > { %1136 = vmatprep.mubr.f32.mxu1 %v3023_v44  ;;  %v3027_v40 = vpop.eup %3026  ;;  %3046 = vpow2.f32 %v850_v54  ;;  %1844 = vrot.lane.b32.xlu0 %v1687_v62, %s3351_s6  ;;  %v862_v54 = vmul.f32 1.442695, %v619_v6 }
 0x138   : > { %v3029_v53 = vpop.eup %3028  ;;  %3048 = vpow2.f32 %v828_v32  ;;  %v1689_v32 = vld [vmem:[%s4019_s5 + $0xf8] sm:$0xff] }
 0x139   : > { %v3031_v10 = vpop.eup %3030  ;;  %3050 = vpow2.f32 %v838_v21  ;;  %1347 = vmatmul.mubr.f32.gmra.mrb[42].mxu0 %v3025_v14  ;;  %v622_v14 = vsub.f32 %v3244_v28, %v4259_v23 }
 0x13a   : > { %1137 = vmatmul.mubr.f32.gmra.mrb[48].mxu1 %v3021_v58  ;;  %v3033_v18 = vpop.eup %3032  ;;  %1351 = vmatprep.mubr.f32.mxu0 %v3027_v40  ;;  %3052 = vpow2.f32 %v856_v1  ;;  %v1686_v58 = vld [vmem:[%s4019_s5 + $0xe0] sm:$0xff]  ;;  %v627_v40 = vsub.f32 %v3245_v45, %v4269_v35  ;;  %v630_v35 = vsub.f32 %v3248_v42, %v4281_v57 }
 0x13b   : > { %1141 = vmatprep.mubr.f32.mxu1 %v3031_v10  ;;  %v3035_v7 = vpop.eup %3034  ;;  %3054 = vpow2.f32 %v858_v39  ;;  %1842 = vrot.lane.b32.xlu1 %v1686_v58, %s3351_s6  ;;  %v3352_v39 = vmov 3  }
 0x13c   : > { %v3037_v24 = vpop.eup %3036  ;;  %3056 = vpow2.f32 %v836_v38  ;;  %1848 = vrot.lane.b32.xlu0 %v1689_v32, %s3351_s6  ;;  %v868_v38 = vmul.f32 1.442695, %v622_v14  ;;  %2835 = vset.pattern.permute.xlu1 %v3352_v39 }
 0x13d   : > { %v3039_v8 = vpop.eup %3038  ;;  %3058 = vpow2.f32 %v846_v56  ;;  %1352 = vmatmul.mubr.f32.gmra.mrb[44].mxu0 %v3033_v18  ;;  %2834 = vset.pattern.permute.xlu0 %v3352_v39  ;;  %v878_v56 = vmul.f32 1.442695, %v627_v40 }
 0x13e   : > { %1142 = vmatmul.mubr.f32.gmra.mrb[50].mxu1 %v3029_v53  ;;  %v3041_v33 = vpop.eup %3040  ;;  %1356 = vmatprep.mubr.f32.mxu0 %v3035_v7  ;;  %3060 = vpow2.f32 %v864_v4  ;;  %v876_v4 = vmul.f32 1.442695, %v626_v61  ;;  %v886_v7 = vmul.f32 1.442695, %v631_v3 }
 0x13f   : > { %1146 = vmatprep.mubr.f32.mxu1 %v3039_v8  ;;  %v3043_v34 = vpop.eup %3042  ;;  %3062 = vpow2.f32 %v866_v12  ;;  %1846 = vrot.lane.b32.xlu1 %v1688_v5, %s3351_s6 }
 0x140   : > { %v3045_v9 = vpop.eup %3044  ;;  %3064 = vpow2.f32 %v844_v2 }
 0x141   : > { %v3047_v22 = vpop.eup %3046  ;;  %3066 = vpow2.f32 %v854_v55  ;;  %1357 = vmatmul.mubr.f32.gmra.mrb[46].mxu0 %v3041_v33 }
 0x142   : > { %1147 = vmatmul.mubr.f32.gmra.mrb[52].mxu1 %v3037_v24  ;;  %v3049_v0 = vpop.eup %3048  ;;  %1361 = vmatprep.mubr.f32.mxu0 %v3043_v34  ;;  %3068 = vpow2.f32 %v872_v15  ;;  %v884_v24 = vmul.f32 1.442695, %v630_v35 }
 0x143   : > { %1151 = vmatprep.mubr.f32.mxu1 %v3047_v22  ;;  %v3051_v44 = vpop.eup %3050  ;;  %3070 = vpow2.f32 %v874_v26 }
 0x144   : > { %v3053_v21 = vpop.eup %3052  ;;  %3072 = vpow2.f32 %v852_v52 }
 0x145   : > { %v3055_v1 = vpop.eup %3054  ;;  %3074 = vpow2.f32 %v862_v54  ;;  %1362 = vmatmul.mubr.f32.gmra.mrb[48].mxu0 %v3049_v0 }
 0x146   : > { %1152 = vmatmul.mubr.f32.gmra.mrb[54].mxu1 %v3045_v9  ;;  %v3057_v48 = vpop.eup %3056  ;;  %1366 = vmatprep.mubr.f32.mxu0 %v3051_v44  ;;  %3076 = vpow2.f32 %v880_v59 }
 0x147   : > { %1156 = vmatprep.mubr.f32.mxu1 %v3055_v1  ;;  %v3059_v53 = vpop.eup %3058  ;;  %3078 = vpow2.f32 %v882_v29 }
 0x148   : > { %v3061_v23 = vpop.eup %3060  ;;  %3080 = vpow2.f32 %v860_v16 }
 0x149   : > { %v3063_v10 = vpop.eup %3062  ;;  %3082 = vpow2.f32 %v870_v27  ;;  %1367 = vmatmul.mubr.f32.gmra.mrb[50].mxu0 %v3057_v48 }
 0x14a   : > { %1157 = vmatmul.mubr.f32.gmra.mrb[56].mxu1 %v3053_v21  ;;  %v3065_v43 = vpop.eup %3064  ;;  %1371 = vmatprep.mubr.f32.mxu0 %v3059_v53  ;;  %3084 = vpow2.f32 %v868_v38 }
 0x14b   : > { %1161 = vmatprep.mubr.f32.mxu1 %v3063_v10  ;;  %v3067_v51 = vpop.eup %3066  ;;  %3086 = vpow2.f32 %v878_v56 }
 0x14c   : > { %v3069_v18 = vpop.eup %3068  ;;  %3088 = vpow2.f32 %v876_v4 }
 0x14d   : > { %v3071_v60 = vpop.eup %3070  ;;  %1372 = vmatmul.mubr.f32.gmra.mrb[52].mxu0 %v3065_v43  ;;  %3090 = vpow2.f32 %v886_v7 }
 0x14e   : > { %1162 = vmatmul.mubr.f32.gmra.mrb[58].mxu1 %v3061_v23  ;;  %v3073_v12 = vpop.eup %3072  ;;  %1376 = vmatprep.mubr.f32.mxu0 %v3067_v51  ;;  %3092 = vpow2.f32 %v884_v24 }
 0x14f   : > { %1166 = vmatprep.mubr.f32.mxu1 %v3071_v60  ;;  %v3075_v37 = vpop.eup %3074 }
 0x150   : > { %v3077_v46 = vpop.eup %3076 }
 0x151   : > { %v3079_v2 = vpop.eup %3078  ;;  %1377 = vmatmul.mubr.f32.gmra.mrb[54].mxu0 %v3073_v12 }
 0x152   : > { %1167 = vmatmul.mubr.f32.gmra.mrb[60].mxu1 %v3069_v18  ;;  %v3081_v47 = vpop.eup %3080  ;;  %1381 = vmatprep.mubr.f32.mxu0 %v3075_v37 }
 0x153   : > { %1171 = vmatprep.mubr.f32.mxu1 %v3079_v2  ;;  %v3083_v57 = vpop.eup %3082 }
 0x154   : > { %v3085_v49 = vpop.eup %3084 }
 0x155   : > { %1382 = vmatmul.mubr.f32.gmra.mrb[56].mxu0 %v3081_v47  ;;  %v3087_v8 = vpop.eup %3086 }
 0x156   : > { %1172 = vmatmul.mubr.f32.gmra.mrb[62].mxu1 %v3077_v46  ;;  %1386 = vmatprep.mubr.f32.mxu0 %v3083_v57  ;;  %v3089_v55 = vpop.eup %3088 }
 0x157   : > { %v3091_v31 = vpop.eup %3090 }
 0x158   : > { %v3093_v6 = vpop.eup %3092 }
 0x159   : > { %1387 = vmatmul.mubr.f32.gmra.mrb[58].mxu0 %v3085_v49 }
 0x15a   : > { %1391 = vmatprep.mubr.f32.mxu0 %v3087_v8 }
 0x15d   : > { %1392 = vmatmul.mubr.f32.gmra.mrb[60].mxu0 %v3089_v55 }
 0x15e   : > { %1396 = vmatprep.mubr.f32.mxu0 %v3091_v31 }
 0x161   : > { %1397 = vmatmul.mubr.f32.gmra.mrb[62].mxu0 %v3093_v6 }
 0x1ad   : > { %v1018_v63 = vpop.f32.mrb[0].mxu1 }
 0x1ae   : > { %v1020_v62 = vpop.f32.mrb[1].mxu1 }
 0x1b1   : > { %v1023_v33 = vpop.f32.mrb[2].mxu1 }
 0x1b2   : > { %v1025_v15 = vpop.f32.mrb[3].mxu1 }
 0x1b5   : > { %v1028_v30 = vpop.f32.mrb[4].mxu1 }
 0x1b6   : > { %v1030_v17 = vpop.f32.mrb[5].mxu1 }
 0x1b8   : > { %v1243_v26 = vpop.f32.mrb[0].mxu0 }
 0x1b9   : > { %v1033_v34 = vpop.f32.mrb[6].mxu1  ;;  %v4317_v36 = vadd.f32 %v1243_v26, %v1018_v63  ;;  %v1245_v9 = vpop.f32.mrb[1].mxu0 }
 0x1ba   : > { %v1035_v11 = vpop.f32.mrb[7].mxu1 }
 0x1bb   : > { %3094 = vrcp.f32 %v4317_v36 }
 0x1bc   : > { %v1248_v20 = vpop.f32.mrb[2].mxu0 }
 0x1bd   : > { %v1038_v52 = vpop.f32.mrb[8].mxu1  ;;  %v4320_v22 = vadd.f32 %v1248_v20, %v1023_v33  ;;  %v1250_v54 = vpop.f32.mrb[3].mxu0 }
 0x1be   : > { %v1040_v25 = vpop.f32.mrb[9].mxu1 }
 0x1bf   : > { %3096 = vrcp.f32 %v4320_v22  ;;  %v4353_v25 = vpop.permute.xlu0 %1788 }
 0x1c0   : > { %v1253_v41 = vpop.f32.mrb[4].mxu0 }
 0x1c1   : > { %v1043_v50 = vpop.f32.mrb[10].mxu1  ;;  %v4323_v32 = vadd.f32 %v1253_v41, %v1028_v30  ;;  %v1255_v0 = vpop.f32.mrb[5].mxu0 }
 0x1c2   : > { %v1045_v58 = vpop.f32.mrb[11].mxu1 }
 0x1c3   : > { %3098 = vrcp.f32 %v4323_v32 }
 0x1c4   : > { %v1258_v44 = vpop.f32.mrb[6].mxu0 }
 0x1c5   : > { %v1048_v59 = vpop.f32.mrb[12].mxu1  ;;  %v3095_v21 = vpop.eup %3094  ;;  %v4326_v16 = vadd.f32 %v1258_v44, %v1033_v34 }
 0x1c6   : > { %v1050_v29 = vpop.f32.mrb[13].mxu1  ;;  %v1260_v28 = vpop.f32.mrb[7].mxu0  ;;  %1468 = vperm.xlu0 %2834, %v3095_v21  }
 0x1c7   : > { %3100 = vrcp.f32 %v4326_v16  ;;  %v4358_v44 = vpop.permute.xlu1 %1786 }
 0x1c8   : > { %v1263_v1 = vpop.f32.mrb[8].mxu0 }
 0x1c9   : > { %v1053_v14 = vpop.f32.mrb[14].mxu1  ;;  %v3097_v45 = vpop.eup %3096  ;;  %v4329_v40 = vadd.f32 %v1263_v1, %v1038_v52 }
 0x1ca   : > { %v1055_v27 = vpop.f32.mrb[15].mxu1  ;;  %v1265_v39 = vpop.f32.mrb[9].mxu0  ;;  %1473 = vperm.xlu1 %2835, %v3097_v45  }
 0x1cb   : > { %3102 = vrcp.f32 %v4329_v40  ;;  %v4362_v27 = vpop.permute.xlu0 %1792 }
 0x1cc   : > { %v1268_v48 = vpop.f32.mrb[10].mxu0 }
 0x1cd   : > { %v1058_v5 = vpop.f32.mrb[16].mxu1  ;;  %v3099_v23 = vpop.eup %3098  ;;  %v4332_v38 = vadd.f32 %v1268_v48, %v1043_v50 }
 0x1ce   : > { %v1060_v53 = vpop.f32.mrb[17].mxu1  ;;  %v1270_v13 = vpop.f32.mrb[11].mxu0  ;;  %1478 = vperm.xlu1 %2835, %v3099_v23  }
 0x1cf   : > { %3104 = vrcp.f32 %v4332_v38  ;;  %v4367_v13 = vpop.permute.xlu1 %1790 }
 0x1d0   : > { %v1273_v10 = vpop.f32.mrb[12].mxu0 }
 0x1d1   : > { %v1063_v61 = vpop.f32.mrb[18].mxu1  ;;  %v3101_v19 = vpop.eup %3100  ;;  %v4335_v3 = vadd.f32 %v1273_v10, %v1048_v59 }
 0x1d2   : > { %v1065_v56 = vpop.f32.mrb[19].mxu1  ;;  %v1275_v43 = vpop.f32.mrb[13].mxu0  ;;  %1483 = vperm.xlu1 %2835, %v3101_v19  }
 0x1d3   : > { %3106 = vrcp.f32 %v4335_v3  ;;  %v4370_v10 = vpop.permute.xlu0 %1796 }
 0x1d4   : > { %v1278_v18 = vpop.f32.mrb[14].mxu0 }
 0x1d5   : > { %v1068_v51 = vpop.f32.mrb[20].mxu1  ;;  %v3103_v42 = vpop.eup %3102  ;;  %v4338_v35 = vadd.f32 %v1278_v18, %v1053_v14 }
 0x1d6   : > { %v1070_v4 = vpop.f32.mrb[21].mxu1  ;;  %v1280_v60 = vpop.f32.mrb[15].mxu0  ;;  %1488 = vperm.xlu1 %2835, %v3103_v42  }
 0x1d7   : > { %3108 = vrcp.f32 %v4338_v35  ;;  %v4375_v42 = vpop.permute.xlu1 %1794 }
 0x1d8   : > { %v1283_v12 = vpop.f32.mrb[16].mxu0 }
 0x1d9   : > { %v1073_v7 = vpop.f32.mrb[22].mxu1  ;;  %v3105_v46 = vpop.eup %3104  ;;  %v4341_v24 = vadd.f32 %v1283_v12, %v1058_v5 }
 0x1da   : > { %v1075_v37 = vpop.f32.mrb[23].mxu1  ;;  %v1285_v2 = vpop.f32.mrb[17].mxu0  ;;  %1493 = vperm.xlu1 %2835, %v3105_v46  }
 0x1db   : > { %3110 = vrcp.f32 %v4341_v24  ;;  %v4379_v2 = vpop.permute.xlu0 %1800 }
 0x1dc   : > { %v1288_v57 = vpop.f32.mrb[18].mxu0 }
 0x1dd   : > { %v1078_v47 = vpop.f32.mrb[24].mxu1  ;;  %v3107_v8 = vpop.eup %3106  ;;  %v4344_v55 = vadd.f32 %v1288_v57, %v1063_v61 }
 0x1de   : > { %v1080_v49 = vpop.f32.mrb[25].mxu1  ;;  %v1290_v31 = vpop.f32.mrb[19].mxu0  ;;  %1498 = vperm.xlu1 %2835, %v3107_v8  }
 0x1df   : > { %3112 = vrcp.f32 %v4344_v55 }
 0x1e0   : > { %v1293_v63 = vpop.f32.mrb[20].mxu0 }
 0x1e1   : > { %v1083_v6 = vpop.f32.mrb[26].mxu1  ;;  %v3109_v33 = vpop.eup %3108  ;;  %v4347_v15 = vadd.f32 %v1293_v63, %v1068_v51 }
 0x1e2   : > { %v1085_v62 = vpop.f32.mrb[27].mxu1  ;;  %v1295_v30 = vpop.f32.mrb[21].mxu0  ;;  %1503 = vperm.xlu1 %2835, %v3109_v33  }
 0x1e3   : > { %3114 = vrcp.f32 %v4347_v15  ;;  %v4384_v63 = vpop.permute.xlu1 %1798  ;;  %v4387_v33 = vpop.permute.xlu0 %1804 }
 0x1e4   : > { %v1298_v34 = vpop.f32.mrb[22].mxu0 }
 0x1e5   : > { %v1088_v17 = vpop.f32.mrb[28].mxu1  ;;  %v3111_v11 = vpop.eup %3110  ;;  %v4350_v9 = vadd.f32 %v1298_v34, %v1073_v7 }
 0x1e6   : > { %v1090_v26 = vpop.f32.mrb[29].mxu1  ;;  %v1300_v52 = vpop.f32.mrb[23].mxu0  ;;  %1508 = vperm.xlu1 %2835, %v3111_v11  }
 0x1e7   : > { %3116 = vrcp.f32 %v4350_v9  ;;  %v4392_v52 = vpop.permute.xlu1 %1802 }
 0x1e8   : > { %v1303_v54 = vpop.f32.mrb[24].mxu0 }
 0x1e9   : > { %v1093_v20 = vpop.f32.mrb[30].mxu1  ;;  %v3113_v41 = vpop.eup %3112  ;;  %v4355_v58 = vadd.f32 %v1303_v54, %v1078_v47 }
 0x1ea   : > { %v1095_v50 = vpop.f32.mrb[31].mxu1  ;;  %v1305_v0 = vpop.f32.mrb[25].mxu0  ;;  %1513 = vperm.xlu0 %2834, %v3113_v41  }
 0x1eb   : > { %3118 = vrcp.f32 %v4355_v58 }
 0x1ec   : > { %v1308_v29 = vpop.f32.mrb[26].mxu0 }
 0x1ed   : > { %v1098_v59 = vpop.f32.mrb[32].mxu1  ;;  %v3115_v28 = vpop.eup %3114  ;;  %v4360_v14 = vadd.f32 %v1308_v29, %v1083_v6 }
 0x1ee   : > { %v1100_v21 = vpop.f32.mrb[33].mxu1  ;;  %v1310_v1 = vpop.f32.mrb[27].mxu0  ;;  %1518 = vperm.xlu1 %2835, %v3115_v28  }
 0x1ef   : > { %3120 = vrcp.f32 %v4360_v14  ;;  %v4396_v29 = vpop.permute.xlu0 %1808 }
 0x1f0   : > { %v1313_v39 = vpop.f32.mrb[28].mxu0 }
 0x1f1   : > { %v1103_v45 = vpop.f32.mrb[34].mxu1  ;;  %v3117_v48 = vpop.eup %3116  ;;  %v4365_v53 = vadd.f32 %v1313_v39, %v1088_v17 }
 0x1f2   : > { %v1105_v5 = vpop.f32.mrb[35].mxu1  ;;  %v1315_v23 = vpop.f32.mrb[29].mxu0  ;;  %1523 = vperm.xlu0 %2834, %v3117_v48  }
 0x1f3   : > { %3122 = vrcp.f32 %v4365_v53  ;;  %v4401_v48 = vpop.permute.xlu1 %1806  ;;  %v4404_v23 = vpop.permute.xlu0 %1812 }
 0x1f4   : > { %v1318_v56 = vpop.f32.mrb[30].mxu0 }
 0x1f5   : > { %v1108_v61 = vpop.f32.mrb[36].mxu1  ;;  %v3119_v43 = vpop.eup %3118  ;;  %v4372_v51 = vadd.f32 %v1318_v56, %v1093_v20 }
 0x1f6   : > { %v1110_v19 = vpop.f32.mrb[37].mxu1  ;;  %v1320_v18 = vpop.f32.mrb[31].mxu0  ;;  %1528 = vperm.xlu1 %2835, %v3119_v43  }
 0x1f7   : > { %3124 = vrcp.f32 %v4372_v51 }
 0x1f8   : > { %v1323_v60 = vpop.f32.mrb[32].mxu0 }
 0x1f9   : > { %v1113_v4 = vpop.f32.mrb[38].mxu1  ;;  %v3121_v12 = vpop.eup %3120  ;;  %v4377_v37 = vadd.f32 %v1323_v60, %v1098_v59 }
 0x1fa   : > { %v1115_v7 = vpop.f32.mrb[39].mxu1  ;;  %v1325_v46 = vpop.f32.mrb[33].mxu0  ;;  %1533 = vperm.xlu0 %2834, %v3121_v12  }
 0x1fb   : > { %3126 = vrcp.f32 %v4377_v37  ;;  %v4409_v60 = vpop.permute.xlu1 %1810 }
 0x1fc   : > { %v1328_v57 = vpop.f32.mrb[34].mxu0 }
 0x1fd   : > { %v1118_v47 = vpop.f32.mrb[40].mxu1  ;;  %v3123_v8 = vpop.eup %3122  ;;  %v4382_v31 = vadd.f32 %v1328_v57, %v1103_v45 }
 0x1fe   : > { %v1120_v49 = vpop.f32.mrb[41].mxu1  ;;  %v1330_v6 = vpop.f32.mrb[35].mxu0  ;;  %1538 = vperm.xlu1 %2835, %v3123_v8  }
 0x1ff   : > { %3128 = vrcp.f32 %v4382_v31  ;;  %v4413_v8 = vpop.permute.xlu0 %1816 }
 0x200   : > { %v1333_v30 = vpop.f32.mrb[36].mxu0 }
 0x201   : > { %v1123_v62 = vpop.f32.mrb[42].mxu1  ;;  %v3125_v34 = vpop.eup %3124  ;;  %v4389_v26 = vadd.f32 %v1333_v30, %v1108_v61 }
 0x202   : > { %v1125_v17 = vpop.f32.mrb[43].mxu1  ;;  %v1335_v11 = vpop.f32.mrb[37].mxu0  ;;  %1543 = vperm.xlu0 %2834, %v3125_v34  }
 0x203   : > { %3130 = vrcp.f32 %v4389_v26 }
 0x204   : > { %v1338_v54 = vpop.f32.mrb[38].mxu0 }
 0x205   : > { %v1128_v20 = vpop.f32.mrb[44].mxu1  ;;  %v3127_v41 = vpop.eup %3126  ;;  %v4394_v0 = vadd.f32 %v1338_v54, %v1113_v4 }
 0x206   : > { %v1130_v50 = vpop.f32.mrb[45].mxu1  ;;  %v1340_v59 = vpop.f32.mrb[39].mxu0  ;;  %1548 = vperm.xlu1 %2835, %v3127_v41  }
 0x207   : > { %3132 = vrcp.f32 %v4394_v0  ;;  %v4418_v54 = vpop.permute.xlu1 %1814 }
 0x208   : > { %v1343_v28 = vpop.f32.mrb[40].mxu0 }
 0x209   : > { %v1133_v21 = vpop.f32.mrb[46].mxu1  ;;  %v3129_v45 = vpop.eup %3128  ;;  %v4399_v39 = vadd.f32 %v1343_v28, %v1118_v47 }
 0x20a   : > { %v1135_v1 = vpop.f32.mrb[47].mxu1  ;;  %v1345_v5 = vpop.f32.mrb[41].mxu0  ;;  %1553 = vperm.xlu0 %2834, %v3129_v45  }
 0x20b   : > { %3134 = vrcp.f32 %v4399_v39 }
 0x20c   : > { %v1348_v56 = vpop.f32.mrb[42].mxu0 }
 0x20d   : > { %v1138_v61 = vpop.f32.mrb[48].mxu1  ;;  %v3131_v43 = vpop.eup %3130  ;;  %v4406_v18 = vadd.f32 %v1348_v56, %v1123_v62 }
 0x20e   : > { %v1140_v19 = vpop.f32.mrb[49].mxu1  ;;  %v1350_v4 = vpop.f32.mrb[43].mxu0  ;;  %1558 = vperm.xlu1 %2835, %v3131_v43  }
 0x20f   : > { %3136 = vrcp.f32 %v4406_v18 }
 0x210   : > { %v1353_v12 = vpop.f32.mrb[44].mxu0 }
 0x211   : > { %v1143_v7 = vpop.f32.mrb[50].mxu1  ;;  %v3133_v47 = vpop.eup %3132  ;;  %v4411_v57 = vadd.f32 %v1353_v12, %v1128_v20 }
 0x212   : > { %v1145_v46 = vpop.f32.mrb[51].mxu1  ;;  %v1355_v49 = vpop.f32.mrb[45].mxu0  ;;  %1563 = vperm.xlu0 %2834, %v3133_v47  }
 0x213   : > { %3138 = vrcp.f32 %v4411_v57  ;;  %v4421_v20 = vpop.permute.xlu0 %1820 }
 0x214   : > { %v1358_v62 = vpop.f32.mrb[46].mxu0 }
 0x215   : > { %v1148_v6 = vpop.f32.mrb[52].mxu1  ;;  %v3135_v17 = vpop.eup %3134  ;;  %v4416_v34 = vadd.f32 %v1358_v62, %v1133_v21 }
 0x216   : > { %v1150_v30 = vpop.f32.mrb[53].mxu1  ;;  %v1360_v11 = vpop.f32.mrb[47].mxu0  ;;  %1568 = vperm.xlu1 %2835, %v3135_v17  }
 0x217   : > { %3140 = vrcp.f32 %v4416_v34  ;;  %v4426_v21 = vpop.permute.xlu1 %1818  ;;  %v4430_v46 = vpop.permute.xlu0 %1824 }
 0x218   : > { %v1363_v41 = vpop.f32.mrb[48].mxu0 }
 0x219   : > { %v1153_v50 = vpop.f32.mrb[54].mxu1  ;;  %v3137_v28 = vpop.eup %3136  ;;  %v4423_v1 = vadd.f32 %v1363_v41, %v1138_v61 }
 0x21a   : > { %v1155_v59 = vpop.f32.mrb[55].mxu1  ;;  %v1365_v45 = vpop.f32.mrb[49].mxu0  ;;  %1573 = vperm.xlu0 %2834, %v3137_v28  }
 0x21b   : > { %3142 = vrcp.f32 %v4423_v1  ;;  %v4435_v17 = vpop.permute.xlu1 %1822 }
 0x21c   : > { %v1368_v56 = vpop.f32.mrb[50].mxu0 }
 0x21d   : > { %v1158_v5 = vpop.f32.mrb[56].mxu1  ;;  %v3139_v43 = vpop.eup %3138  ;;  %v4428_v4 = vadd.f32 %v1368_v56, %v1143_v7 }
 0x21e   : > { %v1160_v19 = vpop.f32.mrb[57].mxu1  ;;  %v1370_v12 = vpop.f32.mrb[51].mxu0  ;;  %1578 = vperm.xlu1 %2835, %v3139_v43  }
 0x21f   : > { %5207 = vst [vmem:[#allocation5_spill] sm:$0xff] %v4428_v4  ;;  %3144 = vrcp.f32 %v4428_v4  ;;  %v4438_v7 = vpop.permute.xlu0 %1828 }
 0x220   : > { %v1373_v47 = vpop.f32.mrb[52].mxu0 }
 0x221   : > { %v1163_v61 = vpop.f32.mrb[58].mxu1  ;;  %v3141_v62 = vpop.eup %3140  ;;  %v4433_v30 = vadd.f32 %v1373_v47, %v1148_v6 }
 0x222   : > { %v1165_v49 = vpop.f32.mrb[59].mxu1  ;;  %v1375_v11 = vpop.f32.mrb[53].mxu0  ;;  %1583 = vperm.xlu0 %2834, %v3141_v62  }
 0x223   : > { %5208 = vst [vmem:[#allocation7_spill] sm:$0xff] %v4433_v30  ;;  %3146 = vrcp.f32 %v4433_v30  ;;  %v4443_v6 = vpop.permute.xlu1 %1826  ;;  %v4447_v30 = vpop.permute.xlu0 %1832 }
 0x224   : > { %v1378_v59 = vpop.f32.mrb[54].mxu0 }
 0x225   : > { %v1168_v41 = vpop.f32.mrb[60].mxu1  ;;  %v3143_v45 = vpop.eup %3142  ;;  %v4440_v56 = vadd.f32 %v1378_v59, %v1153_v50 }
 0x226   : > { %v1170_v28 = vpop.f32.mrb[61].mxu1  ;;  %v1380_v19 = vpop.f32.mrb[55].mxu0  ;;  %1588 = vperm.xlu1 %2835, %v3143_v45  }
 0x227   : > { %5209 = vst [vmem:[#allocation8_spill] sm:$0xff] %v4440_v56  ;;  %3148 = vrcp.f32 %v4440_v56  ;;  %v4450_v28 = vpop.permute.xlu1 %1830 }
 0x228   : > { %v1383_v12 = vpop.f32.mrb[56].mxu0 }
 0x229   : > { %v1173_v43 = vpop.f32.mrb[62].mxu1  ;;  %v3145_v49 = vpop.eup %3144  ;;  %v4445_v62 = vadd.f32 %v1383_v12, %v1158_v5 }
 0x22a   : > { %v1175_v47 = vpop.f32.mrb[63].mxu1  ;;  %v1385_v11 = vpop.f32.mrb[57].mxu0  ;;  %1593 = vperm.xlu0 %2834, %v3145_v49  }
 0x22b   : > { %5210 = vst [vmem:[#allocation9_spill] sm:$0xff] %v4445_v62  ;;  %3150 = vrcp.f32 %v4445_v62  ;;  %v4455_v47 = vpop.permute.xlu0 %1836  ;;  %v4459_v49 = vpop.permute.xlu1 %1834 }
 0x22c   : > { %v1388_v50 = vpop.f32.mrb[58].mxu0 }
 0x22d   : > { %v3147_v59 = vpop.eup %3146  ;;  %v4452_v45 = vadd.f32 %v1388_v50, %v1163_v61  ;;  %v1390_v19 = vpop.f32.mrb[59].mxu0 }
 0x22e   : > { %1598 = vperm.xlu1 %2835, %v3147_v59  }
 0x22f   : > { %5211 = vst [vmem:[#allocation6_spill] sm:$0xff] %v4452_v45  ;;  %3152 = vrcp.f32 %v4452_v45  ;;  %v4462_v61 = vpop.permute.xlu0 %1840 }
 0x230   : > { %v1393_v5 = vpop.f32.mrb[60].mxu0  ;;  %5213 = vst [vmem:[#allocation10_spill] sm:$0xff] %v4462_v61  ;;  %v3353_v61 = vmov 0  }
 0x231   : > { %v3149_v12 = vpop.eup %3148  ;;  %v4457_v11 = vadd.f32 %v1393_v5, %v1168_v41  ;;  %v1395_v56 = vpop.f32.mrb[61].mxu0 }
 0x232   : > { %1603 = vperm.xlu0 %2834, %v3149_v12   ;;  %v4467_v41 = vpop.permute.xlu1 %1838 }
 0x233   : > { %5212 = vst [vmem:[#allocation12_spill] sm:$0xff] %v4457_v11  ;;  %3154 = vrcp.f32 %v4457_v11  ;;  %v4469_v56 = vpop.permute.xlu0 %1844 }
 0x234   : > { %v1398_v62 = vpop.f32.mrb[62].mxu0  ;;  %5215 = vst [vmem:[#allocation13_spill] sm:$0xff] %v4469_v56 }
 0x235   : > { %v3151_v4 = vpop.eup %3150  ;;  %v4464_v50 = vadd.f32 %v1398_v62, %v1173_v43  ;;  %v1400_v59 = vpop.f32.mrb[63].mxu0 }
 0x236   : > { %1608 = vperm.xlu1 %2835, %v3151_v4   ;;  %v4471_v12 = vpop.permute.xlu1 %1842  ;;  %v3249_v59 = vld [vmem:[%s4019_s5] sm:$0xff] }
 0x237   : > { %5214 = vst [vmem:[#allocation11_spill] sm:$0xff] %v4464_v50  ;;  %3156 = vrcp.f32 %v4464_v50  ;;  %5216 = vst [vmem:[#allocation14_spill] sm:$0xff] %v4471_v12  ;;  %v4473_v45 = vpop.permute.xlu0 %1848 }
 0x238   : > { %5217 = vst [vmem:[#allocation15_spill] sm:$0xff] %v4473_v45  ;;  %v3250_v45 = vld [vmem:[%s4019_s5 + $0x8] sm:$0xff] }
 0x239   : > { %v3153_v19 = vpop.eup %3152 }
 0x23a   : > { %1613 = vperm.xlu0 %2834, %v3153_v19   ;;  %v4475_v43 = vpop.permute.xlu1 %1846 }
 0x23b   : > { %5218 = vst [vmem:[#allocation16_spill] sm:$0xff] %v4475_v43 }
 0x23d   : > { %v3155_v5 = vpop.eup %3154 }
 0x23e   : > { %1618 = vperm.xlu1 %2835, %v3155_v5  }
 0x241   : > { %v3157_v11 = vpop.eup %3156 }
 0x242   : > { %1623 = vperm.xlu0 %2834, %v3157_v11   ;;  %2836 = vset.pattern.permute.xlu1 %v3353_v61 }
 0x245   : > { %v1469_v4 = vpop.permute.xlu0 %1468 }
 0x246   : > { %v4478_v62 = vmul.f32 %v1469_v4, %v4317_v36  ;;  %2837 = vset.pattern.permute.xlu0 %v3353_v61  ;;  %v3252_v61 = vld [vmem:[%s4019_s5 + $0x18] sm:$0xff] }
 0x248   : > { %v1690_v19 = vsub.f32 %v4478_v62, %v3249_v59 }
 0x249   : > { %v1474_v50 = vpop.permute.xlu1 %1473 }
 0x24a   : > { %v1722_v56 = vand.u32 2147483647, %v1690_v19  ;;  %v4483_v5 = vmul.f32 %v1474_v50, %v4320_v22  ;;  %v3251_v22 = vld [vmem:[%s4019_s5 + $0x10] sm:$0xff] }
 0x24c   : > { %v4486_v12 = vmul.f32 %v4358_v44, %v1722_v56  ;;  %v1691_v11 = vsub.f32 %v4483_v5, %v3250_v45 }
 0x24d   : > { %v1479_v43 = vpop.permute.xlu1 %1478 }
 0x24e   : > { %v1723_v36 = vand.u32 2147483647, %v1691_v11  ;;  %v4491_v4 = vmul.f32 %v1479_v43, %v4323_v32  ;;  %1946 = vrot.lane.b32.xlu1 %v4486_v12, %s3354_s28 }
 0x250   : > { %v1692_v44 = vsub.f32 %v4491_v4, %v3251_v22  ;;  %v4498_v50 = vmul.f32 %v4353_v25, %v1723_v36 }
 0x251   : > { %v1484_v45 = vpop.permute.xlu1 %1483 }
 0x252   : > { %v1724_v56 = vand.u32 2147483647, %v1692_v44  ;;  %v4501_v59 = vmul.f32 %v1484_v45, %v4326_v16  ;;  %1948 = vrot.lane.b32.xlu0 %v4498_v50, %s3354_s28  ;;  %2074 = vrot.lane.b32.xlu1 %v4486_v12, %s3355_s7  ;;  %v3253_v16 = vld [vmem:[%s4019_s5 + $0x20] sm:$0xff] }
 0x254   : > { %v4508_v32 = vmul.f32 %v4367_v13, %v1724_v56  ;;  %v1693_v25 = vsub.f32 %v4501_v59, %v3252_v61  ;;  %v3254_v56 = vld [vmem:[%s4019_s5 + $0x28] sm:$0xff] }
 0x255   : > { %v1489_v43 = vpop.permute.xlu1 %1488 }
 0x256   : > { %v1725_v19 = vand.u32 2147483647, %v1693_v25  ;;  %v4513_v11 = vmul.f32 %v1489_v43, %v4329_v40  ;;  %2076 = vrot.lane.b32.xlu0 %v4498_v50, %s3355_s7  ;;  %1950 = vrot.lane.b32.xlu1 %v4508_v32, %s3354_s28 }
 0x258   : > { %v1694_v36 = vsub.f32 %v4513_v11, %v3253_v16  ;;  %v4522_v13 = vmul.f32 %v4362_v27, %v1725_v19 }
 0x259   : > { %v1494_v22 = vpop.permute.xlu1 %1493 }
 0x25a   : > { %v1726_v44 = vand.u32 2147483647, %v1694_v36  ;;  %v4525_v45 = vmul.f32 %v1494_v22, %v4332_v38  ;;  %1952 = vrot.lane.b32.xlu0 %v4522_v13, %s3354_s28  ;;  %2078 = vrot.lane.b32.xlu1 %v4508_v32, %s3355_s7 }
 0x25c   : > { %v4532_v40 = vmul.f32 %v4375_v42, %v1726_v44  ;;  %v1695_v61 = vsub.f32 %v4525_v45, %v3254_v56  ;;  %v3255_v42 = vld [vmem:[%s4019_s5 + $0x30] sm:$0xff] }
 0x25d   : > { %v1499_v27 = vpop.permute.xlu1 %1498 }
 0x25e   : > { %v1727_v25 = vand.u32 2147483647, %v1695_v61  ;;  %v4537_v43 = vmul.f32 %v1499_v27, %v4335_v3  ;;  %2080 = vrot.lane.b32.xlu0 %v4522_v13, %s3355_s7  ;;  %1954 = vrot.lane.b32.xlu1 %v4532_v40, %s3354_s28 }
 0x260   : > { %v4544_v38 = vmul.f32 %v4370_v10, %v1727_v25  ;;  %v1696_v19 = vsub.f32 %v4537_v43, %v3255_v42  ;;  %v3256_v10 = vld [vmem:[%s4019_s5 + $0x38] sm:$0xff] }
 0x261   : > { %v1504_v16 = vpop.permute.xlu1 %1503 }
 0x262   : > { %v1728_v36 = vand.u32 2147483647, %v1696_v19  ;;  %v4549_v22 = vmul.f32 %v1504_v16, %v4338_v35  ;;  %1956 = vrot.lane.b32.xlu0 %v4544_v38, %s3354_s28  ;;  %2082 = vrot.lane.b32.xlu1 %v4532_v40, %s3355_s7 }
 0x264   : > { %v4556_v3 = vmul.f32 %v4384_v63, %v1728_v36  ;;  %v1697_v44 = vsub.f32 %v4549_v22, %v3256_v10  ;;  %v3257_v63 = vld [vmem:[%s4019_s5 + $0x40] sm:$0xff] }
 0x265   : > { %v1509_v56 = vpop.permute.xlu1 %1508 }
 0x266   : > { %v1729_v61 = vand.u32 2147483647, %v1697_v44  ;;  %v4561_v27 = vmul.f32 %v1509_v56, %v4341_v24  ;;  %2084 = vrot.lane.b32.xlu0 %v4544_v38, %s3355_s7  ;;  %1958 = vrot.lane.b32.xlu1 %v4556_v3, %s3354_s28 }
 0x268   : > { %v4568_v35 = vmul.f32 %v4379_v2, %v1729_v61  ;;  %v1698_v25 = vsub.f32 %v4561_v27, %v3257_v63  ;;  %v3258_v2 = vld [vmem:[%s4019_s5 + $0x48] sm:$0xff] }
 0x269   : > { %v1514_v42 = vpop.permute.xlu0 %1513 }
 0x26a   : > { %v1730_v19 = vand.u32 2147483647, %v1698_v25  ;;  %v4573_v16 = vmul.f32 %v1514_v42, %v4344_v55  ;;  %1960 = vrot.lane.b32.xlu0 %v4568_v35, %s3354_s28  ;;  %2086 = vrot.lane.b32.xlu1 %v4556_v3, %s3355_s7 }
 0x26c   : > { %v4580_v24 = vmul.f32 %v4392_v52, %v1730_v19  ;;  %v1699_v36 = vsub.f32 %v4573_v16, %v3258_v2  ;;  %v3259_v52 = vld [vmem:[%s4019_s5 + $0x50] sm:$0xff] }
 0x26d   : > { %v1519_v10 = vpop.permute.xlu1 %1518 }
 0x26e   : > { %v1731_v44 = vand.u32 2147483647, %v1699_v36  ;;  %v4585_v56 = vmul.f32 %v1519_v10, %v4347_v15  ;;  %2088 = vrot.lane.b32.xlu0 %v4568_v35, %s3355_s7  ;;  %1962 = vrot.lane.b32.xlu1 %v4580_v24, %s3354_s28 }
 0x270   : > { %v4592_v55 = vmul.f32 %v4387_v33, %v1731_v44  ;;  %v1700_v61 = vsub.f32 %v4585_v56, %v3259_v52  ;;  %v3260_v33 = vld [vmem:[%s4019_s5 + $0x58] sm:$0xff] }
 0x271   : > { %v1524_v63 = vpop.permute.xlu0 %1523 }
 0x272   : > { %v1732_v25 = vand.u32 2147483647, %v1700_v61  ;;  %v4597_v42 = vmul.f32 %v1524_v63, %v4350_v9  ;;  %2090 = vrot.lane.b32.xlu1 %v4580_v24, %s3355_s7  ;;  %1964 = vrot.lane.b32.xlu0 %v4592_v55, %s3354_s28 }
 0x274   : > { %v4604_v15 = vmul.f32 %v4401_v48, %v1732_v25  ;;  %v1701_v19 = vsub.f32 %v4597_v42, %v3260_v33  ;;  %v3261_v48 = vld [vmem:[%s4019_s5 + $0x60] sm:$0xff] }
 0x275   : > { %v1529_v2 = vpop.permute.xlu1 %1528 }
 0x276   : > { %v1733_v36 = vand.u32 2147483647, %v1701_v19  ;;  %v4609_v10 = vmul.f32 %v1529_v2, %v4355_v58  ;;  %1966 = vrot.lane.b32.xlu1 %v4604_v15, %s3354_s28  ;;  %2092 = vrot.lane.b32.xlu0 %v4592_v55, %s3355_s7 }
 0x278   : > { %v4616_v9 = vmul.f32 %v4396_v29, %v1733_v36  ;;  %v1702_v44 = vsub.f32 %v4609_v10, %v3261_v48  ;;  %v3262_v29 = vld [vmem:[%s4019_s5 + $0x68] sm:$0xff] }
 0x279   : > { %v1534_v52 = vpop.permute.xlu0 %1533 }
 0x27a   : > { %v1734_v61 = vand.u32 2147483647, %v1702_v44  ;;  %v4621_v63 = vmul.f32 %v1534_v52, %v4360_v14  ;;  %2094 = vrot.lane.b32.xlu1 %v4604_v15, %s3355_s7  ;;  %1968 = vrot.lane.b32.xlu0 %v4616_v9, %s3354_s28 }
 0x27c   : > { %v4628_v58 = vmul.f32 %v4409_v60, %v1734_v61  ;;  %v1703_v25 = vsub.f32 %v4621_v63, %v3262_v29  ;;  %v3263_v60 = vld [vmem:[%s4019_s5 + $0x70] sm:$0xff] }
 0x27d   : > { %v1539_v33 = vpop.permute.xlu1 %1538 }
 0x27e   : > { %v1735_v19 = vand.u32 2147483647, %v1703_v25  ;;  %v4633_v2 = vmul.f32 %v1539_v33, %v4365_v53  ;;  %1970 = vrot.lane.b32.xlu1 %v4628_v58, %s3354_s28  ;;  %2096 = vrot.lane.b32.xlu0 %v4616_v9, %s3355_s7 }
 0x280   : > { %5219 = vst [vmem:[#allocation17_spill] sm:$0xff] %v4633_v2  ;;  %v4640_v14 = vmul.f32 %v4404_v23, %v1735_v19  ;;  %v1704_v36 = vsub.f32 %v4633_v2, %v3263_v60  ;;  %v3264_v23 = vld [vmem:[%s4019_s5 + $0x78] sm:$0xff] }
 0x281   : > { %v1544_v48 = vpop.permute.xlu0 %1543 }
 0x282   : > { %v1736_v44 = vand.u32 2147483647, %v1704_v36  ;;  %v4645_v52 = vmul.f32 %v1544_v48, %v4372_v51  ;;  %2098 = vrot.lane.b32.xlu1 %v4628_v58, %s3355_s7  ;;  %1972 = vrot.lane.b32.xlu0 %v4640_v14, %s3354_s28 }
 0x284   : > { %5220 = vst [vmem:[#allocation18_spill] sm:$0xff] %v4645_v52  ;;  %v4652_v53 = vmul.f32 %v4418_v54, %v1736_v44  ;;  %v1705_v61 = vsub.f32 %v4645_v52, %v3264_v23  ;;  %v3265_v54 = vld [vmem:[%s4019_s5 + $0x80] sm:$0xff] }
 0x285   : > { %v1549_v29 = vpop.permute.xlu1 %1548 }
 0x286   : > { %v1737_v25 = vand.u32 2147483647, %v1705_v61  ;;  %v4657_v33 = vmul.f32 %v1549_v29, %v4377_v37  ;;  %1974 = vrot.lane.b32.xlu1 %v4652_v53, %s3354_s28  ;;  %2100 = vrot.lane.b32.xlu0 %v4640_v14, %s3355_s7 }
 0x288   : > { %5221 = vst [vmem:[#allocation19_spill] sm:$0xff] %v4657_v33  ;;  %v4664_v51 = vmul.f32 %v4413_v8, %v1737_v25  ;;  %v1706_v19 = vsub.f32 %v4657_v33, %v3265_v54  ;;  %v3266_v8 = vld [vmem:[%s4019_s5 + $0x88] sm:$0xff] }
 0x289   : > { %v1554_v60 = vpop.permute.xlu0 %1553 }
 0x28a   : > { %v1738_v36 = vand.u32 2147483647, %v1706_v19  ;;  %v4669_v48 = vmul.f32 %v1554_v60, %v4382_v31  ;;  %2102 = vrot.lane.b32.xlu1 %v4652_v53, %s3355_s7  ;;  %1976 = vrot.lane.b32.xlu0 %v4664_v51, %s3354_s28 }
 0x28c   : > { %5222 = vst [vmem:[#allocation20_spill] sm:$0xff] %v4669_v48  ;;  %v4676_v37 = vmul.f32 %v4426_v21, %v1738_v36  ;;  %v1707_v44 = vsub.f32 %v4669_v48, %v3266_v8  ;;  %v3267_v21 = vld [vmem:[%s4019_s5 + $0x90] sm:$0xff] }
 0x28d   : > { %v1559_v23 = vpop.permute.xlu1 %1558 }
 0x28e   : > { %v1739_v61 = vand.u32 2147483647, %v1707_v44  ;;  %v4681_v29 = vmul.f32 %v1559_v23, %v4389_v26  ;;  %1978 = vrot.lane.b32.xlu1 %v4676_v37, %s3354_s28  ;;  %2104 = vrot.lane.b32.xlu0 %v4664_v51, %s3355_s7 }
 0x290   : > { %5223 = vst [vmem:[#allocation21_spill] sm:$0xff] %v4681_v29  ;;  %v4688_v31 = vmul.f32 %v4421_v20, %v1739_v61  ;;  %v1708_v25 = vsub.f32 %v4681_v29, %v3267_v21  ;;  %v3268_v20 = vld [vmem:[%s4019_s5 + $0x98] sm:$0xff] }
 0x291   : > { %v1564_v54 = vpop.permute.xlu0 %1563 }
 0x292   : > { %v1740_v19 = vand.u32 2147483647, %v1708_v25  ;;  %v4693_v60 = vmul.f32 %v1564_v54, %v4394_v0  ;;  %2106 = vrot.lane.b32.xlu1 %v4676_v37, %s3355_s7  ;;  %1980 = vrot.lane.b32.xlu0 %v4688_v31, %s3354_s28 }
 0x294   : > { %5224 = vst [vmem:[#allocation22_spill] sm:$0xff] %v4693_v60  ;;  %v4700_v26 = vmul.f32 %v4435_v17, %v1740_v19  ;;  %v1709_v36 = vsub.f32 %v4693_v60, %v3268_v20  ;;  %v3269_v17 = vld [vmem:[%s4019_s5 + $0xa0] sm:$0xff] }
 0x295   : > { %v1569_v8 = vpop.permute.xlu1 %1568 }
 0x296   : > { %v1741_v44 = vand.u32 2147483647, %v1709_v36  ;;  %v4705_v23 = vmul.f32 %v1569_v8, %v4399_v39  ;;  %1982 = vrot.lane.b32.xlu1 %v4700_v26, %s3354_s28  ;;  %2108 = vrot.lane.b32.xlu0 %v4688_v31, %s3355_s7 }
 0x298   : > { %5225 = vst [vmem:[#allocation23_spill] sm:$0xff] %v4705_v23  ;;  %v4712_v0 = vmul.f32 %v4430_v46, %v1741_v44  ;;  %v1710_v61 = vsub.f32 %v4705_v23, %v3269_v17  ;;  %v3270_v46 = vld [vmem:[%s4019_s5 + $0xa8] sm:$0xff] }
 0x299   : > { %v1574_v21 = vpop.permute.xlu0 %1573 }
 0x29a   : > { %v1742_v25 = vand.u32 2147483647, %v1710_v61  ;;  %v4717_v54 = vmul.f32 %v1574_v21, %v4406_v18  ;;  %2110 = vrot.lane.b32.xlu1 %v4700_v26, %s3355_s7  ;;  %1984 = vrot.lane.b32.xlu0 %v4712_v0, %s3354_s28 }
 0x29c   : > { %5226 = vst [vmem:[#allocation24_spill] sm:$0xff] %v4717_v54  ;;  %v4724_v39 = vmul.f32 %v4443_v6, %v1742_v25  ;;  %v1711_v19 = vsub.f32 %v4717_v54, %v3270_v46  ;;  %v3271_v6 = vld [vmem:[%s4019_s5 + $0xb0] sm:$0xff] }
 0x29d   : > { %v1579_v20 = vpop.permute.xlu1 %1578 }
 0x29e   : > { %v1743_v36 = vand.u32 2147483647, %v1711_v19  ;;  %v4729_v8 = vmul.f32 %v1579_v20, %v4411_v57  ;;  %1986 = vrot.lane.b32.xlu1 %v4724_v39, %s3354_s28  ;;  %2112 = vrot.lane.b32.xlu0 %v4712_v0, %s3355_s7 }
 0x2a0   : > { %5227 = vst [vmem:[#allocation25_spill] sm:$0xff] %v4729_v8  ;;  %v4736_v18 = vmul.f32 %v4438_v7, %v1743_v36  ;;  %v1712_v44 = vsub.f32 %v4729_v8, %v3271_v6  ;;  %v3272_v7 = vld [vmem:[%s4019_s5 + $0xb8] sm:$0xff] }
 0x2a1   : > { %v1584_v17 = vpop.permute.xlu0 %1583 }
 0x2a2   : > { %v1744_v61 = vand.u32 2147483647, %v1712_v44  ;;  %v4741_v21 = vmul.f32 %v1584_v17, %v4416_v34  ;;  %2114 = vrot.lane.b32.xlu1 %v4724_v39, %s3355_s7  ;;  %1988 = vrot.lane.b32.xlu0 %v4736_v18, %s3354_s28  ;;  %v5230_v17 = vld [vmem:[#allocation5_spill] sm:$0xff] }
 0x2a4   : > { %5228 = vst [vmem:[#allocation26_spill] sm:$0xff] %v4741_v21  ;;  %v4748_v57 = vmul.f32 %v4450_v28, %v1744_v61  ;;  %v1713_v25 = vsub.f32 %v4741_v21, %v3272_v7  ;;  %v3273_v28 = vld [vmem:[%s4019_s5 + $0xc0] sm:$0xff] }
 0x2a5   : > { %v1589_v46 = vpop.permute.xlu1 %1588 }
 0x2a6   : > { %v1745_v19 = vand.u32 2147483647, %v1713_v25  ;;  %v4753_v20 = vmul.f32 %v1589_v46, %v4423_v1  ;;  %1990 = vrot.lane.b32.xlu1 %v4748_v57, %s3354_s28  ;;  %2116 = vrot.lane.b32.xlu0 %v4736_v18, %s3355_s7 }
 0x2a8   : > { %5229 = vst [vmem:[#allocation27_spill] sm:$0xff] %v4753_v20  ;;  %v4760_v34 = vmul.f32 %v4447_v30, %v1745_v19  ;;  %v1714_v36 = vsub.f32 %v4753_v20, %v3273_v28  ;;  %v3274_v30 = vld [vmem:[%s4019_s5 + $0xc8] sm:$0xff]  ;;  %v5232_v19 = vld [vmem:[#allocation7_spill] sm:$0xff]  ;;  %v5242_v20 = vld [vmem:[#allocation12_spill] sm:$0xff] }
 0x2a9   : > { %v1594_v6 = vpop.permute.xlu0 %1593 }
 0x2aa   : > { %v1746_v44 = vand.u32 2147483647, %v1714_v36  ;;  %v4765_v61 = vmul.f32 %v1594_v6, %v5230_v17  ;;  %2118 = vrot.lane.b32.xlu1 %v4748_v57, %s3355_s7  ;;  %1992 = vrot.lane.b32.xlu0 %v4760_v34, %s3354_s28 }
 0x2ac   : > { %5231 = vst [vmem:[#allocation5_spill] sm:$0xff] %v4765_v61  ;;  %v4772_v1 = vmul.f32 %v4459_v49, %v1746_v44  ;;  %v1715_v7 = vsub.f32 %v4765_v61, %v3274_v30  ;;  %v3275_v49 = vld [vmem:[%s4019_s5 + $0xd0] sm:$0xff]  ;;  %v5234_v30 = vld [vmem:[#allocation8_spill] sm:$0xff] }
 0x2ad   : > { %v1599_v25 = vpop.permute.xlu1 %1598 }
 0x2ae   : > { %v1747_v46 = vand.u32 2147483647, %v1715_v7  ;;  %v4777_v28 = vmul.f32 %v1599_v25, %v5232_v19  ;;  %1994 = vrot.lane.b32.xlu1 %v4772_v1, %s3354_s28  ;;  %2120 = vrot.lane.b32.xlu0 %v4760_v34, %s3355_s7 }
 0x2b0   : > { %5233 = vst [vmem:[#allocation7_spill] sm:$0xff] %v4777_v28  ;;  %v4784_v36 = vmul.f32 %v4455_v47, %v1747_v46  ;;  %v1716_v6 = vsub.f32 %v4777_v28, %v3275_v49  ;;  %v3276_v47 = vld [vmem:[%s4019_s5 + $0xd8] sm:$0xff]  ;;  %v5236_v28 = vld [vmem:[#allocation9_spill] sm:$0xff] }
 0x2b1   : > { %v1604_v44 = vpop.permute.xlu0 %1603 }
 0x2b2   : > { %v1748_v17 = vand.u32 2147483647, %v1716_v6  ;;  %v4789_v7 = vmul.f32 %v1604_v44, %v5234_v30  ;;  %2122 = vrot.lane.b32.xlu1 %v4772_v1, %s3355_s7  ;;  %1996 = vrot.lane.b32.xlu0 %v4784_v36, %s3354_s28  ;;  %v5238_v44 = vld [vmem:[#allocation10_spill] sm:$0xff] }
 0x2b4   : > { %5235 = vst [vmem:[#allocation8_spill] sm:$0xff] %v4789_v7  ;;  %v4796_v25 = vmul.f32 %v4467_v41, %v1748_v17  ;;  %v1717_v46 = vsub.f32 %v4789_v7, %v3276_v47  ;;  %v3277_v41 = vld [vmem:[%s4019_s5 + $0xe0] sm:$0xff]  ;;  %v5239_v7 = vld [vmem:[#allocation6_spill] sm:$0xff] }
 0x2b5   : > { %v1609_v19 = vpop.permute.xlu1 %1608 }
 0x2b6   : > { %v1749_v49 = vand.u32 2147483647, %v1717_v46  ;;  %v4801_v6 = vmul.f32 %v1609_v19, %v5236_v28  ;;  %1998 = vrot.lane.b32.xlu1 %v4796_v25, %s3354_s28  ;;  %2124 = vrot.lane.b32.xlu0 %v4784_v36, %s3355_s7  ;;  %v5241_v28 = vld [vmem:[#allocation14_spill] sm:$0xff] }
 0x2b8   : > { %5237 = vst [vmem:[#allocation9_spill] sm:$0xff] %v4801_v6  ;;  %v4808_v30 = vmul.f32 %v5238_v44, %v1749_v49  ;;  %v1718_v17 = vsub.f32 %v4801_v6, %v3277_v41  ;;  %v3278_v49 = vld [vmem:[%s4019_s5 + $0xe8] sm:$0xff] }
 0x2b9   : > { %v1614_v61 = vpop.permute.xlu0 %1613 }
 0x2ba   : > { %v1750_v47 = vand.u32 2147483647, %v1718_v17  ;;  %v4813_v46 = vmul.f32 %v1614_v61, %v5239_v7  ;;  %2126 = vrot.lane.b32.xlu1 %v4796_v25, %s3355_s7  ;;  %2000 = vrot.lane.b32.xlu0 %v4808_v30, %s3354_s28  ;;  %v5180_v61 = vlaneseq  ;;  %v5244_v7 = vld [vmem:[#allocation13_spill] sm:$0xff] }
 0x2bc   : > { %5240 = vst [vmem:[#allocation10_spill] sm:$0xff] %v4813_v46  ;;  %v4820_v19 = vmul.f32 %v5241_v28, %v1750_v47  ;;  %v1719_v44 = vsub.f32 %v4813_v46, %v3278_v49  ;;  %v3279_v47 = vld [vmem:[%s4019_s5 + $0xf0] sm:$0xff]  ;;  %v4845_v8 = vshrl.u32 %v5180_v61, 7 }
 0x2bd   : > { %v1619_v41 = vpop.permute.xlu1 %1618  ;;  %v5248_v61 = vld [vmem:[#allocation15_spill] sm:$0xff] }
 0x2be   : > { %v1751_v6 = vand.u32 2147483647, %v1719_v44  ;;  %v4825_v17 = vmul.f32 %v1619_v41, %v5242_v20  ;;  %2002 = vrot.lane.b32.xlu1 %v4820_v19, %s3354_s28  ;;  %2128 = vrot.lane.b32.xlu0 %v4808_v30, %s3355_s7  ;;  %v5245_v20 = vld [vmem:[#allocation11_spill] sm:$0xff]  ;;  %v2206_v33 = vadd.s32 24, %v4845_v8 }
 0x2c0   : > { %5243 = vst [vmem:[#allocation6_spill] sm:$0xff] %v4825_v17  ;;  %v4832_v21 = vmul.f32 %v5244_v7, %v1751_v6  ;;  %v1720_v28 = vsub.f32 %v4825_v17, %v3279_v47  ;;  %v4847_v6 = vstv %s2654_s8  ;;  %v5247_v7 = vld [vmem:[#allocation16_spill] sm:$0xff] }
 0x2c1   : > { %v1947_v49 = vpop.permute.xlu1 %1946  ;;  %v1624_v44 = vpop.permute.xlu0 %1623  ;;  %v3280_v17 = vld [vmem:[%s4019_s5 + $0xf8] sm:$0xff]  ;;  %v2237_v60 = vadd.s32 %v4847_v6, %v4845_v8 }
 0x2c2   : > { %v1752_v46 = vand.u32 2147483647, %v1720_v28  ;;  %v4838_v41 = vmul.f32 %v1624_v44, %v5245_v20  ;;  %2130 = vrot.lane.b32.xlu1 %v4820_v19, %s3355_s7  ;;  %2004 = vrot.lane.b32.xlu0 %v4832_v21, %s3354_s28  ;;  %v2205_v44 = vadd.s32 16, %v4845_v8 }
 0x2c3   : > { %vm2269_vm0 = vcmp.lt.s32.totalorder %v2237_v60, 512  ;;  %v2207_v60 = vadd.s32 32, %v4845_v8 }
 0x2c4   : > { %5246 = vst [vmem:[#allocation14_spill] sm:$0xff] %v4838_v41  ;;  %v4850_v47 = vmul.f32 %v5247_v7, %v1752_v46  ;;  %v1721_v28 = vsub.f32 %v4838_v41, %v3280_v17  ;;  %v2204_v46 = vadd.s32 8, %v4845_v8  ;;  %v2042_v7 = vadd.f32 %v1947_v49, %v4486_v12 }
 0x2c5   : > { %v2075_v20 = vpop.permute.xlu1 %2074  ;;  %v1949_v54 = vpop.permute.xlu0 %1948  ;;  %v2239_v41 = vadd.s32 %v4847_v6, %v2205_v44 }
 0x2c6   : > { %v1753_v23 = vand.u32 2147483647, %v1721_v28  ;;  %2006 = vrot.lane.b32.xlu1 %v4850_v47, %s3354_s28  ;;  %2132 = vrot.lane.b32.xlu0 %v4832_v21, %s3355_s7  ;;  %v2170_v29 = vadd.f32 %v2075_v20, %v2042_v7  ;;  %v2238_v52 = vadd.s32 %v4847_v6, %v2204_v46  ;;  %v2043_v12 = vadd.f32 %v1949_v54, %v4498_v50 }
 0x2c7   : > { %vm2271_vm1 = vcmp.lt.s32.totalorder %v2239_v41, 512  ;;  %v2240_v7 = vadd.s32 %v4847_v6, %v2206_v33  ;;  %v2208_v41 = vadd.s32 40, %v4845_v8 }
 0x2c8   : > { %v4864_v17 = vmul.f32 %v5248_v61, %v1753_v23  ;;  %v2301_v61 = vsel %vm2269_vm0, %v2170_v29, 0.0  ;;  %vm2270_vm2 = vcmp.lt.s32.totalorder %v2238_v52, 512 }
 0x2c9   : > { %v1951_v28 = vpop.permute.xlu1 %1950  ;;  %v2077_v48 = vpop.permute.xlu0 %2076  ;;  %vm2272_vm3 = vcmp.lt.s32.totalorder %v2240_v7, 512 }
 0x2ca   : > { %2134 = vrot.lane.b32.xlu1 %v4850_v47, %s3355_s7  ;;  %2008 = vrot.lane.b32.xlu0 %v4864_v17, %s3354_s28  ;;  %v2044_v23 = vadd.f32 %v1951_v28, %v4508_v32  ;;  %v2171_v49 = vadd.f32 %v2077_v48, %v2043_v12  ;;  %v2241_v48 = vadd.s32 %v4847_v6, %v2207_v60 }
 0x2cc   : > { %v2302_v54 = vsel %vm2270_vm2, %v2171_v49, 0.0  ;;  %vm2273_vm4 = vcmp.lt.s32.totalorder %v2241_v48, 512 }
 0x2cd   : > { %v2079_v44 = vpop.permute.xlu1 %2078  ;;  %v1953_v20 = vpop.permute.xlu0 %1952 }
 0x2ce   : > { %v2172_v46 = vadd.f32 %v2079_v44, %v2044_v23  ;;  %2338 = vperm.xlu1 %2836, %v2301_v61   ;;  %2136 = vrot.lane.b32.xlu0 %v4864_v17, %s3355_s7  ;;  %v2045_v50 = vadd.f32 %v1953_v20, %v4522_v13  ;;  %v2242_v61 = vadd.s32 %v4847_v6, %v2208_v41  ;;  %v2209_v13 = vadd.s32 48, %v4845_v8 }
 0x2d0   : > { %v2303_v2 = vsel %vm2271_vm1, %v2172_v46, 0.0  ;;  %vm2274_vm5 = vcmp.lt.s32.totalorder %v2242_v61, 512  ;;  %v2243_v60 = vadd.s32 %v4847_v6, %v2209_v13 }
 0x2d1   : > { %v1955_v32 = vpop.permute.xlu1 %1954  ;;  %v2081_v29 = vpop.permute.xlu0 %2080 }
 0x2d2   : > { %v2173_v33 = vadd.f32 %v2081_v29, %v2045_v50  ;;  %2348 = vperm.xlu1 %2836, %v2303_v2   ;;  %2343 = vperm.xlu0 %2837, %v2302_v54   ;;  %v2046_v52 = vadd.f32 %v1955_v32, %v4532_v40  ;;  %v2210_v40 = vadd.s32 56, %v4845_v8  ;;  %vm2275_vm6 = vcmp.lt.s32.totalorder %v2243_v60, 512 }
 0x2d4   : > { %v2304_v28 = vsel %vm2272_vm3, %v2173_v33, 0.0  ;;  %v2244_v48 = vadd.s32 %v4847_v6, %v2210_v40 }
 0x2d5   : > { %v2083_v12 = vpop.permute.xlu1 %2082  ;;  %v1957_v23 = vpop.permute.xlu0 %1956 }
 0x2d6   : > { %v2174_v49 = vadd.f32 %v2083_v12, %v2046_v52  ;;  %2353 = vperm.xlu1 %2836, %v2304_v28   ;;  %v2047_v20 = vadd.f32 %v1957_v23, %v4544_v38  ;;  %v2211_v38 = vadd.s32 64, %v4845_v8  ;;  %vm2276_vm7 = vcmp.lt.s32.totalorder %v2244_v48, 512 }
 0x2d8   : > { %v2305_v44 = vsel %vm2273_vm4, %v2174_v49, 0.0  ;;  %v2245_v23 = vadd.s32 %v4847_v6, %v2211_v38 }
 0x2d9   : > { %v1959_v7 = vpop.permute.xlu1 %1958  ;;  %2358 = vperm.xlu0 %2837, %v2305_v44   ;;  %v2085_v2 = vpop.permute.xlu0 %2084 }
 0x2da   : > { %v2175_v46 = vadd.f32 %v2085_v2, %v2047_v20  ;;  %v2048_v50 = vadd.f32 %v1959_v7, %v4556_v3  ;;  %v2212_v3 = vadd.s32 72, %v4845_v8  ;;  %vm2277_vm8 = vcmp.lt.s32.totalorder %v2245_v23, 512 }
 0x2dc   : > { %v2306_v54 = vsel %vm2274_vm5, %v2175_v46, 0.0  ;;  %v2246_v7 = vadd.s32 %v4847_v6, %v2212_v3 }
 0x2dd   : > { %v2087_v32 = vpop.permute.xlu1 %2086  ;;  %2363 = vperm.xlu1 %2836, %v2306_v54   ;;  %v1961_v29 = vpop.permute.xlu0 %1960 }
 0x2de   : > { %v2176_v41 = vadd.f32 %v2087_v32, %v2048_v50  ;;  %v2049_v52 = vadd.f32 %v1961_v29, %v4568_v35  ;;  %v2213_v35 = vadd.s32 80, %v4845_v8  ;;  %vm2278_vm9 = vcmp.lt.s32.totalorder %v2246_v7, 512 }
 0x2e0   : > { %v2307_v33 = vsel %vm2275_vm6, %v2176_v41, 0.0  ;;  %v2247_v54 = vadd.s32 %v4847_v6, %v2213_v35 }
 0x2e1   : > { %v1963_v28 = vpop.permute.xlu1 %1962  ;;  %2368 = vperm.xlu0 %2837, %v2307_v33   ;;  %v2089_v12 = vpop.permute.xlu0 %2088 }
 0x2e2   : > { %v2177_v61 = vadd.f32 %v2089_v12, %v2049_v52  ;;  %v2050_v13 = vadd.f32 %v1963_v28, %v4580_v24  ;;  %v2214_v24 = vadd.s32 88, %v4845_v8  ;;  %vm2279_vm10 = vcmp.lt.s32.totalorder %v2247_v54, 512 }
 0x2e4   : > { %v2308_v49 = vsel %vm2276_vm7, %v2177_v61, 0.0  ;;  %v2248_v33 = vadd.s32 %v4847_v6, %v2214_v24 }
 0x2e5   : > { %v2091_v44 = vpop.permute.xlu1 %2090  ;;  %2373 = vperm.xlu1 %2836, %v2308_v49   ;;  %v1965_v20 = vpop.permute.xlu0 %1964 }
 0x2e6   : > { %v2178_v2 = vadd.f32 %v2091_v44, %v2050_v13  ;;  %v2051_v40 = vadd.f32 %v1965_v20, %v4592_v55  ;;  %v2215_v55 = vadd.s32 96, %v4845_v8  ;;  %vm2280_vm11 = vcmp.lt.s32.totalorder %v2248_v33, 512 }
 0x2e8   : > { %v2309_v60 = vsel %vm2277_vm8, %v2178_v2, 0.0  ;;  %v2249_v61 = vadd.s32 %v4847_v6, %v2215_v55 }
 0x2e9   : > { %v1967_v46 = vpop.permute.xlu1 %1966  ;;  %2378 = vperm.xlu0 %2837, %v2309_v60   ;;  %v2093_v50 = vpop.permute.xlu0 %2092 }
 0x2ea   : > { %v2179_v32 = vadd.f32 %v2093_v50, %v2051_v40  ;;  %v2052_v29 = vadd.f32 %v1967_v46, %v4604_v15  ;;  %v2216_v15 = vadd.s32 104, %v4845_v8  ;;  %vm2281_vm12 = vcmp.lt.s32.totalorder %v2249_v61, 512 }
 0x2ec   : > { %v2310_v48 = vsel %vm2278_vm9, %v2179_v32, 0.0  ;;  %v2250_v35 = vadd.s32 %v4847_v6, %v2216_v15 }
 0x2ed   : > { %v2095_v38 = vpop.permute.xlu1 %2094  ;;  %2383 = vperm.xlu1 %2836, %v2310_v48   ;;  %v1969_v41 = vpop.permute.xlu0 %1968 }
 0x2ee   : > { %v2180_v52 = vadd.f32 %v2095_v38, %v2052_v29  ;;  %v2053_v12 = vadd.f32 %v1969_v41, %v4616_v9  ;;  %v2217_v9 = vadd.s32 112, %v4845_v8  ;;  %vm2282_vm13 = vcmp.lt.s32.totalorder %v2250_v35, 512 }
 0x2f0   : > { %v2311_v28 = vsel %vm2279_vm10, %v2180_v52, 0.0  ;;  %v2251_v54 = vadd.s32 %v4847_v6, %v2217_v9 }
 0x2f1   : > { %v1971_v23 = vpop.permute.xlu1 %1970  ;;  %2388 = vperm.xlu0 %2837, %v2311_v28   ;;  %v2097_v3 = vpop.permute.xlu0 %2096 }
 0x2f2   : > { %v2181_v13 = vadd.f32 %v2097_v3, %v2053_v12  ;;  %v2054_v49 = vadd.f32 %v1971_v23, %v4628_v58  ;;  %v2218_v58 = vadd.s32 120, %v4845_v8  ;;  %vm2283_vm14 = vcmp.lt.s32.totalorder %v2251_v54, 512 }
 0x2f4   : > { %v2312_v44 = vsel %vm2280_vm11, %v2181_v13, 0.0  ;;  %v2252_v41 = vadd.s32 %v4847_v6, %v2218_v58 }
 0x2f5   : > { %v2099_v20 = vpop.permute.xlu1 %2098  ;;  %2393 = vperm.xlu1 %2836, %v2312_v44   ;;  %v1973_v7 = vpop.permute.xlu0 %1972 }
 0x2f6   : > { %v2182_v2 = vadd.f32 %v2099_v20, %v2054_v49  ;;  %v2055_v40 = vadd.f32 %v1973_v7, %v4640_v14  ;;  %v2219_v14 = vadd.s32 128, %v4845_v8  ;;  %vm2284_vm15 = vcmp.lt.s32.totalorder %v2252_v41, 512 }
 0x2f8   : > { %v2313_v60 = vsel %vm2281_vm12, %v2182_v2, 0.0  ;;  %v2253_v23 = vadd.s32 %v4847_v6, %v2219_v14 }
 0x2f9   : > { %v1975_v46 = vpop.permute.xlu1 %1974  ;;  %2398 = vperm.xlu0 %2837, %v2313_v60   ;;  %v2101_v50 = vpop.permute.xlu0 %2100 }
 0x2fa   : > { %v2183_v24 = vadd.f32 %v2101_v50, %v2055_v40  ;;  %v2056_v32 = vadd.f32 %v1975_v46, %v4652_v53  ;;  %v2220_v53 = vadd.s32 136, %v4845_v8  ;;  %vm2285_vm0 = vcmp.lt.s32.totalorder %v2253_v23, 512 }
 0x2fc   : > { %v2314_v29 = vsel %vm2282_vm13, %v2183_v24, 0.0  ;;  %v2254_v44 = vadd.s32 %v4847_v6, %v2220_v53 }
 0x2fd   : > { %v2103_v48 = vpop.permute.xlu1 %2102  ;;  %2403 = vperm.xlu1 %2836, %v2314_v29   ;;  %v1977_v38 = vpop.permute.xlu0 %1976 }
 0x2fe   : > { %v2184_v33 = vadd.f32 %v2103_v48, %v2056_v32  ;;  %v2057_v52 = vadd.f32 %v1977_v38, %v4664_v51  ;;  %v2221_v51 = vadd.s32 144, %v4845_v8  ;;  %vm2286_vm1 = vcmp.lt.s32.totalorder %v2254_v44, 512 }
 0x300   : > { %v2315_v55 = vsel %vm2283_vm14, %v2184_v33, 0.0  ;;  %v2255_v60 = vadd.s32 %v4847_v6, %v2221_v51 }
 0x301   : > { %v1979_v28 = vpop.permute.xlu1 %1978  ;;  %2408 = vperm.xlu0 %2837, %v2315_v55   ;;  %v2105_v12 = vpop.permute.xlu0 %2104 }
 0x302   : > { %v2185_v3 = vadd.f32 %v2105_v12, %v2057_v52  ;;  %v2058_v61 = vadd.f32 %v1979_v28, %v4676_v37  ;;  %v2222_v37 = vadd.s32 152, %v4845_v8  ;;  %vm2287_vm2 = vcmp.lt.s32.totalorder %v2255_v60, 512 }
 0x304   : > { %v2316_v15 = vsel %vm2284_vm15, %v2185_v3, 0.0  ;;  %v2256_v24 = vadd.s32 %v4847_v6, %v2222_v37 }
 0x305   : > { %v2107_v13 = vpop.permute.xlu1 %2106  ;;  %2413 = vperm.xlu1 %2836, %v2316_v15   ;;  %v1981_v49 = vpop.permute.xlu0 %1980 }
 0x306   : > { %v2186_v20 = vadd.f32 %v2107_v13, %v2058_v61  ;;  %v2059_v35 = vadd.f32 %v1981_v49, %v4688_v31  ;;  %v2223_v31 = vadd.s32 160, %v4845_v8  ;;  %vm2288_vm3 = vcmp.lt.s32.totalorder %v2256_v24, 512 }
 0x308   : > { %v2317_v7 = vsel %vm2285_vm0, %v2186_v20, 0.0  ;;  %v2257_v14 = vadd.s32 %v4847_v6, %v2223_v31 }
 0x309   : > { %v1983_v9 = vpop.permute.xlu1 %1982  ;;  %2418 = vperm.xlu0 %2837, %v2317_v7   ;;  %v2109_v2 = vpop.permute.xlu0 %2108 }
 0x30a   : > { %v2187_v40 = vadd.f32 %v2109_v2, %v2059_v35  ;;  %v2060_v46 = vadd.f32 %v1983_v9, %v4700_v26  ;;  %v2224_v26 = vadd.s32 168, %v4845_v8  ;;  %vm2289_vm4 = vcmp.lt.s32.totalorder %v2257_v14, 512 }
 0x30c   : > { %v2318_v50 = vsel %vm2286_vm1, %v2187_v40, 0.0  ;;  %v2258_v23 = vadd.s32 %v4847_v6, %v2224_v26  ;;  %vm2528_vm1 = vcmask 64512  }
 0x30d   : > { %v2111_v54 = vpop.permute.xlu1 %2110  ;;  %2423 = vperm.xlu1 %2836, %v2318_v50   ;;  %v1985_v58 = vpop.permute.xlu0 %1984 }
 0x30e   : > { %v2188_v32 = vadd.f32 %v2111_v54, %v2060_v46  ;;  %v2061_v48 = vadd.f32 %v1985_v58, %v4712_v0  ;;  %v2225_v0 = vadd.s32 176, %v4845_v8  ;;  %vm2290_vm5 = vcmp.lt.s32.totalorder %v2258_v23, 512 }
 0x310   : > { %v2319_v29 = vsel %vm2287_vm2, %v2188_v32, 0.0  ;;  %v2259_v49 = vadd.s32 %v4847_v6, %v2225_v0 }
 0x311   : > { %v1987_v38 = vpop.permute.xlu1 %1986  ;;  %2428 = vperm.xlu0 %2837, %v2319_v29   ;;  %v2113_v41 = vpop.permute.xlu0 %2112 }
 0x312   : > { %v2189_v33 = vadd.f32 %v2113_v41, %v2061_v48  ;;  %v2062_v55 = vadd.f32 %v1987_v38, %v4724_v39  ;;  %v2226_v39 = vadd.s32 184, %v4845_v8  ;;  %vm2291_vm6 = vcmp.lt.s32.totalorder %v2259_v49, 512 }
 0x314   : > { %v2320_v52 = vsel %vm2288_vm3, %v2189_v33, 0.0  ;;  %v2260_v9 = vadd.s32 %v4847_v6, %v2226_v39 }
 0x315   : > { %v2115_v28 = vpop.permute.xlu1 %2114  ;;  %2433 = vperm.xlu1 %2836, %v2320_v52   ;;  %v1989_v12 = vpop.permute.xlu0 %1988 }
 0x316   : > { %v2190_v53 = vadd.f32 %v2115_v28, %v2062_v55  ;;  %v2063_v61 = vadd.f32 %v1989_v12, %v4736_v18  ;;  %v2227_v18 = vadd.s32 192, %v4845_v8  ;;  %vm2292_vm7 = vcmp.lt.s32.totalorder %v2260_v9, 512 }
 0x318   : > { %v2321_v3 = vsel %vm2289_vm4, %v2190_v53, 0.0  ;;  %v2261_v50 = vadd.s32 %v4847_v6, %v2227_v18 }
 0x319   : > { %v1991_v15 = vpop.permute.xlu1 %1990  ;;  %2438 = vperm.xlu0 %2837, %v2321_v3   ;;  %v2117_v13 = vpop.permute.xlu0 %2116 }
 0x31a   : > { %v2191_v44 = vadd.f32 %v2117_v13, %v2063_v61  ;;  %v2064_v51 = vadd.f32 %v1991_v15, %v4748_v57  ;;  %v2228_v57 = vadd.s32 200, %v4845_v8  ;;  %vm2293_vm8 = vcmp.lt.s32.totalorder %v2261_v50, 512 }
 0x31c   : > { %v2322_v20 = vsel %vm2290_vm5, %v2191_v44, 0.0  ;;  %v2262_v29 = vadd.s32 %v4847_v6, %v2228_v57 }
 0x31d   : > { %v2119_v7 = vpop.permute.xlu1 %2118  ;;  %2443 = vperm.xlu1 %2836, %v2322_v20   ;;  %v1993_v35 = vpop.permute.xlu0 %1992 }
 0x31e   : > { %v2192_v2 = vadd.f32 %v2119_v7, %v2064_v51  ;;  %v2065_v37 = vadd.f32 %v1993_v35, %v4760_v34  ;;  %v2229_v34 = vadd.s32 208, %v4845_v8  ;;  %vm2294_vm9 = vcmp.lt.s32.totalorder %v2262_v29, 512 }
 0x320   : > { %v2323_v60 = vsel %vm2291_vm6, %v2192_v2, 0.0  ;;  %v2263_v33 = vadd.s32 %v4847_v6, %v2229_v34 }
 0x321   : > { %v1995_v40 = vpop.permute.xlu1 %1994  ;;  %2448 = vperm.xlu0 %2837, %v2323_v60   ;;  %v2121_v46 = vpop.permute.xlu0 %2120 }
 0x322   : > { %v2193_v54 = vadd.f32 %v2121_v46, %v2065_v37  ;;  %v2066_v58 = vadd.f32 %v1995_v40, %v4772_v1  ;;  %v2230_v1 = vadd.s32 216, %v4845_v8  ;;  %vm2295_vm10 = vcmp.lt.s32.totalorder %v2263_v33, 512 }
 0x324   : > { %v2324_v24 = vsel %vm2292_vm7, %v2193_v54, 0.0  ;;  %v2264_v0 = vadd.s32 %v4847_v6, %v2230_v1 }
 0x325   : > { %v2123_v31 = vpop.permute.xlu1 %2122  ;;  %2453 = vperm.xlu1 %2836, %v2324_v24   ;;  %v1997_v32 = vpop.permute.xlu0 %1996 }
 0x326   : > { %v2194_v48 = vadd.f32 %v2123_v31, %v2066_v58  ;;  %v2067_v41 = vadd.f32 %v1997_v32, %v4784_v36  ;;  %v2231_v36 = vadd.s32 224, %v4845_v8  ;;  %vm2296_vm11 = vcmp.lt.s32.totalorder %v2264_v0, 512 }
 0x328   : > { %v2325_v38 = vsel %vm2293_vm8, %v2194_v48, 0.0  ;;  %v2265_v49 = vadd.s32 %v4847_v6, %v2231_v36  ;;  %v5249_v48 = vlaneseq }
 0x329   : > { %v1999_v14 = vpop.permute.xlu1 %1998  ;;  %2458 = vperm.xlu0 %2837, %v2325_v38   ;;  %v2125_v26 = vpop.permute.xlu0 %2124 }
 0x32a   : > { %v2195_v55 = vadd.f32 %v2125_v26, %v2067_v41  ;;  %v2068_v52 = vadd.f32 %v1999_v14, %v4796_v25  ;;  %v2232_v25 = vadd.s32 232, %v4845_v8  ;;  %vm2297_vm12 = vcmp.lt.s32.totalorder %v2265_v49, 512 }
 0x32c   : > { %v2326_v28 = vsel %vm2294_vm9, %v2195_v55, 0.0  ;;  %v2266_v35 = vadd.s32 %v4847_v6, %v2232_v25  ;;  %v5252_v25 = vld [vmem:[#allocation19_spill] sm:$0xff] }
 0x32d   : > { %v2127_v12 = vpop.permute.xlu1 %2126  ;;  %2463 = vperm.xlu1 %2836, %v2326_v28   ;;  %v2001_v23 = vpop.permute.xlu0 %2000 }
 0x32e   : > { %v2196_v53 = vadd.f32 %v2127_v12, %v2068_v52  ;;  %v2069_v61 = vadd.f32 %v2001_v23, %v4808_v30  ;;  %v2233_v30 = vadd.s32 240, %v4845_v8  ;;  %vm2298_vm13 = vcmp.lt.s32.totalorder %v2266_v35, 512  ;;  %v5254_v35 = vld [vmem:[#allocation21_spill] sm:$0xff] }
 0x330   : > { %v2327_v3 = vsel %vm2295_vm10, %v2196_v53, 0.0  ;;  %v2267_v40 = vadd.s32 %v4847_v6, %v2233_v30 }
 0x331   : > { %v2003_v15 = vpop.permute.xlu1 %2002  ;;  %2468 = vperm.xlu0 %2837, %v2327_v3   ;;  %v2129_v13 = vpop.permute.xlu0 %2128 }
 0x332   : > { %v2197_v39 = vadd.f32 %v2129_v13, %v2069_v61  ;;  %v2070_v44 = vadd.f32 %v2003_v15, %v4820_v19  ;;  %v2234_v19 = vadd.s32 248, %v4845_v8  ;;  %vm2299_vm14 = vcmp.lt.s32.totalorder %v2267_v40, 512  ;;  %v5250_v61 = vld [vmem:[#allocation17_spill] sm:$0xff]  ;;  %v5251_v13 = vld [vmem:[#allocation18_spill] sm:$0xff] }
 0x334   : > { %v2328_v51 = vsel %vm2296_vm11, %v2197_v39, 0.0  ;;  %v2268_v24 = vadd.s32 %v4847_v6, %v2234_v19 }
 0x335   : > { %v2131_v20 = vpop.permute.xlu1 %2130  ;;  %2473 = vperm.xlu1 %2836, %v2328_v51   ;;  %v2005_v7 = vpop.permute.xlu0 %2004  ;;  %v5253_v51 = vld [vmem:[#allocation20_spill] sm:$0xff] }
 0x336   : > { %v2198_v9 = vadd.f32 %v2131_v20, %v2070_v44  ;;  %v2071_v2 = vadd.f32 %v2005_v7, %v4832_v21  ;;  %vm2300_vm15 = vcmp.lt.s32.totalorder %v2268_v24, 512 }
 0x338   : > { %v2329_v18 = vsel %vm2297_vm12, %v2198_v9, 0.0 }
 0x339   : > { %v2007_v60 = vpop.permute.xlu1 %2006  ;;  %2478 = vperm.xlu0 %2837, %v2329_v18   ;;  %v2133_v37 = vpop.permute.xlu0 %2132  ;;  %v5255_v18 = vld [vmem:[#allocation22_spill] sm:$0xff] }
 0x33a   : > { %v2199_v46 = vadd.f32 %v2133_v37, %v2071_v2  ;;  %v2072_v50 = vadd.f32 %v2007_v60, %v4850_v47  ;;  %v4964_v47 = vand.u32 127, %v5249_v48  ;;  %v5256_v37 = vld [vmem:[#allocation23_spill] sm:$0xff]  ;;  %v5261_v48 = vld [vmem:[#allocation5_spill] sm:$0xff] }
 0x33c   : > { %v2330_v57 = vsel %vm2298_vm13, %v2199_v46, 0.0  ;;  %vm2335_vm0 = vcmp.eq.s32.totalorder %v4964_v47, 3  ;;  %v5257_v46 = vld [vmem:[#allocation24_spill] sm:$0xff] }
 0x33d   : > { %v2135_v54 = vpop.permute.xlu1 %2134  ;;  %2483 = vperm.xlu1 %2836, %v2330_v57   ;;  %v2009_v58 = vpop.permute.xlu0 %2008 }
 0x33e   : > { %v2200_v21 = vadd.f32 %v2135_v54, %v2072_v50  ;;  %v2073_v32 = vadd.f32 %v2009_v58, %v4864_v17  ;;  %v5258_v54 = vld [vmem:[#allocation25_spill] sm:$0xff] }
 0x340   : > { %v2331_v31 = vsel %vm2299_vm14, %v2200_v21, 0.0  ;;  %v5259_v21 = vld [vmem:[#allocation26_spill] sm:$0xff] }
 0x341   : > { %2488 = vperm.xlu0 %2837, %v2331_v31   ;;  %v2137_v29 = vpop.permute.xlu0 %2136 }
 0x342   : > { %v2201_v34 = vadd.f32 %v2137_v29, %v2073_v32  ;;  %v5260_v29 = vld [vmem:[#allocation27_spill] sm:$0xff] }
 0x344   : > { %v2332_v8 = vsel %vm2300_vm15, %v2201_v34, 0.0 }
 0x345   : > { %2493 = vperm.xlu1 %2836, %v2332_v8  }
 0x34d   : > { %v2339_v6 = vpop.permute.xlu1 %2338 }
 0x34e   : > { %v2496_v17 = vsel %vm2335_vm0, %v2339_v6, %v4478_v62 }
 0x34f   : > { %2529 = vst.msk [vmem:[%s4972_s10] sm:$0xff] %vm2528_vm1, %v2496_v17 }
 0x351   : > { %v2349_v38 = vpop.permute.xlu1 %2348  ;;  %v2344_v41 = vpop.permute.xlu0 %2343 }
 0x352   : > { %v2498_v14 = vsel %vm2335_vm0, %v2349_v38, %v4491_v4  ;;  %v2497_v26 = vsel %vm2335_vm0, %v2344_v41, %v4483_v5  ;;  %v5262_v38 = vld [vmem:[#allocation7_spill] sm:$0xff] }
 0x353   : > { %2531 = vst.msk [vmem:[%s4972_s10 + $0x10] sm:$0xff] %vm2528_vm1, %v2498_v14  ;;  %2530 = vst.msk [vmem:[%s4972_s10 + $0x8] sm:$0xff] %vm2528_vm1, %v2497_v26  ;;  %v5263_v26 = vld [vmem:[#allocation8_spill] sm:$0xff] }
 0x355   : > { %v2354_v62 = vpop.permute.xlu1 %2353 }
 0x356   : > { %v2499_v33 = vsel %vm2335_vm0, %v2354_v62, %v4501_v59 }
 0x357   : > { %2532 = vst.msk [vmem:[%s4972_s10 + $0x18] sm:$0xff] %vm2528_vm1, %v2499_v33 }
 0x358   : > { %v2359_v1 = vpop.permute.xlu0 %2358 }
 0x359   : > { %v2500_v4 = vsel %vm2335_vm0, %v2359_v1, %v4513_v11  ;;  %v5264_v1 = vld [vmem:[#allocation9_spill] sm:$0xff] }
 0x35a   : > { %2533 = vst.msk [vmem:[%s4972_s10 + $0x20] sm:$0xff] %vm2528_vm1, %v2500_v4 }
 0x35c   : > { %v2364_v5 = vpop.permute.xlu1 %2363 }
 0x35d   : > { %v2501_v55 = vsel %vm2335_vm0, %v2364_v5, %v4525_v45 }
 0x35e   : > { %2534 = vst.msk [vmem:[%s4972_s10 + $0x28] sm:$0xff] %vm2528_vm1, %v2501_v55  ;;  %v5265_v55 = vld [vmem:[#allocation10_spill] sm:$0xff] }
 0x360   : > { %v2369_v59 = vpop.permute.xlu0 %2368 }
 0x361   : > { %v2502_v52 = vsel %vm2335_vm0, %v2369_v59, %v4537_v43 }
 0x362   : > { %2535 = vst.msk [vmem:[%s4972_s10 + $0x30] sm:$0xff] %vm2528_vm1, %v2502_v52 }
 0x364   : > { %v2374_v11 = vpop.permute.xlu1 %2373 }
 0x365   : > { %v2503_v28 = vsel %vm2335_vm0, %v2374_v11, %v4549_v22  ;;  %v5266_v11 = vld [vmem:[#allocation6_spill] sm:$0xff] }
 0x366   : > { %2536 = vst.msk [vmem:[%s4972_s10 + $0x38] sm:$0xff] %vm2528_vm1, %v2503_v28 }
 0x368   : > { %v2379_v45 = vpop.permute.xlu0 %2378 }
 0x369   : > { %v2504_v12 = vsel %vm2335_vm0, %v2379_v45, %v4561_v27 }
 0x36a   : > { %2537 = vst.msk [vmem:[%s4972_s10 + $0x40] sm:$0xff] %vm2528_vm1, %v2504_v12  ;;  %v5267_v12 = vld [vmem:[#allocation14_spill] sm:$0xff] }
 0x36c   : > { %v2384_v43 = vpop.permute.xlu1 %2383 }
 0x36d   : > { %v2505_v23 = vsel %vm2335_vm0, %v2384_v43, %v4573_v16 }
 0x36e   : > { %2538 = vst.msk [vmem:[%s4972_s10 + $0x48] sm:$0xff] %vm2528_vm1, %v2505_v23 }
 0x370   : > { %v2389_v22 = vpop.permute.xlu0 %2388 }
 0x371   : > { %v2506_v0 = vsel %vm2335_vm0, %v2389_v22, %v4585_v56 }
 0x372   : > { %2539 = vst.msk [vmem:[%s4972_s10 + $0x50] sm:$0xff] %vm2528_vm1, %v2506_v0 }
 0x374   : > { %v2394_v27 = vpop.permute.xlu1 %2393 }
 0x375   : > { %v2507_v36 = vsel %vm2335_vm0, %v2394_v27, %v4597_v42 }
 0x376   : > { %2540 = vst.msk [vmem:[%s4972_s10 + $0x58] sm:$0xff] %vm2528_vm1, %v2507_v36 }
 0x378   : > { %v2399_v16 = vpop.permute.xlu0 %2398 }
 0x379   : > { %v2508_v53 = vsel %vm2335_vm0, %v2399_v16, %v4609_v10 }
 0x37a   : > { %2541 = vst.msk [vmem:[%s4972_s10 + $0x60] sm:$0xff] %vm2528_vm1, %v2508_v53 }
 0x37c   : > { %v2404_v56 = vpop.permute.xlu1 %2403 }
 0x37d   : > { %v2509_v3 = vsel %vm2335_vm0, %v2404_v56, %v4621_v63 }
 0x37e   : > { %2542 = vst.msk [vmem:[%s4972_s10 + $0x68] sm:$0xff] %vm2528_vm1, %v2509_v3 }
 0x380   : > { %v2409_v42 = vpop.permute.xlu0 %2408 }
 0x381   : > { %v2510_v15 = vsel %vm2335_vm0, %v2409_v42, %v5250_v61 }
 0x382   : > { %2543 = vst.msk [vmem:[%s4972_s10 + $0x70] sm:$0xff] %vm2528_vm1, %v2510_v15 }
 0x384   : > { %v2414_v10 = vpop.permute.xlu1 %2413 }
 0x385   : > { %v2511_v49 = vsel %vm2335_vm0, %v2414_v10, %v5251_v13 }
 0x386   : > { %2544 = vst.msk [vmem:[%s4972_s10 + $0x78] sm:$0xff] %vm2528_vm1, %v2511_v49 }
 0x388   : > { %v2419_v63 = vpop.permute.xlu0 %2418 }
 0x389   : > { %v2512_v39 = vsel %vm2335_vm0, %v2419_v63, %v5252_v25 }
 0x38a   : > { %2545 = vst.msk [vmem:[%s4972_s10 + $0x80] sm:$0xff] %vm2528_vm1, %v2512_v39 }
 0x38c   : > { %v2424_v44 = vpop.permute.xlu1 %2423 }
 0x38d   : > { %v2513_v20 = vsel %vm2335_vm0, %v2424_v44, %v5253_v51 }
 0x38e   : > { %2546 = vst.msk [vmem:[%s4972_s10 + $0x88] sm:$0xff] %vm2528_vm1, %v2513_v20 }
 0x390   : > { %v2429_v7 = vpop.permute.xlu0 %2428 }
 0x391   : > { %v2514_v30 = vsel %vm2335_vm0, %v2429_v7, %v5254_v35 }
 0x392   : > { %2547 = vst.msk [vmem:[%s4972_s10 + $0x90] sm:$0xff] %vm2528_vm1, %v2514_v30 }
 0x394   : > { %v2434_v9 = vpop.permute.xlu1 %2433 }
 0x395   : > { %v2515_v2 = vsel %vm2335_vm0, %v2434_v9, %v5255_v18 }
 0x396   : > { %2548 = vst.msk [vmem:[%s4972_s10 + $0x98] sm:$0xff] %vm2528_vm1, %v2515_v2 }
 0x398   : > { %v2439_v60 = vpop.permute.xlu0 %2438 }
 0x399   : > { %v2516_v40 = vsel %vm2335_vm0, %v2439_v60, %v5256_v37 }
 0x39a   : > { %2549 = vst.msk [vmem:[%s4972_s10 + $0xa0] sm:$0xff] %vm2528_vm1, %v2516_v40 }
 0x39c   : > { %v2444_v19 = vpop.permute.xlu1 %2443 }
 0x39d   : > { %v2517_v50 = vsel %vm2335_vm0, %v2444_v19, %v5257_v46 }
 0x39e   : > { %2550 = vst.msk [vmem:[%s4972_s10 + $0xa8] sm:$0xff] %vm2528_vm1, %v2517_v50 }
 0x3a0   : > { %v2449_v57 = vpop.permute.xlu0 %2448 }
 0x3a1   : > { %v2518_v58 = vsel %vm2335_vm0, %v2449_v57, %v5258_v54 }
 0x3a2   : > { %2551 = vst.msk [vmem:[%s4972_s10 + $0xb0] sm:$0xff] %vm2528_vm1, %v2518_v58 }
 0x3a4   : > { %v2454_v24 = vpop.permute.xlu1 %2453 }
 0x3a5   : > { %v2519_v31 = vsel %vm2335_vm0, %v2454_v24, %v5259_v21 }
 0x3a6   : > { %2552 = vst.msk [vmem:[%s4972_s10 + $0xb8] sm:$0xff] %vm2528_vm1, %v2519_v31 }
 0x3a8   : > { %v2459_v32 = vpop.permute.xlu0 %2458 }
 0x3a9   : > { %v2520_v34 = vsel %vm2335_vm0, %v2459_v32, %v5260_v29 }
 0x3aa   : > { %2553 = vst.msk [vmem:[%s4972_s10 + $0xc0] sm:$0xff] %vm2528_vm1, %v2520_v34 }
 0x3ac   : > { %v2464_v8 = vpop.permute.xlu1 %2463 }
 0x3ad   : > { %v2521_v6 = vsel %vm2335_vm0, %v2464_v8, %v5261_v48 }
 0x3ae   : > { %2554 = vst.msk [vmem:[%s4972_s10 + $0xc8] sm:$0xff] %vm2528_vm1, %v2521_v6 }
 0x3b0   : > { %v2469_v17 = vpop.permute.xlu0 %2468 }
 0x3b1   : > { %v2522_v41 = vsel %vm2335_vm0, %v2469_v17, %v5262_v38 }
 0x3b2   : > { %2555 = vst.msk [vmem:[%s4972_s10 + $0xd0] sm:$0xff] %vm2528_vm1, %v2522_v41 }
 0x3b4   : > { %v2474_v14 = vpop.permute.xlu1 %2473 }
 0x3b5   : > { %v2523_v62 = vsel %vm2335_vm0, %v2474_v14, %v5263_v26 }
 0x3b6   : > { %2556 = vst.msk [vmem:[%s4972_s10 + $0xd8] sm:$0xff] %vm2528_vm1, %v2523_v62 }
 0x3b8   : > { %v2479_v33 = vpop.permute.xlu0 %2478 }
 0x3b9   : > { %v2524_v4 = vsel %vm2335_vm0, %v2479_v33, %v5264_v1 }
 0x3ba   : > { %2557 = vst.msk [vmem:[%s4972_s10 + $0xe0] sm:$0xff] %vm2528_vm1, %v2524_v4 }
 0x3bc   : > { %v2484_v5 = vpop.permute.xlu1 %2483 }
 0x3bd   : > { %v2525_v59 = vsel %vm2335_vm0, %v2484_v5, %v5265_v55 }
 0x3be   : > { %2558 = vst.msk [vmem:[%s4972_s10 + $0xe8] sm:$0xff] %vm2528_vm1, %v2525_v59 }
 0x3c0   : > { %v2489_v52 = vpop.permute.xlu0 %2488 }
 0x3c1   : > { %v2526_v28 = vsel %vm2335_vm0, %v2489_v52, %v5266_v11 }
 0x3c2   : > { %2559 = vst.msk [vmem:[%s4972_s10 + $0xf0] sm:$0xff] %vm2528_vm1, %v2526_v28 }
 0x3c4   : > { %v2494_v45 = vpop.permute.xlu1 %2493 }
 0x3c5   : > { %v2527_v43 = vsel %vm2335_vm0, %v2494_v45, %v5267_v12 }
 0x3c6   : > { %2560 = vst.msk [vmem:[%s4972_s10 + $0xf8] sm:$0xff] %vm2528_vm1, %v2527_v43 }
 0x3c7 PF: > { %p13_p8 = scmp.ge.s32.totalorder %s3398_s17, 4   ;;  %s5268_s12 = smov %s3337_s13 }
 0x3c8   : > { %s5269_s13 = smov %s3341_s14  ;;  %s5270_s14 = smov %s3408_s20 }
 0x3c9   : > { %s5271_s15 = smov %s3398_s17  ;;  %15 = sbr.rel (!%p13_p8) target bundleno = 3 (0x3), region = 75 }
 0x3d0   :  { %2583 = vsyncpa [#allocation3], 1 }
 0x3d1   :  { %2585 = vsyncpa [#allocation3 + $0x1], 1 }

</bundles_post_ra>
